<compile_context>
chip_gen: v6e
topology: v6e:2x2x1
jax: 0.10.0
libtpu: 0.0.40
codegen_flags: <defaults>
</compile_context>

<pallas_src>
import jax
import jax.numpy as jnp
from jax.experimental import pallas as pl
from jax.experimental.pallas import tpu as pltpu

NEG_SLOPE = 0.01                      # nnU-Net LeakyReLU negative_slope
ACT_DTYPE = jnp.bfloat16              # inter-layer activation / MXU operand dtype

_ACC_BUDGET = 256 * 1024              # f32 accumulator bytes per grid step
_TILE_VMEM_BUDGET = 8 * 1024 * 1024   # double-buffered in+out tile bytes per step
_VMEM_LIMIT = 48 * 1024 * 1024        # explicit scoped-VMEM limit (fits v7x 64 MiB)


def _cpad(c):
    """Pad channel counts >= 128 up to a multiple of 128 (lane-dense MXU/stores)."""
    return c if c <= 128 else -(-c // 128) * 128


def _pick_row_tile(hout, sh, halo_h, wp, wout, cinp, coutp, act_bytes):
    """Largest output-row tile satisfying the halo-alignment constraint and the
    VMEM / accumulator budgets.  Returns None if no aligned tiling exists."""
    divisors = [d for d in range(hout, 0, -1) if hout % d == 0]
    valid = [d for d in divisors if halo_h <= 0 or (d * sh) % halo_h == 0]
    if not valid:
        return None

    def tile_bytes(d):
        inp = (d * sh + max(halo_h, 0)) * wp * cinp * act_bytes
        out = d * wout * coutp * act_bytes
        return 2 * (inp + out)          # pipeline double-buffers the blocks

    def acc_bytes(d):
        return d * wout * coutp * 4     # f32 accumulator

    fitting = [d for d in valid
               if tile_bytes(d) <= _TILE_VMEM_BUDGET and acc_bytes(d) <= _ACC_BUDGET]
    return fitting[0] if fitting else valid[-1]


def _make_conv_kernel(kh, kw, sh, sw, body_h, halo_h, tho, wout, cinp, coutp):
    """Fused direct conv ('same' padding, stride (sh, sw)) + bias + LeakyReLU for
    one (batch, row-tile) grid step."""
    use_halo = halo_h > 0

    def _tap(start, size, stride):
        return pl.ds(start, size, stride) if stride > 1 else pl.ds(start, size)

    def kernel(body_ref, halo_ref, w_ref, b_ref, o_ref, xbuf_ref):
        # Stage this tile's input rows (body + small overlapping halo) in VMEM.
        xbuf_ref[pl.ds(0, body_h), :, :] = body_ref[0, :, :, :]
        if use_halo:
            xbuf_ref[pl.ds(body_h, halo_h), :, :] = halo_ref[0, :, :, :]

        # f32 accumulator initialised with the bias (bias add hoisted here).
        acc = jnp.broadcast_to(b_ref[...].astype(jnp.float32),
                               (tho * wout, coutp))

        # Direct conv: kh*kw shifted, strided taps -> MXU matmuls with bf16
        # operands and f32 accumulation.
        for dy in range(kh):
            for dx in range(kw):
                tap = xbuf_ref[_tap(dy, tho, sh), _tap(dx, wout, sw), :]
                acc = acc + jnp.dot(tap.reshape(tho * wout, cinp),
                                    w_ref[dy, dx],
                                    preferred_element_type=jnp.float32)

        acc = jnp.where(acc >= 0, acc, NEG_SLOPE * acc)        # LeakyReLU
        o_ref[...] = acc.reshape(1, tho, wout, coutp).astype(o_ref.dtype)

    return kernel


def conv2d_lrelu(x_nhwc, w, b, stride):
    """conv2d (odd kernel, padding (k-1)//2, stride) + bias + LeakyReLU (Pallas)."""
    kh, kw, cinp, coutp = w.shape
    sh, sw = int(stride[0]), int(stride[1])
    ph, pw = (kh - 1) // 2, (kw - 1) // 2
    n, h, wd, _ = x_nhwc.shape
    hp, wp = h + 2 * ph, wd + 2 * pw
    hout = (hp - kh) // sh + 1
    wout = (wp - kw) // sw + 1
    act_bytes = x_nhwc.dtype.itemsize

    # TODO(synk): move the 'same' zero padding into the kernel (zero-filled VMEM
    # halo) to save this extra HBM round trip per layer.
    if ph or pw:
        x_pad = jnp.pad(x_nhwc, ((0, 0), (ph, ph), (pw, pw), (0, 0)))
    else:
        x_pad = x_nhwc

    halo_h = max(kh - sh, 0)
    tho = _pick_row_tile(hout, sh, halo_h, wp, wout, cinp, coutp, act_bytes)
    if tho is None:
        # No aligned row tiling exists: fall back to the whole padded image body.
        tho, body_h, halo_h, use_halo = hout, hp, 0, False
    else:
        body_h = tho * sh
        use_halo = halo_h > 0
    n_tiles = hout // tho
    th_in = body_h + (halo_h if use_halo else 0)

    if use_halo:
        hr = body_h // halo_h          # exact by construction
        halo_spec = pl.BlockSpec((1, halo_h, wp, cinp),
                                 lambda bi, ti: (bi, (ti + 1) * hr, 0, 0))
    else:
        halo_spec = pl.BlockSpec((1, 1, wp, cinp),
                                 lambda bi, ti: (bi, 0, 0, 0))

    kernel = _make_conv_kernel(kh, kw, sh, sw, body_h,
                               halo_h if use_halo else 0,
                               tho, wout, cinp, coutp)

    return pl.pallas_call(
        kernel,
        out_shape=jax.ShapeDtypeStruct((n, hout, wout, coutp), x_nhwc.dtype),
        grid_spec=pltpu.PrefetchScalarGridSpec(
            num_scalar_prefetch=0,
            grid=(n, n_tiles),
            in_specs=[
                pl.BlockSpec((1, body_h, wp, cinp),
                             lambda bi, ti: (bi, ti, 0, 0)),
                halo_spec,
                pl.BlockSpec((kh, kw, cinp, coutp),
                             lambda bi, ti: (0, 0, 0, 0)),
                pl.BlockSpec((1, coutp), lambda bi, ti: (0, 0)),
            ],
            out_specs=pl.BlockSpec((1, tho, wout, coutp),
                                   lambda bi, ti: (bi, ti, 0, 0)),
            scratch_shapes=[pltpu.VMEM((th_in, wp, cinp), x_nhwc.dtype)],
        ),
        compiler_params=pltpu.CompilerParams(
            dimension_semantics=("parallel", "parallel"),
            vmem_limit_bytes=_VMEM_LIMIT),
    )(x_pad, x_pad, w, b)


def init_params(key, input_channels, base_num_features, num_blocks_per_stage,
                feat_map_mul_on_downscale, pool_op_kernel_sizes,
                conv_kernel_sizes, max_num_features=480):
    """Deterministic synthetic parameters mirroring RepVGGUNetEncoder.__init__.
    Weights are bf16 and zero-padded along Cin/Cout to lane-friendly sizes;
    biases are f32."""
    num_stages = len(conv_kernel_sizes)
    if not isinstance(num_blocks_per_stage, (list, tuple)):
        num_blocks_per_stage = [num_blocks_per_stage] * num_stages

    keys = jax.random.split(key, 256)
    counter = iter(range(256))

    def conv_param(cin, cout, ksz):
        kkh, kkw = ksz
        cin_p, cout_p = _cpad(cin), _cpad(cout)
        wgt = jax.random.normal(keys[next(counter)], (kkh, kkw, cin, cout),
                                jnp.float32) * 0.1
        bia = jax.random.normal(keys[next(counter)], (cout,),
                                jnp.float32) * 0.01
        w_p = jnp.zeros((kkh, kkw, cin_p, cout_p), ACT_DTYPE)
        w_p = w_p.at[:, :, :cin, :cout].set(wgt.astype(ACT_DTYPE))
        b_p = jnp.zeros((1, cout_p), jnp.float32).at[:, :cout].set(bia)
        return w_p, b_p

    w0, b0 = conv_param(input_channels, base_num_features, (3, 3))
    params = {'initial': {'w': w0, 'b': b0, 'cout': base_num_features},
              'stages': []}
    cur_in = base_num_features
    for s in range(num_stages):
        cur_out = min(base_num_features * feat_map_mul_on_downscale ** s,
                      max_num_features)
        ksz = tuple(conv_kernel_sizes[s])
        first_stride = tuple(int(v) for v in pool_op_kernel_sizes[s])
        layers = []
        wl, bl = conv_param(cur_in, cur_out, ksz)
        layers.append({'w': wl, 'b': bl, 'stride': first_stride, 'cout': cur_out})
        for _ in range(2 * num_blocks_per_stage[s] - 1):
            wl, bl = conv_param(cur_out, cur_out, ksz)
            layers.append({'w': wl, 'b': bl, 'stride': (1, 1), 'cout': cur_out})
        params['stages'].append(layers)
        cur_in = cur_out
    return params


def repvgg_unet_encoder_forward(x_nchw, params, return_skips=True):
    """Forward pass.  Input/outputs are NCHW float32 (PyTorch convention)."""
    x = jnp.transpose(x_nchw, (0, 2, 3, 1)).astype(ACT_DTYPE)  # NCHW -> NHWC bf16
    x = conv2d_lrelu(x, params['initial']['w'], params['initial']['b'], (1, 1))
    skips = []
    for layers in params['stages']:
        for lyr in layers:
            x = conv2d_lrelu(x, lyr['w'], lyr['b'], lyr['stride'])
        skips.append((x, layers[-1]['cout']))

    def to_nchw(t, c):
        return jnp.transpose(t[..., :c], (0, 3, 1, 2)).astype(jnp.float32)

    if return_skips:
        return [to_nchw(t, c) for (t, c) in skips]
    t, c = skips[-1]
    return to_nchw(t, c)


def _reference_forward(x_nchw, params):
    """Pure-XLA reference with matching bf16/f32 precision choices."""
    def conv(x, w, b, stride):
        kh, kw = int(w.shape[0]), int(w.shape[1])
        y = jax.lax.conv_general_dilated(
            x, w, window_strides=tuple(stride),
            padding=[((kh - 1) // 2, (kh - 1) // 2),
                     ((kw - 1) // 2, (kw - 1) // 2)],
            dimension_numbers=('NHWC', 'HWIO', 'NHWC'),
            preferred_element_type=jnp.float32)
        y = y + b.reshape(1, 1, 1, -1)
        y = jnp.where(y >= 0, y, NEG_SLOPE * y)
        return y.astype(ACT_DTYPE)

    x = jnp.transpose(x_nchw, (0, 2, 3, 1)).astype(ACT_DTYPE)
    x = conv(x, params['initial']['w'], params['initial']['b'], (1, 1))
    skips = []
    for layers in params['stages']:
        for lyr in layers:
            x = conv(x, lyr['w'], lyr['b'], lyr['stride'])
        skips.append(jnp.transpose(x[..., :layers[-1]['cout']],
                                   (0, 3, 1, 2)).astype(jnp.float32))
    return skips


if __name__ == "__main__":
    # Small configuration consistent with the module's constructor.
    input_channels = 4
    base_num_features = 8
    num_blocks_per_stage = 1
    feat_map_mul_on_downscale = 2
    pool_op_kernel_sizes = [[1, 1], [2, 2]]
    conv_kernel_sizes = [[3, 3], [3, 3]]

    key = jax.random.PRNGKey(0)
    k_x, k_p = jax.random.split(key)
    x = jax.random.normal(k_x, (2, 4, 16, 16), jnp.float32)   # NCHW input

    params = init_params(k_p, input_channels, base_num_features,
                         num_blocks_per_stage, feat_map_mul_on_downscale,
                         pool_op_kernel_sizes, conv_kernel_sizes)

    skips = repvgg_unet_encoder_forward(x, params, return_skips=True)
    skips = [jax.block_until_ready(s) for s in skips]

    expected_shapes = [(2, 8, 16, 16), (2, 16, 8, 8)]
    assert [tuple(s.shape) for s in skips] == expected_shapes, \
        [tuple(s.shape) for s in skips]
    assert all(bool(jnp.all(jnp.isfinite(s))) for s in skips)

    # Numerical check against an XLA reference with the same precision choices.
    refs = _reference_forward(x, params)
    for got, ref in zip(skips, refs):
        err = float(jnp.max(jnp.abs(got - ref)))
        assert err < 6e-2, f"max abs err {err}"

    print("KERNEL_OK")
</pallas_src>

<mosaic_0001>
module attributes {stable_mosaic.version = 11 : i64} {
  func.func @kernel(%arg0: i32, %arg1: i32, %arg2: memref<1x16x18x4xbf16, #tpu.memory_space<vmem>>, %arg3: memref<1x2x18x4xbf16, #tpu.memory_space<vmem>>, %arg4: memref<3x3x4x8xbf16, #tpu.memory_space<vmem>>, %arg5: memref<1x8xf32, #tpu.memory_space<vmem>>, %arg6: memref<1x16x16x8xbf16, #tpu.memory_space<vmem>>, %arg7: memref<18x18x4xbf16, #tpu.memory_space<vmem>>) attributes {dimension_semantics = [#tpu.dimension_semantics<parallel>, #tpu.dimension_semantics<parallel>], iteration_bounds = array<i64: 2, 1>, scalar_prefetch = 0 : i64, scratch_operands = 1 : i64, tpu.core_type = #tpu.core_type<tc>, window_params = [{transform_indices = @transform_0, window_bounds = array<i64: 1, 16, 18, 4>}, {transform_indices = @transform_1, window_bounds = array<i64: 1, 2, 18, 4>}, {pipeline_mode = #tpu.pipeline_mode<synchronous>, transform_indices = @transform_2, window_bounds = array<i64: 3, 3, 4, 8>}, {pipeline_mode = #tpu.pipeline_mode<synchronous>, transform_indices = @transform_3, window_bounds = array<i64: 1, 8>}, {transform_indices = @transform_4, window_bounds = array<i64: 1, 16, 16, 8>}]} {
    %c0 = arith.constant 0 : index
    %c0_0 = arith.constant 0 : index
    %c0_1 = arith.constant 0 : index
    %c0_2 = arith.constant 0 : index
    %0 = vector.load %arg2[%c0, %c0_0, %c0_1, %c0_2] : memref<1x16x18x4xbf16, #tpu.memory_space<vmem>>, vector<1x16x18x4xbf16>
    %1 = vector.shape_cast %0 : vector<1x16x18x4xbf16> to vector<16x18x4xbf16>
    %c0_3 = arith.constant 0 : index
    %c0_4 = arith.constant 0 : index
    %c0_5 = arith.constant 0 : index
    %2 = vector.load %arg7[%c0_3, %c0_4, %c0_5] : memref<18x18x4xbf16, #tpu.memory_space<vmem>>, vector<16x18x4xbf16>
    tpu.vector_store %arg7[%c0_3, %c0_4, %c0_5], %1 {strides = array<i32>} : memref<18x18x4xbf16, #tpu.memory_space<vmem>>, vector<16x18x4xbf16>,
    %c0_6 = arith.constant 0 : index
    %c0_7 = arith.constant 0 : index
    %c0_8 = arith.constant 0 : index
    %c0_9 = arith.constant 0 : index
    %3 = vector.load %arg3[%c0_6, %c0_7, %c0_8, %c0_9] : memref<1x2x18x4xbf16, #tpu.memory_space<vmem>>, vector<1x2x18x4xbf16>
    %4 = vector.shape_cast %3 : vector<1x2x18x4xbf16> to vector<2x18x4xbf16>
    %c16 = arith.constant 16 : index
    %c0_10 = arith.constant 0 : index
    %c0_11 = arith.constant 0 : index
    %5 = vector.load %arg7[%c16, %c0_10, %c0_11] : memref<18x18x4xbf16, #tpu.memory_space<vmem>>, vector<2x18x4xbf16>
    tpu.vector_store %arg7[%c16, %c0_10, %c0_11], %4 {strides = array<i32>} : memref<18x18x4xbf16, #tpu.memory_space<vmem>>, vector<2x18x4xbf16>,
    %c0_12 = arith.constant 0 : index
    %c0_13 = arith.constant 0 : index
    %6 = vector.load %arg5[%c0_12, %c0_13] : memref<1x8xf32, #tpu.memory_space<vmem>>, vector<1x8xf32>
    %7 = vector.shape_cast %6 : vector<1x8xf32> to vector<1x8xf32>
    %8 = vector.broadcast %7 : vector<1x8xf32> to vector<256x8xf32>
    %c0_14 = arith.constant 0 : index
    %c0_15 = arith.constant 0 : index
    %c0_16 = arith.constant 0 : index
    %9 = vector.load %arg7[%c0_14, %c0_15, %c0_16] : memref<18x18x4xbf16, #tpu.memory_space<vmem>>, vector<16x16x4xbf16>
    %10 = vector.shape_cast %9 : vector<16x16x4xbf16> to vector<256x4xbf16>
    %c0_17 = arith.constant 0 : index
    %c0_18 = arith.constant 0 : index
    %c0_19 = arith.constant 0 : index
    %c0_20 = arith.constant 0 : index
    %11 = vector.load %arg4[%c0_17, %c0_18, %c0_19, %c0_20] : memref<3x3x4x8xbf16, #tpu.memory_space<vmem>>, vector<1x1x4x8xbf16>
    %12 = vector.shape_cast %11 : vector<1x1x4x8xbf16> to vector<4x8xbf16>
    %cst = arith.constant dense<0.000000e+00> : vector<256x8xf32>
    %13 = tpu.matmul %10, %12, %cst {dimension_numbers = #tpu.dot_dimension_numbers<[1], [0], [0], [1], [0, 0, 1, 1], [], []>} : vector<256x4xbf16>, vector<4x8xbf16>, vector<256x8xf32> -> vector<256x8xf32>
    %14 = arith.addf %8, %13 : vector<256x8xf32>
    %c0_21 = arith.constant 0 : index
    %c1 = arith.constant 1 : index
    %c0_22 = arith.constant 0 : index
    %15 = vector.load %arg7[%c0_21, %c1, %c0_22] : memref<18x18x4xbf16, #tpu.memory_space<vmem>>, vector<16x16x4xbf16>
    %16 = vector.shape_cast %15 : vector<16x16x4xbf16> to vector<256x4xbf16>
    %c0_23 = arith.constant 0 : index
    %c1_24 = arith.constant 1 : index
    %c0_25 = arith.constant 0 : index
    %c0_26 = arith.constant 0 : index
    %17 = vector.load %arg4[%c0_23, %c1_24, %c0_25, %c0_26] : memref<3x3x4x8xbf16, #tpu.memory_space<vmem>>, vector<1x1x4x8xbf16>
    %18 = vector.shape_cast %17 : vector<1x1x4x8xbf16> to vector<4x8xbf16>
    %cst_27 = arith.constant dense<0.000000e+00> : vector<256x8xf32>
    %19 = tpu.matmul %16, %18, %cst_27 {dimension_numbers = #tpu.dot_dimension_numbers<[1], [0], [0], [1], [0, 0, 1, 1], [], []>} : vector<256x4xbf16>, vector<4x8xbf16>, vector<256x8xf32> -> vector<256x8xf32>
    %20 = arith.addf %14, %19 : vector<256x8xf32>
    %c0_28 = arith.constant 0 : index
    %c2 = arith.constant 2 : index
    %c0_29 = arith.constant 0 : index
    %21 = vector.load %arg7[%c0_28, %c2, %c0_29] : memref<18x18x4xbf16, #tpu.memory_space<vmem>>, vector<16x16x4xbf16>
    %22 = vector.shape_cast %21 : vector<16x16x4xbf16> to vector<256x4xbf16>
    %c0_30 = arith.constant 0 : index
    %c2_31 = arith.constant 2 : index
    %c0_32 = arith.constant 0 : index
    %c0_33 = arith.constant 0 : index
    %23 = vector.load %arg4[%c0_30, %c2_31, %c0_32, %c0_33] : memref<3x3x4x8xbf16, #tpu.memory_space<vmem>>, vector<1x1x4x8xbf16>
    %24 = vector.shape_cast %23 : vector<1x1x4x8xbf16> to vector<4x8xbf16>
    %cst_34 = arith.constant dense<0.000000e+00> : vector<256x8xf32>
    %25 = tpu.matmul %22, %24, %cst_34 {dimension_numbers = #tpu.dot_dimension_numbers<[1], [0], [0], [1], [0, 0, 1, 1], [], []>} : vector<256x4xbf16>, vector<4x8xbf16>, vector<256x8xf32> -> vector<256x8xf32>
    %26 = arith.addf %20, %25 : vector<256x8xf32>
    %c1_35 = arith.constant 1 : index
    %c0_36 = arith.constant 0 : index
    %c0_37 = arith.constant 0 : index
    %27 = vector.load %arg7[%c1_35, %c0_36, %c0_37] : memref<18x18x4xbf16, #tpu.memory_space<vmem>>, vector<16x16x4xbf16>
    %28 = vector.shape_cast %27 : vector<16x16x4xbf16> to vector<256x4xbf16>
    %c1_38 = arith.constant 1 : index
    %c0_39 = arith.constant 0 : index
    %c0_40 = arith.constant 0 : index
    %c0_41 = arith.constant 0 : index
    %29 = vector.load %arg4[%c1_38, %c0_39, %c0_40, %c0_41] : memref<3x3x4x8xbf16, #tpu.memory_space<vmem>>, vector<1x1x4x8xbf16>
    %30 = vector.shape_cast %29 : vector<1x1x4x8xbf16> to vector<4x8xbf16>
    %cst_42 = arith.constant dense<0.000000e+00> : vector<256x8xf32>
    %31 = tpu.matmul %28, %30, %cst_42 {dimension_numbers = #tpu.dot_dimension_numbers<[1], [0], [0], [1], [0, 0, 1, 1], [], []>} : vector<256x4xbf16>, vector<4x8xbf16>, vector<256x8xf32> -> vector<256x8xf32>
    %32 = arith.addf %26, %31 : vector<256x8xf32>
    %c1_43 = arith.constant 1 : index
    %c1_44 = arith.constant 1 : index
    %c0_45 = arith.constant 0 : index
    %33 = vector.load %arg7[%c1_43, %c1_44, %c0_45] : memref<18x18x4xbf16, #tpu.memory_space<vmem>>, vector<16x16x4xbf16>
    %34 = vector.shape_cast %33 : vector<16x16x4xbf16> to vector<256x4xbf16>
    %c1_46 = arith.constant 1 : index
    %c1_47 = arith.constant 1 : index
    %c0_48 = arith.constant 0 : index
    %c0_49 = arith.constant 0 : index
    %35 = vector.load %arg4[%c1_46, %c1_47, %c0_48, %c0_49] : memref<3x3x4x8xbf16, #tpu.memory_space<vmem>>, vector<1x1x4x8xbf16>
    %36 = vector.shape_cast %35 : vector<1x1x4x8xbf16> to vector<4x8xbf16>
    %cst_50 = arith.constant dense<0.000000e+00> : vector<256x8xf32>
    %37 = tpu.matmul %34, %36, %cst_50 {dimension_numbers = #tpu.dot_dimension_numbers<[1], [0], [0], [1], [0, 0, 1, 1], [], []>} : vector<256x4xbf16>, vector<4x8xbf16>, vector<256x8xf32> -> vector<256x8xf32>
    %38 = arith.addf %32, %37 : vector<256x8xf32>
    %c1_51 = arith.constant 1 : index
    %c2_52 = arith.constant 2 : index
    %c0_53 = arith.constant 0 : index
    %39 = vector.load %arg7[%c1_51, %c2_52, %c0_53] : memref<18x18x4xbf16, #tpu.memory_space<vmem>>, vector<16x16x4xbf16>
    %40 = vector.shape_cast %39 : vector<16x16x4xbf16> to vector<256x4xbf16>
    %c1_54 = arith.constant 1 : index
    %c2_55 = arith.constant 2 : index
    %c0_56 = arith.constant 0 : index
    %c0_57 = arith.constant 0 : index
    %41 = vector.load %arg4[%c1_54, %c2_55, %c0_56, %c0_57] : memref<3x3x4x8xbf16, #tpu.memory_space<vmem>>, vector<1x1x4x8xbf16>
    %42 = vector.shape_cast %41 : vector<1x1x4x8xbf16> to vector<4x8xbf16>
    %cst_58 = arith.constant dense<0.000000e+00> : vector<256x8xf32>
    %43 = tpu.matmul %40, %42, %cst_58 {dimension_numbers = #tpu.dot_dimension_numbers<[1], [0], [0], [1], [0, 0, 1, 1], [], []>} : vector<256x4xbf16>, vector<4x8xbf16>, vector<256x8xf32> -> vector<256x8xf32>
    %44 = arith.addf %38, %43 : vector<256x8xf32>
    %c2_59 = arith.constant 2 : index
    %c0_60 = arith.constant 0 : index
    %c0_61 = arith.constant 0 : index
    %45 = vector.load %arg7[%c2_59, %c0_60, %c0_61] : memref<18x18x4xbf16, #tpu.memory_space<vmem>>, vector<16x16x4xbf16>
    %46 = vector.shape_cast %45 : vector<16x16x4xbf16> to vector<256x4xbf16>
    %c2_62 = arith.constant 2 : index
    %c0_63 = arith.constant 0 : index
    %c0_64 = arith.constant 0 : index
    %c0_65 = arith.constant 0 : index
    %47 = vector.load %arg4[%c2_62, %c0_63, %c0_64, %c0_65] : memref<3x3x4x8xbf16, #tpu.memory_space<vmem>>, vector<1x1x4x8xbf16>
    %48 = vector.shape_cast %47 : vector<1x1x4x8xbf16> to vector<4x8xbf16>
    %cst_66 = arith.constant dense<0.000000e+00> : vector<256x8xf32>
    %49 = tpu.matmul %46, %48, %cst_66 {dimension_numbers = #tpu.dot_dimension_numbers<[1], [0], [0], [1], [0, 0, 1, 1], [], []>} : vector<256x4xbf16>, vector<4x8xbf16>, vector<256x8xf32> -> vector<256x8xf32>
    %50 = arith.addf %44, %49 : vector<256x8xf32>
    %c2_67 = arith.constant 2 : index
    %c1_68 = arith.constant 1 : index
    %c0_69 = arith.constant 0 : index
    %51 = vector.load %arg7[%c2_67, %c1_68, %c0_69] : memref<18x18x4xbf16, #tpu.memory_space<vmem>>, vector<16x16x4xbf16>
    %52 = vector.shape_cast %51 : vector<16x16x4xbf16> to vector<256x4xbf16>
    %c2_70 = arith.constant 2 : index
    %c1_71 = arith.constant 1 : index
    %c0_72 = arith.constant 0 : index
    %c0_73 = arith.constant 0 : index
    %53 = vector.load %arg4[%c2_70, %c1_71, %c0_72, %c0_73] : memref<3x3x4x8xbf16, #tpu.memory_space<vmem>>, vector<1x1x4x8xbf16>
    %54 = vector.shape_cast %53 : vector<1x1x4x8xbf16> to vector<4x8xbf16>
    %cst_74 = arith.constant dense<0.000000e+00> : vector<256x8xf32>
    %55 = tpu.matmul %52, %54, %cst_74 {dimension_numbers = #tpu.dot_dimension_numbers<[1], [0], [0], [1], [0, 0, 1, 1], [], []>} : vector<256x4xbf16>, vector<4x8xbf16>, vector<256x8xf32> -> vector<256x8xf32>
    %56 = arith.addf %50, %55 : vector<256x8xf32>
    %c2_75 = arith.constant 2 : index
    %c2_76 = arith.constant 2 : index
    %c0_77 = arith.constant 0 : index
    %57 = vector.load %arg7[%c2_75, %c2_76, %c0_77] : memref<18x18x4xbf16, #tpu.memory_space<vmem>>, vector<16x16x4xbf16>
    %58 = vector.shape_cast %57 : vector<16x16x4xbf16> to vector<256x4xbf16>
    %c2_78 = arith.constant 2 : index
    %c2_79 = arith.constant 2 : index
    %c0_80 = arith.constant 0 : index
    %c0_81 = arith.constant 0 : index
    %59 = vector.load %arg4[%c2_78, %c2_79, %c0_80, %c0_81] : memref<3x3x4x8xbf16, #tpu.memory_space<vmem>>, vector<1x1x4x8xbf16>
    %60 = vector.shape_cast %59 : vector<1x1x4x8xbf16> to vector<4x8xbf16>
    %cst_82 = arith.constant dense<0.000000e+00> : vector<256x8xf32>
    %61 = tpu.matmul %58, %60, %cst_82 {dimension_numbers = #tpu.dot_dimension_numbers<[1], [0], [0], [1], [0, 0, 1, 1], [], []>} : vector<256x4xbf16>, vector<4x8xbf16>, vector<256x8xf32> -> vector<256x8xf32>
    %62 = arith.addf %56, %61 : vector<256x8xf32>
    %cst_83 = arith.constant 0.000000e+00 : f32
    %63 = vector.broadcast %cst_83 : f32 to vector<256x8xf32>
    %64 = arith.cmpf oge, %62, %63 : vector<256x8xf32>
    %cst_84 = arith.constant 0.00999999977 : f32
    %65 = vector.broadcast %cst_84 : f32 to vector<256x8xf32>
    %66 = arith.mulf %65, %62 : vector<256x8xf32>
    %67 = arith.select %64, %62, %66 : vector<256x8xi1>, vector<256x8xf32>
    %68 = vector.shape_cast %67 : vector<256x8xf32> to vector<1x16x16x8xf32>
    %69 = arith.truncf %68 : vector<1x16x16x8xf32> to vector<1x16x16x8xbf16>
    %c0_85 = arith.constant 0 : index
    %c0_86 = arith.constant 0 : index
    %c0_87 = arith.constant 0 : index
    %c0_88 = arith.constant 0 : index
    %70 = vector.load %arg6[%c0_85, %c0_86, %c0_87, %c0_88] : memref<1x16x16x8xbf16, #tpu.memory_space<vmem>>, vector<1x16x16x8xbf16>
    tpu.vector_store %arg6[%c0_85, %c0_86, %c0_87, %c0_88], %69 {strides = array<i32>} : memref<1x16x16x8xbf16, #tpu.memory_space<vmem>>, vector<1x16x16x8xbf16>,
    return
  }
  func.func @transform_0(%arg0: i32, %arg1: i32) -> (i32, i32, i32, i32) {
    %c0_i32 = arith.constant 0 : i32
    %c0_i32_0 = arith.constant 0 : i32
    %c0_i32_1 = arith.constant 0 : i32
    return %arg0, %arg1, %c0_i32, %c0_i32_0 : i32, i32, i32, i32
  }
  func.func @transform_1(%arg0: i32, %arg1: i32) -> (i32, i32, i32, i32) {
    %c1_i32 = arith.constant 1 : i32
    %0 = arith.addi %arg1, %c1_i32 : i32
    %c8_i32 = arith.constant 8 : i32
    %1 = arith.muli %0, %c8_i32 : i32
    %c0_i32 = arith.constant 0 : i32
    %c0_i32_0 = arith.constant 0 : i32
    %c0_i32_1 = arith.constant 0 : i32
    return %arg0, %1, %c0_i32, %c0_i32_0 : i32, i32, i32, i32
  }
  func.func @transform_2(%arg0: i32, %arg1: i32) -> (i32, i32, i32, i32) {
    %c0_i32 = arith.constant 0 : i32
    %c0_i32_0 = arith.constant 0 : i32
    %c0_i32_1 = arith.constant 0 : i32
    %c0_i32_2 = arith.constant 0 : i32
    %c0_i32_3 = arith.constant 0 : i32
    return %c0_i32, %c0_i32_0, %c0_i32_1, %c0_i32_2 : i32, i32, i32, i32
  }
  func.func @transform_3(%arg0: i32, %arg1: i32) -> (i32, i32) {
    %c0_i32 = arith.constant 0 : i32
    %c0_i32_0 = arith.constant 0 : i32
    %c0_i32_1 = arith.constant 0 : i32
    return %c0_i32, %c0_i32_0 : i32, i32
  }
  func.func @transform_4(%arg0: i32, %arg1: i32) -> (i32, i32, i32, i32) {
    %c0_i32 = arith.constant 0 : i32
    %c0_i32_0 = arith.constant 0 : i32
    %c0_i32_1 = arith.constant 0 : i32
    return %arg0, %arg1, %c0_i32, %c0_i32_0 : i32, i32, i32, i32
  }
}

</mosaic_0001>

<bundles_post_ra>
// kernel: tpu_custom_call.1
= control target key start
LH: loop header
LB: loop body
LE: loop exit
PB: predicated region body
PF: predicated region fallthrough
CT: control target
= control target key end

     0   :  { %s6502_s15 = smov 0   ;;  %s6504_s16 = smov 0   ;;  %s8186_s0 = inlined_call_operand.vmem [shape: bf16[2,18,18,4], index: 0, kind: input, shape index: {}]   ;;  %s8187_s1 = inlined_call_operand.vmem [shape: bf16[2,18,18,4], index: 1, kind: input, shape index: {}]   ;;  %s8188_s2 = inlined_call_operand.vmem [shape: bf16[3,3,4,8], index: 2, kind: input, shape index: {}]   ;;  %s8189_s3 = inlined_call_operand.vmem [shape: f32[1,8], index: 3, kind: input, shape index: {}]   ;;  %s8190_s4 = inlined_call_operand.vmem [shape: bf16[2,16,16,8], index: 4, kind: output, shape index: {}]  }
   0x1   :  { %s6506_s17 = smov 0  }
   0x2 LB: > { %s26_s18 = sadd.s32 1, %s6471_s16  ;;  %p5488_p0 = scmp.ge.s32.totalorder %s6475_s17, 1  ;;  %s6475_s17 = sphi %s6506_s17, %s14_s17   ;;  %s6471_s16 = sphi %s6504_s16, %s8285_s16   ;;  %s6467_s15 = sphi %s6502_s15, %s8284_s15  }
   0x3   : > { %p28_p1 = scmp.ge.s32.totalorder %s26_s18, 2  ;;  %p220_p2 = scmp.lt.s32.totalorder %s6475_s17, 3 }
   0x5   : > { %s8287_s18 = smov (%p28_p1, %s26_s18), 0  ;;  %p221_p3 = pnand %p5488_p0, %p220_p2 }
   0x7   : > { %224 = sbr.rel (%p221_p3) target bundleno = 575 (0x23f), region = 36 }
   0xc   : > { %v471_v0 = vld [vmem:[%s8188_s2] sm:$0x3]  ;;  %vm601_vm0 = vcmask 1041408   ;;  %p279_p4 = scmp.lt.s32.totalorder %s6467_s15, 1  ;;  %v6529_v2 = vld [vmem:[%s8188_s2 + $0x2] sm:$0x3] }
   0xd   : > { %6369 = vmatprep.subr.msk.bf16.mxu1 %vm601_vm0, %v471_v0  ;;  %6368 = vmatprep.subr.msk.bf16.mxu0 %vm601_vm0, %v471_v0  ;;  %v603_v1 = vsel %vm601_vm0, %v471_v0, 0  ;;  %v5575_v3 = vld [vmem:[%s8188_s2 + $0x4] sm:$0x3]  ;;  %vm369_vm1 = vcmask 27648   ;;  %vm552_vm2 = vcmask 31744   ;;  %v1332_v34 = vsel %vm601_vm0, %v6529_v2, 0 }
   0xe   : > { %6367 = vmatpush3.bf16.msra.mxu1 %v603_v1  ;;  %6061 = vmatpush3.bf16.msra.mxu0 %v603_v1  ;;  %s8289_s15 = smov (!%p279_p4, %s6467_s15), 1  ;;  %v1805_v31 = vsel %vm601_vm0, %v5575_v3, 0  ;;  %v5608_v32 = vld [vmem:[%s8188_s2 + $0x6] sm:$0x3]  ;;  %v6606_v35 = vld [vmem:[%s8188_s2 + $0x8] sm:$0x3] }
   0xf   : > { %6370 = vmatprep.subr.msk.bf16.mxu1 %vm601_vm0, %v6529_v2  ;;  %6371 = vmatprep.subr.msk.bf16.mxu0 %vm601_vm0, %v5575_v3  ;;  %s6378_s25 = smul.u32 216, %s8289_s15  ;;  %vm846_vm3 = vsmask.f32 3328  ;;  %vm847_vm4 = vsmask.f32 7440  ;;  %vm372_vm5 = vcmask 24576  }
  0x10   : > { %vm1591_vm6 = vcmask 1042432   ;;  %vm1592_vm7 = vcmask 1046532   ;;  %v6616_v42 = vsel %vm601_vm0, %v5608_v32, 0  ;;  %vm6644_vm8 = vmor %vm846_vm3, %vm847_vm4  ;;  %vm5334_vm11 = vcmask 60416  }
  0x11   : > { %s6545_s28 = scalar_lea.vmem %s8186_s0, %s6378_s25  ;;  %vm6650_vm9 = vmor %vm1591_vm6, %vm1592_vm7  ;;  %s5873_s11 = sadd.s32 192, %s6378_s25 }
  0x12   : > { %v321_v4 = vld [vmem:[%s6545_s28] sm:$0xf]  ;;  %v322_v5 = vld [vmem:[%s6545_s28 + $0x4] sm:$0xf]  ;;  %v324_v8 = vld [vmem:[%s6545_s28 + $0xc] sm:$0xf]  ;;  %s6913_s14 = scalar_lea.vmem %s8187_s1, %s5873_s11 }
  0x13   : > { %v345_v6 = vld [vmem:[%s6545_s28 + $0x60] sm:$0xf]  ;;  %370 = vst.msk [vmem:[#allocation2] sm:$0xf] %vm369_vm1, %v321_v4  ;;  %371 = vst.msk [vmem:[#allocation2 + $0x4] sm:$0xf] %vm369_vm1, %v322_v5 }
  0x14   : > { %v346_v7 = vld [vmem:[%s6545_s28 + $0x64] sm:$0xf]  ;;  %395 = vst.msk [vmem:[#allocation2 + $0x60] sm:$0xf] %vm369_vm1, %v345_v6  ;;  %v325_v9 = vld [vmem:[%s6545_s28 + $0x10] sm:$0xf] }
  0x15   : > { %396 = vst.msk [vmem:[#allocation2 + $0x64] sm:$0xf] %vm369_vm1, %v346_v7  ;;  %374 = vst.msk [vmem:[#allocation2 + $0xc] sm:$0xf] %vm369_vm1, %v324_v8  ;;  %v348_v10 = vld [vmem:[%s6545_s28 + $0x6c] sm:$0xf] }
  0x16   : > { %375 = vst.msk [vmem:[#allocation2 + $0x10] sm:$0xf] %vm369_vm1, %v325_v9  ;;  %v349_v11 = vld [vmem:[%s6545_s28 + $0x70] sm:$0xf]  ;;  %v327_v12 = vld [vmem:[%s6545_s28 + $0x18] sm:$0xf] }
  0x17   : > { %398 = vst.msk [vmem:[#allocation2 + $0x6c] sm:$0xf] %vm369_vm1, %v348_v10  ;;  %399 = vst.msk [vmem:[#allocation2 + $0x70] sm:$0xf] %vm369_vm1, %v349_v11  ;;  %v328_v13 = vld [vmem:[%s6545_s28 + $0x1c] sm:$0xf] }
  0x18   : > { %377 = vst.msk [vmem:[#allocation2 + $0x18] sm:$0xf] %vm369_vm1, %v327_v12  ;;  %v351_v14 = vld [vmem:[%s6545_s28 + $0x78] sm:$0xf]  ;;  %v352_v15 = vld [vmem:[%s6545_s28 + $0x7c] sm:$0xf] }
  0x19   : > { %378 = vst.msk [vmem:[#allocation2 + $0x1c] sm:$0xf] %vm369_vm1, %v328_v13  ;;  %401 = vst.msk [vmem:[#allocation2 + $0x78] sm:$0xf] %vm369_vm1, %v351_v14  ;;  %v330_v16 = vld [vmem:[%s6545_s28 + $0x24] sm:$0xf] }
  0x1a   : > { %402 = vst.msk [vmem:[#allocation2 + $0x7c] sm:$0xf] %vm369_vm1, %v352_v15  ;;  %v331_v17 = vld [vmem:[%s6545_s28 + $0x28] sm:$0xf]  ;;  %v354_v18 = vld [vmem:[%s6545_s28 + $0x84] sm:$0xf] }
  0x1b   : > { %380 = vst.msk [vmem:[#allocation2 + $0x24] sm:$0xf] %vm369_vm1, %v330_v16  ;;  %381 = vst.msk [vmem:[#allocation2 + $0x28] sm:$0xf] %vm369_vm1, %v331_v17  ;;  %v355_v19 = vld [vmem:[%s6545_s28 + $0x88] sm:$0xf] }
  0x1c   : > { %404 = vst.msk [vmem:[#allocation2 + $0x84] sm:$0xf] %vm369_vm1, %v354_v18  ;;  %v333_v20 = vld [vmem:[%s6545_s28 + $0x30] sm:$0xf]  ;;  %v334_v21 = vld [vmem:[%s6545_s28 + $0x34] sm:$0xf] }
  0x1d   : > { %405 = vst.msk [vmem:[#allocation2 + $0x88] sm:$0xf] %vm369_vm1, %v355_v19  ;;  %383 = vst.msk [vmem:[#allocation2 + $0x30] sm:$0xf] %vm369_vm1, %v333_v20  ;;  %v357_v22 = vld [vmem:[%s6545_s28 + $0x90] sm:$0xf] }
  0x1e   : > { %384 = vst.msk [vmem:[#allocation2 + $0x34] sm:$0xf] %vm369_vm1, %v334_v21  ;;  %v358_v23 = vld [vmem:[%s6545_s28 + $0x94] sm:$0xf]  ;;  %v336_v24 = vld [vmem:[%s6545_s28 + $0x3c] sm:$0xf] }
  0x1f   : > { %407 = vst.msk [vmem:[#allocation2 + $0x90] sm:$0xf] %vm369_vm1, %v357_v22  ;;  %408 = vst.msk [vmem:[#allocation2 + $0x94] sm:$0xf] %vm369_vm1, %v358_v23  ;;  %v337_v25 = vld [vmem:[%s6545_s28 + $0x40] sm:$0xf] }
  0x20   : > { %386 = vst.msk [vmem:[#allocation2 + $0x3c] sm:$0xf] %vm369_vm1, %v336_v24  ;;  %v360_v26 = vld [vmem:[%s6545_s28 + $0x9c] sm:$0xf]  ;;  %v361_v27 = vld [vmem:[%s6545_s28 + $0xa0] sm:$0xf] }
  0x21   : > { %v6405_v28 = vld [vmem:[#allocation2] sm:$0xff]   ;;  %387 = vst.msk [vmem:[#allocation2 + $0x40] sm:$0xf] %vm369_vm1, %v337_v25  ;;  %410 = vst.msk [vmem:[#allocation2 + $0x9c] sm:$0xf] %vm369_vm1, %v360_v26  ;;  %v6407_v30 = vld [vmem:[#allocation2 + $0xc] sm:$0xff]  }
  0x22   : > { %411 = vst.msk [vmem:[#allocation2 + $0xa0] sm:$0xf] %vm369_vm1, %v361_v27  ;;  %v6406_v29 = vld [vmem:[#allocation2 + $0x60] sm:$0xff]   ;;  %6062 = vmatprep.mubr.msk.bf16.mxu0 %vm552_vm2, %v6405_v28  ;;  %v6408_v33 = vld [vmem:[#allocation2 + $0x6c] sm:$0xff]   ;;  %v6409_v36 = vld [vmem:[#allocation2 + $0x18] sm:$0xff]   ;;  %v6656_v10 = vsel %vm601_vm0, %v6606_v35, 0 }
  0x23   : > { %6078 = vmatprep.mubr.msk.bf16.mxu1 %vm552_vm2, %v6406_v29  ;;  %6063 = vmatmul.mubr.msk.bf16.vlgmr.msra.gmra.mxu0 %vm552_vm2, %v6407_v30  ;;  %v6410_v37 = vld [vmem:[#allocation2 + $0x78] sm:$0xff]   ;;  %v6411_v38 = vld [vmem:[#allocation2 + $0x24] sm:$0xff]   ;;  %v340_v44 = vld [vmem:[%s6545_s28 + $0x4c] sm:$0xf]  ;;  %s5874_s25 = sshll.u32 %s8289_s15, 7 }
  0x24   : > { %6079 = vmatmul.mubr.msk.bf16.vlgmr.msra.gmra.mxu1 %vm552_vm2, %v6408_v33  ;;  %6129 = vmatpush3.bf16.msra.mxu0 %v1805_v31  ;;  %v6412_v39 = vld [vmem:[#allocation2 + $0x84] sm:$0xff]   ;;  %390 = vst.msk [vmem:[#allocation2 + $0x4c] sm:$0xf] %vm369_vm1, %v340_v44  ;;  %v364_v46 = vld [vmem:[%s6545_s28 + $0xac] sm:$0xf] }
  0x25   : > { %6095 = vmatpush3.bf16.msra.mxu1 %v1332_v34  ;;  %6066 = vmatprep.mubr.msk.bf16.mxu0 %vm552_vm2, %v6409_v36  ;;  %v6413_v40 = vld [vmem:[#allocation2 + $0x30] sm:$0xff]   ;;  %v339_v43 = vld [vmem:[%s6545_s28 + $0x48] sm:$0xf]  ;;  %v343_v48 = vld [vmem:[%s6545_s28 + $0x58] sm:$0xf] }
  0x26   : > { %6082 = vmatprep.mubr.msk.bf16.mxu1 %vm552_vm2, %v6410_v37  ;;  %6372 = vmatprep.subr.msk.bf16.mxu1 %vm601_vm0, %v5608_v32  ;;  %v6414_v41 = vld [vmem:[#allocation2 + $0x90] sm:$0xff]   ;;  %v363_v45 = vld [vmem:[%s6545_s28 + $0xa8] sm:$0xf]  ;;  %389 = vst.msk [vmem:[#allocation2 + $0x48] sm:$0xf] %vm369_vm1, %v339_v43 }
  0x27   : > { %6373 = vmatprep.subr.msk.bf16.mxu0 %vm601_vm0, %v6606_v35  ;;  %413 = vst.msk [vmem:[#allocation2 + $0xa8] sm:$0xf] %vm369_vm1, %v363_v45  ;;  %v342_v47 = vld [vmem:[%s6545_s28 + $0x54] sm:$0xf]  ;;  %414 = vst.msk [vmem:[#allocation2 + $0xac] sm:$0xf] %vm369_vm1, %v364_v46 }
  0x28   : > { %v6415_v49 = vld [vmem:[#allocation2 + $0x3c] sm:$0xff]   ;;  %392 = vst.msk [vmem:[#allocation2 + $0x54] sm:$0xf] %vm369_vm1, %v342_v47  ;;  %393 = vst.msk [vmem:[#allocation2 + $0x58] sm:$0xf] %vm369_vm1, %v343_v48 }
  0x29   : > { %v366_v50 = vld [vmem:[%s6545_s28 + $0xb4] sm:$0xf]  ;;  %v367_v51 = vld [vmem:[%s6545_s28 + $0xb8] sm:$0xf]  ;;  %v323_v52 = vld [vmem:[%s6545_s28 + $0x8] sm:$0x1] }
  0x2a   : > { %416 = vst.msk [vmem:[#allocation2 + $0xb4] sm:$0xf] %vm369_vm1, %v366_v50  ;;  %417 = vst.msk [vmem:[#allocation2 + $0xb8] sm:$0xf] %vm369_vm1, %v367_v51  ;;  %v798_v53 = vld [vmem:[#allocation2] sm:$0xf] }
  0x2b   : > { %6067 = vmatmul.mubr.msk.bf16.gmra.mxu0 %vm552_vm2, %v6411_v38  ;;  %373 = vst.msk [vmem:[#allocation2 + $0x8] sm:$0x1] %vm372_vm5, %v323_v52  ;;  %v799_v54 = vld [vmem:[#allocation2 + $0x4] sm:$0xf]  ;;  %v1527_v55 = vld [vmem:[#allocation2] sm:$0xe] }
  0x2c   : > { %6083 = vmatmul.mubr.msk.bf16.gmra.mxu1 %vm552_vm2, %v6412_v39  ;;  %6070 = vmatprep.mubr.msk.bf16.mxu0 %vm552_vm2, %v6413_v40  ;;  %v850_v56 = vshrl.u32 %v798_v53, 16  ;;  %v853_v57 = vshll.u32 %v798_v53, 16  ;;  %v859_v58 = vshll.u32 %v799_v54, 16  ;;  %v863_v59 = vshrl.u32 %v799_v54, 16  ;;  %v326_v60 = vld [vmem:[%s6545_s28 + $0x14] sm:$0x1] }
  0x2d   : > { %6086 = vmatprep.mubr.msk.bf16.mxu1 %vm552_vm2, %v6414_v41  ;;  %v6416_v61 = vld [vmem:[#allocation2 + $0x9c] sm:$0xff]   ;;  %v1596_v62 = vrot.slane %v799_v54, 5  ;;  %376 = vst.msk [vmem:[#allocation2 + $0x14] sm:$0x1] %vm372_vm5, %v326_v60  ;;  %v801_v63 = vld [vmem:[#allocation2 + $0xc] sm:$0xf] }
  0x2e   : > { %v802_v0 = vld [vmem:[#allocation2 + $0x10] sm:$0xf]  ;;  %v852_v2 = vrot.slane %v850_v56, 4  ;;  %v855_v3 = vrot.slane %v853_v57, 5  ;;  %v861_v4 = vrot.slane %v859_v58, 5  ;;  %v865_v5 = vrot.slane %v863_v59, 4 }
  0x2f   : > { %v5559_v7 = vrot.slane %v1527_v55, 9  ;;  %v874_v8 = vshrl.u32 %v801_v63, 16  ;;  %v877_v9 = vshll.u32 %v801_v63, 16  ;;  %v329_v11 = vld [vmem:[%s6545_s28 + $0x20] sm:$0x1]  ;;  %v6417_v12 = vld [vmem:[#allocation2 + $0x48] sm:$0xff]  }
  0x30   : > { %v856_v13 = vor.u32 %v855_v3, %v852_v2  ;;  %v866_v14 = vor.u32 %v865_v5, %v861_v4  ;;  %v883_v15 = vshll.u32 %v802_v0, 16  ;;  %379 = vst.msk [vmem:[#allocation2 + $0x20] sm:$0x1] %vm372_vm5, %v329_v11  ;;  %v6418_v16 = vld [vmem:[#allocation2 + $0xa8] sm:$0xff]   ;;  %v1598_v17 = vrot.slane %v1596_v62, 4  ;;  %v6419_v21 = vld [vmem:[#allocation2 + $0x54] sm:$0xff]  }
  0x31   : > { %v1528_v18 = vld [vmem:[#allocation2 + $0xc] sm:$0xe]  ;;  %v876_v20 = vrot.slane %v874_v8, 4  ;;  %v1597_v25 = vsel %vm6650_vm9, %v5559_v7, %v1596_v62  ;;  %v879_v27 = vrot.slane %v877_v9, 5  ;;  %v6420_v29 = vld [vmem:[#allocation2 + $0xb4] sm:$0xff]   ;;  %v887_v32 = vshrl.u32 %v802_v0, 16 }
  0x32   : > { %v857_v19 = vrot.slane %v856_v13, 4  ;;  %v867_v22 = vrot.slane %v866_v14, 4  ;;  %v800_v23 = vld [vmem:[#allocation2 + $0x8] sm:$0x1]  ;;  %v885_v28 = vrot.slane %v883_v15, 5  ;;  %v5560_v35 = vrot.slane %v1528_v18, 9 }
  0x33   : > { %6071 = vmatmul.mubr.msk.bf16.gmra.mxu0 %vm552_vm2, %v6415_v49  ;;  %v869_v30 = vshll.u32 %v800_v23, 16  ;;  %v1599_v31 = vrot.slane %v800_v23, 5  ;;  %v880_v34 = vor.u32 %v879_v27, %v876_v20  ;;  %v1603_v36 = vrot.slane %v802_v0, 5  ;;  %v804_v38 = vld [vmem:[#allocation2 + $0x18] sm:$0xf] }
  0x34   : > { %6087 = vmatmul.mubr.msk.bf16.gmra.mxu1 %vm552_vm2, %v6416_v61  ;;  %6074 = vmatprep.mubr.msk.bf16.mxu0 %vm552_vm2, %v6417_v12  ;;  %v862_v24 = vsel %vm6644_vm8, %v857_v19, %v861_v4  ;;  %v803_v26 = vld [vmem:[#allocation2 + $0x14] sm:$0x1]  ;;  %v889_v41 = vrot.slane %v887_v32, 4  ;;  %v805_v44 = vld [vmem:[#allocation2 + $0x1c] sm:$0xf]  ;;  %v898_v53 = vshrl.u32 %v804_v38, 16 }
  0x35   : > { %6090 = vmatprep.mubr.msk.bf16.mxu1 %vm552_vm2, %v6418_v16  ;;  %v893_v33 = vshll.u32 %v803_v26, 16  ;;  %v1606_v37 = vrot.slane %v803_v26, 5  ;;  %v871_v39 = vrot.slane %v869_v30, 5  ;;  %v1600_v40 = vsel %vm6650_vm9, %v1598_v17, %v1599_v31  ;;  %v332_v49 = vld [vmem:[%s6545_s28 + $0x2c] sm:$0x1] }
  0x36   : > { %v5576_v45 = vcombine.low %v1597_v25, %v1600_v40  ;;  %v881_v46 = vrot.slane %v880_v34, 4  ;;  %v1604_v47 = vsel %vm6650_vm9, %v5560_v35, %v1603_v36  ;;  %v1605_v48 = vrot.slane %v1603_v36, 4  ;;  %v1529_v55 = vld [vmem:[#allocation2 + $0x18] sm:$0xe]  ;;  %382 = vst.msk [vmem:[#allocation2 + $0x2c] sm:$0x1] %vm372_vm5, %v332_v49 }
  0x37   : > { %v895_v43 = vrot.slane %v893_v33, 5  ;;  %v872_v50 = vsel %vm6644_vm8, %v867_v22, %v871_v39  ;;  %v890_v51 = vor.u32 %v889_v41, %v885_v28  ;;  %v806_v52 = vld [vmem:[#allocation2 + $0x20] sm:$0x1]  ;;  %v901_v54 = vshll.u32 %v804_v38, 16  ;;  %v335_v60 = vld [vmem:[%s6545_s28 + $0x38] sm:$0x1] }
  0x38   : > { %v5527_v56 = vcombine.low %v862_v24, %v872_v50  ;;  %v886_v57 = vsel %vm6644_vm8, %v881_v46, %v885_v28  ;;  %v1607_v58 = vsel %vm6650_vm9, %v1605_v48, %v1606_v37  ;;  %v907_v59 = vshll.u32 %v805_v44, 16  ;;  %v807_v2 = vld [vmem:[#allocation2 + $0x24] sm:$0xf]  ;;  %385 = vst.msk [vmem:[#allocation2 + $0x38] sm:$0x1] %vm372_vm5, %v335_v60 }
  0x39   : > { %v891_v61 = vrot.slane %v890_v51, 4  ;;  %v5577_v62 = vcombine.low %v1604_v47, %v1607_v58  ;;  %v900_v63 = vrot.slane %v898_v53, 4  ;;  %v903_v0 = vrot.slane %v901_v54, 5  ;;  %v808_v13 = vld [vmem:[#allocation2 + $0x28] sm:$0xf] }
  0x3a   : > { %v909_v3 = vrot.slane %v907_v59, 5  ;;  %v911_v4 = vshrl.u32 %v805_v44, 16  ;;  %v917_v5 = vshll.u32 %v806_v52, 16  ;;  %v5561_v7 = vrot.slane %v1529_v55, 9  ;;  %v338_v14 = vld [vmem:[%s6545_s28 + $0x44] sm:$0x1] }
  0x3b   : > { %6075 = vmatmul.mubr.msk.bf16.gmra.mxu0 %vm552_vm2, %v6419_v21  ;;  %v896_v8 = vsel %vm6644_vm8, %v891_v61, %v895_v43  ;;  %v904_v9 = vor.u32 %v903_v0, %v900_v63  ;;  %v1610_v11 = vrot.slane %v805_v44, 5  ;;  %v1613_v12 = vrot.slane %v806_v52, 5  ;;  %388 = vst.msk [vmem:[#allocation2 + $0x44] sm:$0x1] %vm372_vm5, %v338_v14  ;;  %v1530_v23 = vld [vmem:[#allocation2 + $0x24] sm:$0xe] }
  0x3c   : > { %6091 = vmatmul.mubr.msk.bf16.gmra.mxu1 %vm552_vm2, %v6420_v29  ;;  %6130 = vmatprep.mubr.msk.bf16.mxu0 %vm552_vm2, %v5576_v45  ;;  %v5528_v15 = vcombine.low %v886_v57, %v896_v8  ;;  %v913_v16 = vrot.slane %v911_v4, 4  ;;  %v919_v17 = vrot.slane %v917_v5, 5  ;;  %v922_v18 = vshrl.u32 %v807_v2, 16  ;;  %v810_v33 = vld [vmem:[#allocation2 + $0x30] sm:$0xf] }
  0x3d   : > { %6096 = vmatprep.mubr.msk.bf16.mxu1 %vm552_vm2, %v5527_v56  ;;  %v905_v19 = vrot.slane %v904_v9, 4  ;;  %v1611_v20 = vsel %vm6650_vm9, %v5561_v7, %v1610_v11  ;;  %v1612_v21 = vrot.slane %v1610_v11, 4  ;;  %v925_v22 = vshll.u32 %v807_v2, 16  ;;  %v809_v25 = vld [vmem:[#allocation2 + $0x2c] sm:$0x1] }
  0x3e   : > { %v914_v24 = vor.u32 %v913_v16, %v909_v3  ;;  %v924_v26 = vrot.slane %v922_v18, 4  ;;  %v931_v27 = vshll.u32 %v808_v13, 16  ;;  %v935_v28 = vshrl.u32 %v808_v13, 16  ;;  %v341_v34 = vld [vmem:[%s6545_s28 + $0x50] sm:$0x1] }
  0x3f   : > { %v910_v29 = vsel %vm6644_vm8, %v905_v19, %v909_v3  ;;  %v1614_v30 = vsel %vm6650_vm9, %v1612_v21, %v1613_v12  ;;  %v927_v31 = vrot.slane %v925_v22, 5  ;;  %v941_v32 = vshll.u32 %v809_v25, 16  ;;  %391 = vst.msk [vmem:[#allocation2 + $0x50] sm:$0x1] %vm372_vm5, %v341_v34  ;;  %v811_v43 = vld [vmem:[#allocation2 + $0x34] sm:$0xf] }
  0x40   : > { %v915_v35 = vrot.slane %v914_v24, 4  ;;  %v5578_v36 = vcombine.low %v1611_v20, %v1614_v30  ;;  %v933_v37 = vrot.slane %v931_v27, 5  ;;  %v937_v38 = vrot.slane %v935_v28, 4  ;;  %v344_v52 = vld [vmem:[%s6545_s28 + $0x5c] sm:$0x1] }
  0x41   : > { %v943_v39 = vrot.slane %v941_v32, 5  ;;  %v5562_v40 = vrot.slane %v1530_v23, 9  ;;  %v1617_v41 = vrot.slane %v808_v13, 5  ;;  %v1620_v46 = vrot.slane %v809_v25, 5  ;;  %v1531_v57 = vld [vmem:[#allocation2 + $0x30] sm:$0xe] }
  0x42   : > { %v920_v44 = vsel %vm6644_vm8, %v915_v35, %v919_v17  ;;  %v938_v45 = vor.u32 %v937_v38, %v933_v37  ;;  %v946_v47 = vshrl.u32 %v810_v33, 16  ;;  %v949_v55 = vshll.u32 %v810_v33, 16  ;;  %394 = vst.msk [vmem:[#allocation2 + $0x5c] sm:$0x1] %vm372_vm5, %v344_v52  ;;  %v814_v4 = vld [vmem:[#allocation2 + $0x40] sm:$0xf] }
  0x43   : > { %6131 = vmatmul.mubr.msk.bf16.vlgmr.msra.gmra.mxu0 %vm552_vm2, %v5577_v62  ;;  %v5529_v48 = vcombine.low %v910_v29, %v920_v44  ;;  %v1618_v50 = vsel %vm6650_vm9, %v5562_v40, %v1617_v41  ;;  %v1619_v51 = vrot.slane %v1617_v41, 4  ;;  %v955_v56 = vshll.u32 %v811_v43, 16  ;;  %v813_v62 = vld [vmem:[#allocation2 + $0x3c] sm:$0xf]  ;;  %v347_v5 = vld [vmem:[%s6545_s28 + $0x68] sm:$0x1] }
  0x44   : > { %6097 = vmatmul.mubr.msk.bf16.vlgmr.msra.gmra.mxu1 %vm552_vm2, %v5528_v15  ;;  %6197 = vmatpush3.bf16.msra.mxu0 %v6656_v10  ;;  %v928_v10 = vor.u32 %v927_v31, %v924_v26  ;;  %v939_v53 = vrot.slane %v938_v45, 4  ;;  %v948_v54 = vrot.slane %v946_v47, 4  ;;  %v959_v60 = vshrl.u32 %v811_v43, 16  ;;  %397 = vst.msk [vmem:[#allocation2 + $0x68] sm:$0x1] %vm372_vm5, %v347_v5 }
  0x45   : > { %6163 = vmatpush3.bf16.msra.mxu1 %v6616_v42  ;;  %6134 = vmatprep.mubr.msk.bf16.mxu0 %vm552_vm2, %v5578_v36  ;;  %v812_v42 = vld [vmem:[#allocation2 + $0x38] sm:$0x1]  ;;  %v1621_v59 = vsel %vm6650_vm9, %v1619_v51, %v1620_v46  ;;  %v951_v2 = vrot.slane %v949_v55, 5  ;;  %v957_v3 = vrot.slane %v955_v56, 5  ;;  %v5563_v11 = vrot.slane %v1531_v57, 9 }
  0x46   : > { %v929_v49 = vrot.slane %v928_v10, 4  ;;  %6100 = vmatprep.mubr.msk.bf16.mxu1 %vm552_vm2, %v5529_v48  ;;  %v965_v61 = vshll.u32 %v812_v42, 16  ;;  %v944_v63 = vsel %vm6644_vm8, %v939_v53, %v943_v39  ;;  %v5579_v0 = vcombine.low %v1618_v50, %v1621_v59  ;;  %v1532_v16 = vld [vmem:[#allocation2 + $0x3c] sm:$0xe]  ;;  %v815_v18 = vld [vmem:[#allocation2 + $0x44] sm:$0x1] }
  0x47   : > { %v961_v8 = vrot.slane %v959_v60, 4  ;;  %v952_v12 = vor.u32 %v951_v2, %v948_v54  ;;  %v1624_v13 = vrot.slane %v811_v43, 5  ;;  %v1627_v14 = vrot.slane %v812_v42, 5  ;;  %v350_v26 = vld [vmem:[%s6545_s28 + $0x74] sm:$0x1] }
  0x48   : > { %v934_v58 = vsel %vm6644_vm8, %v929_v49, %v933_v37  ;;  %v967_v9 = vrot.slane %v965_v61, 5  ;;  %v970_v15 = vshrl.u32 %v813_v62, 16  ;;  %v973_v19 = vshll.u32 %v813_v62, 16  ;;  %400 = vst.msk [vmem:[#allocation2 + $0x74] sm:$0x1] %vm372_vm5, %v350_v26 }
  0x49   : > { %v5530_v7 = vcombine.low %v934_v58, %v944_v63  ;;  %v962_v17 = vor.u32 %v961_v8, %v957_v3  ;;  %v979_v20 = vshll.u32 %v814_v4, 16  ;;  %v983_v21 = vshrl.u32 %v814_v4, 16  ;;  %v816_v35 = vld [vmem:[#allocation2 + $0x48] sm:$0xf]  ;;  %v817_v39 = vld [vmem:[#allocation2 + $0x4c] sm:$0xf] }
  0x4a   : > { %v953_v22 = vrot.slane %v952_v12, 4  ;;  %v1625_v23 = vsel %vm6650_vm9, %v5563_v11, %v1624_v13  ;;  %v1626_v24 = vrot.slane %v1624_v13, 4  ;;  %v972_v25 = vrot.slane %v970_v15, 4  ;;  %v353_v40 = vld [vmem:[%s6545_s28 + $0x80] sm:$0x1] }
  0x4b   : > { %6135 = vmatmul.mubr.msk.bf16.gmra.mxu0 %vm552_vm2, %v5579_v0  ;;  %v963_v27 = vrot.slane %v962_v17, 4  ;;  %v975_v28 = vrot.slane %v973_v19, 5  ;;  %v981_v29 = vrot.slane %v979_v20, 5  ;;  %v985_v30 = vrot.slane %v983_v21, 4  ;;  %403 = vst.msk [vmem:[#allocation2 + $0x80] sm:$0x1] %vm372_vm5, %v353_v40 }
  0x4c   : > { %6101 = vmatmul.mubr.msk.bf16.gmra.mxu1 %vm552_vm2, %v5530_v7  ;;  %v958_v31 = vsel %vm6644_vm8, %v953_v22, %v957_v3  ;;  %v1628_v32 = vsel %vm6650_vm9, %v1626_v24, %v1627_v14  ;;  %v989_v33 = vshll.u32 %v815_v18, 16  ;;  %v5564_v34 = vrot.slane %v1532_v16, 9  ;;  %v1533_v49 = vld [vmem:[#allocation2 + $0x48] sm:$0xe]  ;;  %v818_v52 = vld [vmem:[#allocation2 + $0x50] sm:$0x1] }
  0x4d   : > { %v968_v36 = vsel %vm6644_vm8, %v963_v27, %v967_v9  ;;  %v5580_v37 = vcombine.low %v1625_v23, %v1628_v32  ;;  %v976_v38 = vor.u32 %v975_v28, %v972_v25  ;;  %v986_v10 = vor.u32 %v985_v30, %v981_v29  ;;  %v819_v59 = vld [vmem:[#allocation2 + $0x54] sm:$0xf]  ;;  %v356_v60 = vld [vmem:[%s6545_s28 + $0x8c] sm:$0x1]  ;;  %v820_v2 = vld [vmem:[#allocation2 + $0x58] sm:$0xf] }
  0x4e   : > { %v5531_v41 = vcombine.low %v958_v31, %v968_v36  ;;  %v991_v43 = vrot.slane %v989_v33, 5  ;;  %v1631_v44 = vrot.slane %v814_v4, 5  ;;  %v1634_v45 = vrot.slane %v815_v18, 5  ;;  %406 = vst.msk [vmem:[#allocation2 + $0x8c] sm:$0x1] %vm372_vm5, %v356_v60 }
  0x4f   : > { %6138 = vmatprep.mubr.msk.bf16.mxu0 %vm552_vm2, %v5580_v37  ;;  %v977_v46 = vrot.slane %v976_v38, 4  ;;  %v987_v42 = vrot.slane %v986_v10, 4  ;;  %v994_v47 = vshrl.u32 %v816_v35, 16  ;;  %v997_v48 = vshll.u32 %v816_v35, 16  ;;  %v359_v8 = vld [vmem:[%s6545_s28 + $0x98] sm:$0x1] }
  0x50   : > { %6104 = vmatprep.mubr.msk.bf16.mxu1 %vm552_vm2, %v5531_v41  ;;  %v1632_v50 = vsel %vm6650_vm9, %v5564_v34, %v1631_v44  ;;  %v1633_v51 = vrot.slane %v1631_v44, 4  ;;  %v1003_v53 = vshll.u32 %v817_v39, 16  ;;  %v1007_v54 = vshrl.u32 %v817_v39, 16  ;;  %v1534_v14 = vld [vmem:[#allocation2 + $0x54] sm:$0xe] }
  0x51   : > { %v982_v55 = vsel %vm6644_vm8, %v977_v46, %v981_v29  ;;  %v992_v56 = vsel %vm6644_vm8, %v987_v42, %v991_v43  ;;  %v996_v57 = vrot.slane %v994_v47, 4  ;;  %v999_v58 = vrot.slane %v997_v48, 5  ;;  %409 = vst.msk [vmem:[#allocation2 + $0x98] sm:$0x1] %vm372_vm5, %v359_v8  ;;  %v821_v17 = vld [vmem:[#allocation2 + $0x5c] sm:$0x1] }
  0x52   : > { %v5532_v61 = vcombine.low %v982_v55, %v992_v56  ;;  %v1635_v62 = vsel %vm6650_vm9, %v1633_v51, %v1634_v45  ;;  %v1005_v63 = vrot.slane %v1003_v53, 5  ;;  %v1009_v0 = vrot.slane %v1007_v54, 4  ;;  %v822_v28 = vld [vmem:[#allocation2 + $0x60] sm:$0xf]  ;;  %v823_v33 = vld [vmem:[#allocation2 + $0x64] sm:$0xf] }
  0x53   : > { %v5581_v3 = vcombine.low %v1632_v50, %v1635_v62  ;;  %v1000_v4 = vor.u32 %v999_v58, %v996_v57  ;;  %v1013_v5 = vshll.u32 %v818_v52, 16  ;;  %v5565_v7 = vrot.slane %v1533_v49, 9  ;;  %v362_v34 = vld [vmem:[%s6545_s28 + $0xa4] sm:$0x1]  ;;  %v1535_v43 = vld [vmem:[#allocation2 + $0x60] sm:$0xe] }
  0x54   : > { %6105 = vmatmul.mubr.msk.bf16.gmra.mxu1 %vm552_vm2, %v5532_v61  ;;  %v1010_v9 = vor.u32 %v1009_v0, %v1005_v63  ;;  %v1638_v11 = vrot.slane %v817_v39, 5  ;;  %v1641_v12 = vrot.slane %v818_v52, 5  ;;  %v1018_v13 = vshrl.u32 %v819_v59, 16  ;;  %412 = vst.msk [vmem:[#allocation2 + $0xa4] sm:$0x1] %vm372_vm5, %v362_v34 }
  0x55   : > { %6139 = vmatmul.mubr.msk.bf16.gmra.mxu0 %vm552_vm2, %v5581_v3  ;;  %v1001_v15 = vrot.slane %v1000_v4, 4  ;;  %v1015_v16 = vrot.slane %v1013_v5, 5  ;;  %v1021_v18 = vshll.u32 %v819_v59, 16  ;;  %v1027_v19 = vshll.u32 %v820_v2, 16  ;;  %v824_v46 = vld [vmem:[#allocation2 + $0x68] sm:$0x1] }
  0x56   : > { %v1011_v20 = vrot.slane %v1010_v9, 4  ;;  %v1639_v21 = vsel %vm6650_vm9, %v5565_v7, %v1638_v11  ;;  %v1640_v22 = vrot.slane %v1638_v11, 4  ;;  %v1020_v23 = vrot.slane %v1018_v13, 4  ;;  %v365_v52 = vld [vmem:[%s6545_s28 + $0xb0] sm:$0x1] }
  0x57   : > { %v1006_v24 = vsel %vm6644_vm8, %v1001_v15, %v1005_v63  ;;  %v1023_v25 = vrot.slane %v1021_v18, 5  ;;  %v1029_v26 = vrot.slane %v1027_v19, 5  ;;  %v1031_v27 = vshrl.u32 %v820_v2, 16  ;;  %415 = vst.msk [vmem:[#allocation2 + $0xb0] sm:$0x1] %vm372_vm5, %v365_v52 }
  0x58   : > { %v1016_v29 = vsel %vm6644_vm8, %v1011_v20, %v1015_v16  ;;  %v1642_v30 = vsel %vm6650_vm9, %v1640_v22, %v1641_v12  ;;  %v1037_v31 = vshll.u32 %v821_v17, 16  ;;  %v5566_v32 = vrot.slane %v1534_v14, 9  ;;  %v825_v61 = vld [vmem:[#allocation2 + $0x6c] sm:$0xf]  ;;  %v826_v3 = vld [vmem:[#allocation2 + $0x70] sm:$0xf] }
  0x59   : > { %v5533_v35 = vcombine.low %v1006_v24, %v1016_v29  ;;  %v5582_v36 = vcombine.low %v1639_v21, %v1642_v30  ;;  %v1024_v37 = vor.u32 %v1023_v25, %v1020_v23  ;;  %v1033_v38 = vrot.slane %v1031_v27, 4  ;;  %v368_v4 = vld [vmem:[%s6545_s28 + $0xbc] sm:$0x1]  ;;  %v827_v11 = vld [vmem:[#allocation2 + $0x74] sm:$0x1]  ;;  %s8061_s28 = scalar_lea.vmem %s8190_s4, %s5874_s25 }
  0x5a   : > { %v1039_v10 = vrot.slane %v1037_v31, 5  ;;  %v1645_v39 = vrot.slane %v820_v2, 5  ;;  %v1648_v40 = vrot.slane %v821_v17, 5  ;;  %v1042_v41 = vshrl.u32 %v822_v28, 16  ;;  %418 = vst.msk [vmem:[#allocation2 + $0xbc] sm:$0x1] %vm372_vm5, %v368_v4 }
  0x5b   : > { %6108 = vmatprep.mubr.msk.bf16.mxu1 %vm552_vm2, %v5533_v35  ;;  %6142 = vmatprep.mubr.msk.bf16.mxu0 %vm552_vm2, %v5582_v36  ;;  %v1025_v44 = vrot.slane %v1024_v37, 4  ;;  %v1034_v45 = vor.u32 %v1033_v38, %v1029_v26  ;;  %v1045_v42 = vshll.u32 %v822_v28, 16  ;;  %v1051_v47 = vshll.u32 %v823_v33, 16  ;;  %v1536_v16 = vld [vmem:[#allocation2 + $0x6c] sm:$0xe] }
  0x5c   : > { %v1646_v48 = vsel %vm6650_vm9, %v5566_v32, %v1645_v39  ;;  %v1647_v49 = vrot.slane %v1645_v39, 4  ;;  %v1044_v50 = vrot.slane %v1042_v41, 4  ;;  %v1055_v51 = vshrl.u32 %v823_v33, 16  ;;  %v828_v21 = vld [vmem:[#allocation2 + $0x78] sm:$0xf] }
  0x5d   : > { %v1030_v53 = vsel %vm6644_vm8, %v1025_v44, %v1029_v26  ;;  %v1035_v54 = vrot.slane %v1034_v45, 4  ;;  %v1047_v55 = vrot.slane %v1045_v42, 5  ;;  %v1053_v56 = vrot.slane %v1051_v47, 5  ;;  %v829_v30 = vld [vmem:[#allocation2 + $0x7c] sm:$0xf] }
  0x5e   : > { %v1649_v57 = vsel %vm6650_vm9, %v1647_v49, %v1648_v40  ;;  %v1057_v58 = vrot.slane %v1055_v51, 4  ;;  %v1061_v59 = vshll.u32 %v824_v46, 16  ;;  %v5567_v60 = vrot.slane %v1535_v43, 9  ;;  %v830_v40 = vld [vmem:[#allocation2 + $0x80] sm:$0x1] }
  0x5f   : > { %v1040_v62 = vsel %vm6644_vm8, %v1035_v54, %v1039_v10  ;;  %v5583_v63 = vcombine.low %v1646_v48, %v1649_v57  ;;  %v1048_v0 = vor.u32 %v1047_v55, %v1044_v50  ;;  %v1652_v2 = vrot.slane %v823_v33, 5  ;;  %v1537_v10 = vld [vmem:[#allocation2 + $0x78] sm:$0xe]  ;;  %v6789_v48 = vld [vmem:[%s8188_s2 + $0xa] sm:$0x3] }
  0x60   : > { %v5534_v5 = vcombine.low %v1030_v53, %v1040_v62  ;;  %v1058_v7 = vor.u32 %v1057_v58, %v1053_v56  ;;  %v1063_v8 = vrot.slane %v1061_v59, 5  ;;  %v1655_v9 = vrot.slane %v824_v46, 5  ;;  %6374 = vmatprep.subr.msk.bf16.mxu1 %vm601_vm0, %v6789_v48  ;;  %v831_v57 = vld [vmem:[#allocation2 + $0x84] sm:$0xf]  ;;  %v832_v62 = vld [vmem:[#allocation2 + $0x88] sm:$0xf] }
  0x61   : > { %6143 = vmatmul.mubr.msk.bf16.gmra.mxu0 %vm552_vm2, %v5583_v63  ;;  %v1049_v12 = vrot.slane %v1048_v0, 4  ;;  %v1653_v13 = vsel %vm6650_vm9, %v5567_v60, %v1652_v2  ;;  %v1654_v14 = vrot.slane %v1652_v2, 4  ;;  %v1066_v15 = vshrl.u32 %v825_v61, 16  ;;  %v6802_v63 = vld [vmem:[%s8188_s2 + $0xc] sm:$0x3] }
  0x62   : > { %6109 = vmatmul.mubr.msk.bf16.gmra.mxu1 %vm552_vm2, %v5534_v5  ;;  %v1059_v17 = vrot.slane %v1058_v7, 4  ;;  %v1069_v18 = vshll.u32 %v825_v61, 16  ;;  %v1075_v19 = vshll.u32 %v826_v3, 16  ;;  %v1079_v20 = vshrl.u32 %v826_v3, 16  ;;  %v1538_v5 = vld [vmem:[#allocation2 + $0x84] sm:$0xe]  ;;  %6375 = vmatprep.subr.msk.bf16.mxu0 %vm601_vm0, %v6802_v63 }
  0x63   : > { %v1054_v22 = vsel %vm6644_vm8, %v1049_v12, %v1053_v56  ;;  %v1656_v23 = vsel %vm6650_vm9, %v1654_v14, %v1655_v9  ;;  %v1068_v24 = vrot.slane %v1066_v15, 4  ;;  %v1085_v25 = vshll.u32 %v827_v11, 16  ;;  %v833_v14 = vld [vmem:[#allocation2 + $0x8c] sm:$0x1] }
  0x64   : > { %v1064_v26 = vsel %vm6644_vm8, %v1059_v17, %v1063_v8  ;;  %v5584_v27 = vcombine.low %v1653_v13, %v1656_v23  ;;  %v1071_v28 = vrot.slane %v1069_v18, 5  ;;  %v1077_v29 = vrot.slane %v1075_v19, 5 }
  0x65   : > { %v5535_v31 = vcombine.low %v1054_v22, %v1064_v26  ;;  %v1081_v32 = vrot.slane %v1079_v20, 4  ;;  %v1087_v33 = vrot.slane %v1085_v25, 5  ;;  %v5568_v34 = vrot.slane %v1536_v16, 9  ;;  %v835_v22 = vld [vmem:[#allocation2 + $0x94] sm:$0xf] }
  0x66   : > { %6146 = vmatprep.mubr.msk.bf16.mxu0 %vm552_vm2, %v5584_v27  ;;  %v1072_v35 = vor.u32 %v1071_v28, %v1068_v24  ;;  %v1659_v36 = vrot.slane %v826_v3, 5  ;;  %v1662_v37 = vrot.slane %v827_v11, 5  ;;  %v1090_v38 = vshrl.u32 %v828_v21, 16 }
  0x67   : > { %6112 = vmatprep.mubr.msk.bf16.mxu1 %vm552_vm2, %v5535_v31  ;;  %v1082_v39 = vor.u32 %v1081_v32, %v1077_v29  ;;  %v1093_v41 = vshll.u32 %v828_v21, 16  ;;  %v1099_v43 = vshll.u32 %v829_v30, 16  ;;  %v1103_v44 = vshrl.u32 %v829_v30, 16  ;;  %v834_v21 = vld [vmem:[#allocation2 + $0x90] sm:$0xf] }
  0x68   : > { %v1073_v45 = vrot.slane %v1072_v35, 4  ;;  %v1660_v46 = vsel %vm6650_vm9, %v5568_v34, %v1659_v36  ;;  %v1661_v42 = vrot.slane %v1659_v36, 4  ;;  %v1092_v47 = vrot.slane %v1090_v38, 4  ;;  %v1539_v31 = vld [vmem:[#allocation2 + $0x90] sm:$0xe] }
  0x69   : > { %v1083_v49 = vrot.slane %v1082_v39, 4  ;;  %v1095_v50 = vrot.slane %v1093_v41, 5  ;;  %v1101_v51 = vrot.slane %v1099_v43, 5  ;;  %v1105_v52 = vrot.slane %v1103_v44, 4  ;;  %v836_v35 = vld [vmem:[#allocation2 + $0x98] sm:$0x1] }
  0x6a   : > { %v1078_v53 = vsel %vm6644_vm8, %v1073_v45, %v1077_v29  ;;  %v1663_v54 = vsel %vm6650_vm9, %v1661_v42, %v1662_v37  ;;  %v1109_v55 = vshll.u32 %v830_v40, 16  ;;  %v5569_v56 = vrot.slane %v1537_v10, 9 }
  0x6b   : > { %v1088_v58 = vsel %vm6644_vm8, %v1083_v49, %v1087_v33  ;;  %v5585_v59 = vcombine.low %v1660_v46, %v1663_v54  ;;  %v1096_v60 = vor.u32 %v1095_v50, %v1092_v47  ;;  %v1106_v61 = vor.u32 %v1105_v52, %v1101_v51  ;;  %v837_v49 = vld [vmem:[#allocation2 + $0x9c] sm:$0xf]  ;;  %v838_v54 = vld [vmem:[#allocation2 + $0xa0] sm:$0xf] }
  0x6c   : > { %v5536_v0 = vcombine.low %v1078_v53, %v1088_v58  ;;  %v1111_v2 = vrot.slane %v1109_v55, 5  ;;  %v1666_v3 = vrot.slane %v829_v30, 5  ;;  %v1669_v4 = vrot.slane %v830_v40, 5 }
  0x6d   : > { %6147 = vmatmul.mubr.msk.bf16.gmra.mxu0 %vm552_vm2, %v5585_v59  ;;  %v1097_v7 = vrot.slane %v1096_v60, 4  ;;  %v1107_v8 = vrot.slane %v1106_v61, 4  ;;  %v1114_v9 = vshrl.u32 %v831_v57, 16  ;;  %v1117_v11 = vshll.u32 %v831_v57, 16 }
  0x6e   : > { %6113 = vmatmul.mubr.msk.bf16.gmra.mxu1 %vm552_vm2, %v5536_v0  ;;  %v1667_v12 = vsel %vm6650_vm9, %v5569_v56, %v1666_v3  ;;  %v1668_v13 = vrot.slane %v1666_v3, 4  ;;  %v1123_v15 = vshll.u32 %v832_v62, 16  ;;  %v1127_v16 = vshrl.u32 %v832_v62, 16  ;;  %v1540_v0 = vld [vmem:[#allocation2 + $0x9c] sm:$0xe] }
  0x6f   : > { %v1102_v17 = vsel %vm6644_vm8, %v1097_v7, %v1101_v51  ;;  %v1112_v18 = vsel %vm6644_vm8, %v1107_v8, %v1111_v2  ;;  %v1116_v19 = vrot.slane %v1114_v9, 4  ;;  %v1119_v20 = vrot.slane %v1117_v11, 5 }
  0x70   : > { %v5537_v23 = vcombine.low %v1102_v17, %v1112_v18  ;;  %v1670_v24 = vsel %vm6650_vm9, %v1668_v13, %v1669_v4  ;;  %v1125_v25 = vrot.slane %v1123_v15, 5  ;;  %v1129_v26 = vrot.slane %v1127_v16, 4  ;;  %v839_v4 = vld [vmem:[#allocation2 + $0xa4] sm:$0x1]  ;;  %v840_v13 = vld [vmem:[#allocation2 + $0xa8] sm:$0xf] }
  0x71   : > { %v5586_v27 = vcombine.low %v1667_v12, %v1670_v24  ;;  %v1120_v28 = vor.u32 %v1119_v20, %v1116_v19  ;;  %v1133_v29 = vshll.u32 %v833_v14, 16  ;;  %v5570_v30 = vrot.slane %v1538_v5, 9 }
  0x72   : > { %6116 = vmatprep.mubr.msk.bf16.mxu1 %vm552_vm2, %v5537_v23  ;;  %v1130_v32 = vor.u32 %v1129_v26, %v1125_v25  ;;  %v1673_v33 = vrot.slane %v832_v62, 5  ;;  %v1676_v34 = vrot.slane %v833_v14, 5  ;;  %v1138_v36 = vshrl.u32 %v834_v21, 16  ;;  %v841_v26 = vld [vmem:[#allocation2 + $0xac] sm:$0xf] }
  0x73   : > { %6150 = vmatprep.mubr.msk.bf16.mxu0 %vm552_vm2, %v5586_v27  ;;  %v1121_v37 = vrot.slane %v1120_v28, 4  ;;  %v1135_v38 = vrot.slane %v1133_v29, 5  ;;  %v1141_v10 = vshll.u32 %v834_v21, 16  ;;  %v1147_v39 = vshll.u32 %v835_v22, 16 }
  0x74   : > { %v1131_v40 = vrot.slane %v1130_v32, 4  ;;  %v1674_v41 = vsel %vm6650_vm9, %v5570_v30, %v1673_v33  ;;  %v1675_v43 = vrot.slane %v1673_v33, 4  ;;  %v1140_v44 = vrot.slane %v1138_v36, 4 }
  0x75   : > { %v1126_v45 = vsel %vm6644_vm8, %v1121_v37, %v1125_v25  ;;  %v1143_v46 = vrot.slane %v1141_v10, 5  ;;  %v1149_v42 = vrot.slane %v1147_v39, 5  ;;  %v1151_v47 = vshrl.u32 %v835_v22, 16  ;;  %v1541_v39 = vld [vmem:[#allocation2 + $0xa8] sm:$0xe] }
  0x76   : > { %v1136_v50 = vsel %vm6644_vm8, %v1131_v40, %v1135_v38  ;;  %v1677_v51 = vsel %vm6650_vm9, %v1675_v43, %v1676_v34  ;;  %v1157_v52 = vshll.u32 %v836_v35, 16  ;;  %v5571_v53 = vrot.slane %v1539_v31, 9  ;;  %v842_v31 = vld [vmem:[#allocation2 + $0xb0] sm:$0x1] }
  0x77   : > { %v5538_v55 = vcombine.low %v1126_v45, %v1136_v50  ;;  %v5587_v56 = vcombine.low %v1674_v41, %v1677_v51  ;;  %v1144_v57 = vor.u32 %v1143_v46, %v1140_v44  ;;  %v1153_v58 = vrot.slane %v1151_v47, 4  ;;  %v843_v45 = vld [vmem:[#allocation2 + $0xb4] sm:$0xf]  ;;  %v844_v46 = vld [vmem:[#allocation2 + $0xb8] sm:$0xf] }
  0x78   : > { %v1159_v59 = vrot.slane %v1157_v52, 5  ;;  %v1680_v60 = vrot.slane %v835_v22, 5  ;;  %v1683_v61 = vrot.slane %v836_v35, 5  ;;  %v1162_v62 = vshrl.u32 %v837_v49, 16 }
  0x79   : > { %6117 = vmatmul.mubr.msk.bf16.gmra.mxu1 %vm552_vm2, %v5538_v55  ;;  %6151 = vmatmul.mubr.msk.bf16.gmra.mxu0 %vm552_vm2, %v5587_v56  ;;  %v1145_v2 = vrot.slane %v1144_v57, 4  ;;  %v1154_v3 = vor.u32 %v1153_v58, %v1149_v42  ;;  %v1165_v5 = vshll.u32 %v837_v49, 16  ;;  %v1171_v7 = vshll.u32 %v838_v54, 16 }
  0x7a   : > { %v1681_v8 = vsel %vm6650_vm9, %v5571_v53, %v1680_v60  ;;  %v1682_v9 = vrot.slane %v1680_v60, 4  ;;  %v1164_v11 = vrot.slane %v1162_v62, 4  ;;  %v1175_v12 = vshrl.u32 %v838_v54, 16 }
  0x7b   : > { %v1150_v14 = vsel %vm6644_vm8, %v1145_v2, %v1149_v42  ;;  %v1155_v15 = vrot.slane %v1154_v3, 4  ;;  %v1167_v16 = vrot.slane %v1165_v5, 5  ;;  %v1173_v17 = vrot.slane %v1171_v7, 5 }
  0x7c   : > { %v1684_v18 = vsel %vm6650_vm9, %v1682_v9, %v1683_v61  ;;  %v1177_v19 = vrot.slane %v1175_v12, 4  ;;  %v1181_v20 = vshll.u32 %v839_v4, 16  ;;  %v5572_v21 = vrot.slane %v1540_v0, 9  ;;  %v845_v61 = vld [vmem:[#allocation2 + $0xbc] sm:$0x1] }
  0x7d   : > { %v1160_v22 = vsel %vm6644_vm8, %v1155_v15, %v1159_v59  ;;  %v5588_v23 = vcombine.low %v1681_v8, %v1684_v18  ;;  %v1168_v24 = vor.u32 %v1167_v16, %v1164_v11  ;;  %v1687_v25 = vrot.slane %v838_v54, 5  ;;  %v1542_v59 = vld [vmem:[#allocation2 + $0xb4] sm:$0xe] }
  0x7e   : > { %v5539_v27 = vcombine.low %v1150_v14, %v1160_v22  ;;  %v1178_v28 = vor.u32 %v1177_v19, %v1173_v17  ;;  %v1183_v29 = vrot.slane %v1181_v20, 5  ;;  %v1690_v30 = vrot.slane %v839_v4, 5  ;;  %v6856_v22 = vld [vmem:[#allocation2 + $0x10] sm:$0xf] }
  0x7f   : > { %6154 = vmatprep.mubr.msk.bf16.mxu0 %vm552_vm2, %v5588_v23  ;;  %v1169_v32 = vrot.slane %v1168_v24, 4  ;;  %v1688_v33 = vsel %vm6650_vm9, %v5572_v21, %v1687_v25  ;;  %v1689_v34 = vrot.slane %v1687_v25, 4  ;;  %v1186_v35 = vshrl.u32 %v840_v13, 16 }
  0x80   : > { %6120 = vmatprep.mubr.msk.bf16.mxu1 %vm552_vm2, %v5539_v27  ;;  %v1179_v36 = vrot.slane %v1178_v28, 4  ;;  %v1189_v37 = vshll.u32 %v840_v13, 16  ;;  %v1195_v38 = vshll.u32 %v841_v26, 16  ;;  %v1199_v10 = vshrl.u32 %v841_v26, 16  ;;  %v6858_v27 = vld [vmem:[#allocation2 + $0x14] sm:$0x1] }
  0x81   : > { %v1174_v40 = vsel %vm6644_vm8, %v1169_v32, %v1173_v17  ;;  %v1691_v41 = vsel %vm6650_vm9, %v1689_v34, %v1690_v30  ;;  %v1188_v43 = vrot.slane %v1186_v35, 4  ;;  %v1205_v44 = vshll.u32 %v842_v31, 16  ;;  %v2359_v17 = vld [vmem:[#allocation2 + $0xc] sm:$0xf]  ;;  %v2362_v32 = vld [vmem:[#allocation2 + $0x18] sm:$0xf] }
  0x82   : > { %v1184_v42 = vsel %vm6644_vm8, %v1179_v36, %v1183_v29  ;;  %v5589_v47 = vcombine.low %v1688_v33, %v1691_v41  ;;  %v1191_v49 = vrot.slane %v1189_v37, 5  ;;  %v1197_v50 = vrot.slane %v1195_v38, 5  ;;  %v6421_v35 = vld [vmem:[#allocation2 + $0xc] sm:$0xff]   ;;  %v6866_v38 = vld [vmem:[#allocation2 + $0x1c] sm:$0xf] }
  0x83   : > { %v5540_v51 = vcombine.low %v1174_v40, %v1184_v42  ;;  %v1201_v52 = vrot.slane %v1199_v10, 4  ;;  %v1207_v53 = vrot.slane %v1205_v44, 5  ;;  %v5573_v54 = vrot.slane %v1541_v39, 9  ;;  %v6874_v42 = vld [vmem:[#allocation2 + $0x20] sm:$0x1] }
  0x84   : > { %6155 = vmatmul.mubr.msk.bf16.gmra.mxu0 %vm552_vm2, %v5589_v47  ;;  %v1192_v55 = vor.u32 %v1191_v49, %v1188_v43  ;;  %v1694_v56 = vrot.slane %v841_v26, 5  ;;  %v1697_v57 = vrot.slane %v842_v31, 5  ;;  %v1210_v58 = vshrl.u32 %v843_v45, 16 }
  0x85   : > { %6121 = vmatmul.mubr.msk.bf16.gmra.mxu1 %vm552_vm2, %v5540_v51  ;;  %v1202_v60 = vor.u32 %v1201_v52, %v1197_v50  ;;  %v1213_v62 = vshll.u32 %v843_v45, 16  ;;  %v1219_v0 = vshll.u32 %v844_v46, 16  ;;  %v1223_v2 = vshrl.u32 %v844_v46, 16  ;;  %v2365_v52 = vld [vmem:[#allocation2 + $0x24] sm:$0xf] }
  0x86   : > { %v1193_v3 = vrot.slane %v1192_v55, 4  ;;  %v1695_v4 = vsel %vm6650_vm9, %v5573_v54, %v1694_v56  ;;  %v1696_v5 = vrot.slane %v1694_v56, 4  ;;  %v1212_v7 = vrot.slane %v1210_v58, 4 }
  0x87   : > { %v1203_v8 = vrot.slane %v1202_v60, 4  ;;  %v1215_v9 = vrot.slane %v1213_v62, 5  ;;  %v1221_v11 = vrot.slane %v1219_v0, 5  ;;  %v1225_v12 = vrot.slane %v1223_v2, 4 }
  0x88   : > { %v1198_v13 = vsel %vm6644_vm8, %v1193_v3, %v1197_v50  ;;  %v1698_v14 = vsel %vm6650_vm9, %v1696_v5, %v1697_v57  ;;  %v1229_v15 = vshll.u32 %v845_v61, 16  ;;  %v5574_v16 = vrot.slane %v1542_v59, 9 }
  0x89   : > { %v1208_v18 = vsel %vm6644_vm8, %v1203_v8, %v1207_v53  ;;  %v5590_v19 = vcombine.low %v1695_v4, %v1698_v14  ;;  %v1216_v20 = vor.u32 %v1215_v9, %v1212_v7  ;;  %v1226_v21 = vor.u32 %v1225_v12, %v1221_v11  ;;  %v6885_v4 = vld [vmem:[#allocation2 + $0x2c] sm:$0x1]  ;;  %v6422_v7 = vld [vmem:[#allocation2 + $0x18] sm:$0xff]   ;;  %v2368_v12 = vld [vmem:[#allocation2 + $0x30] sm:$0xf] }
  0x8a   : > { %v5541_v23 = vcombine.low %v1198_v13, %v1208_v18  ;;  %v1231_v24 = vrot.slane %v1229_v15, 5  ;;  %v1701_v25 = vrot.slane %v844_v46, 5  ;;  %v1704_v26 = vrot.slane %v845_v61, 5  ;;  %v6883_v61 = vld [vmem:[#allocation2 + $0x28] sm:$0xf] }
  0x8b   : > { %6158 = vmatprep.mubr.msk.bf16.mxu0 %vm552_vm2, %v5590_v19  ;;  %v1217_v28 = vrot.slane %v1216_v20, 4  ;;  %v1227_v29 = vrot.slane %v1226_v21, 4  ;;  %v2408_v30 = vshrl.u32 %v2359_v17, 16  ;;  %v2411_v31 = vshll.u32 %v2359_v17, 16 }
  0x8c   : > { %6124 = vmatprep.mubr.msk.bf16.mxu1 %vm552_vm2, %v5541_v23  ;;  %v1702_v33 = vsel %vm6650_vm9, %v5574_v16, %v1701_v25  ;;  %v1703_v34 = vrot.slane %v1701_v25, 4  ;;  %v2417_v36 = vshll.u32 %v6856_v22, 16  ;;  %v2421_v37 = vshrl.u32 %v6856_v22, 16  ;;  %v6423_v16 = vld [vmem:[#allocation2 + $0x24] sm:$0xff]   ;;  %v6897_v23 = vld [vmem:[#allocation2 + $0x34] sm:$0xf] }
  0x8d   : > { %v1222_v10 = vsel %vm6644_vm8, %v1217_v28, %v1221_v11  ;;  %v1232_v39 = vsel %vm6644_vm8, %v1227_v29, %v1231_v24  ;;  %v2410_v40 = vrot.slane %v2408_v30, 4  ;;  %v2413_v41 = vrot.slane %v2411_v31, 5 }
  0x8e   : > { %v5542_v43 = vcombine.low %v1222_v10, %v1232_v39  ;;  %v1705_v44 = vsel %vm6650_vm9, %v1703_v34, %v1704_v26  ;;  %v2419_v45 = vrot.slane %v2417_v36, 5  ;;  %v2423_v46 = vrot.slane %v2421_v37, 4  ;;  %v6902_v26 = vld [vmem:[#allocation2 + $0x38] sm:$0x1] }
  0x8f   : > { %v5591_v47 = vcombine.low %v1702_v33, %v1705_v44  ;;  %v2414_v49 = vor.u32 %v2413_v41, %v2410_v40  ;;  %v2427_v50 = vshll.u32 %v6858_v27, 16  ;;  %v2432_v51 = vshrl.u32 %v2362_v32, 16  ;;  %v6916_v41 = vld [vmem:[#allocation2 + $0x40] sm:$0xf] }
  0x90   : > { %6125 = vmatmul.mubr.msk.bf16.gmra.mxu1 %vm552_vm2, %v5542_v43  ;;  %v2424_v53 = vor.u32 %v2423_v46, %v2419_v45  ;;  %v2435_v54 = vshll.u32 %v2362_v32, 16  ;;  %v2441_v55 = vshll.u32 %v6866_v38, 16  ;;  %v2445_v56 = vshrl.u32 %v6866_v38, 16  ;;  %v2371_v32 = vld [vmem:[#allocation2 + $0x3c] sm:$0xf]  ;;  %v6424_v43 = vld [vmem:[#allocation2 + $0x30] sm:$0xff]  }
  0x91   : > { %6159 = vmatmul.mubr.msk.bf16.gmra.mxu0 %vm552_vm2, %v5591_v47  ;;  %6164 = vmatprep.mubr.msk.bf16.mxu1 %vm552_vm2, %v6421_v35  ;;  %v2415_v57 = vrot.slane %v2414_v49, 4  ;;  %v2429_v58 = vrot.slane %v2427_v50, 5  ;;  %v2434_v59 = vrot.slane %v2432_v51, 4  ;;  %v2451_v60 = vshll.u32 %v6874_v42, 16  ;;  %v6921_v49 = vld [vmem:[#allocation2 + $0x44] sm:$0x1] }
  0x92   : > { %v2425_v62 = vrot.slane %v2424_v53, 4  ;;  %v2437_v0 = vrot.slane %v2435_v54, 5  ;;  %v2443_v2 = vrot.slane %v2441_v55, 5  ;;  %v2447_v3 = vrot.slane %v2445_v56, 4  ;;  %v2374_v50 = vld [vmem:[#allocation2 + $0x48] sm:$0xf] }
  0x93   : > { %v2420_v5 = vsel %vm6644_vm8, %v2415_v57, %v2419_v45  ;;  %v2453_v8 = vrot.slane %v2451_v60, 5  ;;  %v3360_v9 = vsel %vm601_vm0, %v6789_v48, 0  ;;  %v3719_v11 = vsel %vm601_vm0, %v6802_v63, 0  ;;  %v419_v55 = vld [vmem:[%s6913_s14] sm:$0xf] }
  0x94   : > { %v2430_v13 = vsel %vm6644_vm8, %v2425_v62, %v2429_v58  ;;  %v2438_v14 = vor.u32 %v2437_v0, %v2434_v59  ;;  %v2448_v15 = vor.u32 %v2447_v3, %v2443_v2  ;;  %v2456_v17 = vshrl.u32 %v2365_v52, 16  ;;  %v6425_v60 = vld [vmem:[#allocation2 + $0x3c] sm:$0xff]   ;;  %v420_v62 = vld [vmem:[%s6913_s14 + $0x4] sm:$0xf]  ;;  %426 = vst.msk [vmem:[#allocation2 + $0xc0] sm:$0xf] %vm369_vm1, %v419_v55 }
  0x95   : > { %v5642_v18 = vcombine.low %v2420_v5, %v2430_v13  ;;  %v2459_v19 = vshll.u32 %v2365_v52, 16  ;;  %v2465_v20 = vshll.u32 %v6883_v61, 16  ;;  %v2469_v21 = vshrl.u32 %v6883_v61, 16  ;;  %427 = vst.msk [vmem:[#allocation2 + $0xc4] sm:$0xf] %vm369_vm1, %v420_v62 }
  0x96   : > { %v2439_v48 = vrot.slane %v2438_v14, 4  ;;  %v2449_v63 = vrot.slane %v2448_v15, 4  ;;  %v2458_v24 = vrot.slane %v2456_v17, 4  ;;  %v2475_v25 = vshll.u32 %v6885_v4, 16  ;;  %v6936_v14 = vld [vmem:[#allocation2 + $0x50] sm:$0x1] }
  0x97   : > { %6198 = vmatprep.mubr.msk.bf16.mxu0 %vm552_vm2, %v5642_v18  ;;  %v2461_v28 = vrot.slane %v2459_v19, 5  ;;  %v2467_v29 = vrot.slane %v2465_v20, 5  ;;  %v2471_v30 = vrot.slane %v2469_v21, 4  ;;  %v2480_v31 = vshrl.u32 %v2368_v12, 16  ;;  %v2377_v19 = vld [vmem:[#allocation2 + $0x54] sm:$0xf] }
  0x98   : > { %6165 = vmatmul.mubr.msk.bf16.vlgmr.msra.gmra.mxu1 %vm552_vm2, %v6422_v7  ;;  %v2444_v33 = vsel %vm6644_vm8, %v2439_v48, %v2443_v2  ;;  %v2454_v34 = vsel %vm6644_vm8, %v2449_v63, %v2453_v8  ;;  %v2477_v35 = vrot.slane %v2475_v25, 5  ;;  %v2483_v36 = vshll.u32 %v2368_v12, 16  ;;  %v6931_v7 = vld [vmem:[#allocation2 + $0x4c] sm:$0xf]  ;;  %v421_v8 = vld [vmem:[%s6913_s14 + $0x8] sm:$0x1] }
  0x99   : > { %v5643_v37 = vcombine.low %v2444_v33, %v2454_v34  ;;  %6231 = vmatpush3.bf16.msra.mxu1 %v3360_v9  ;;  %6168 = vmatprep.mubr.msk.bf16.mxu1 %vm552_vm2, %v6423_v16  ;;  %v2462_v10 = vor.u32 %v2461_v28, %v2458_v24  ;;  %v2472_v39 = vor.u32 %v2471_v30, %v2467_v29  ;;  %v2482_v40 = vrot.slane %v2480_v31, 4  ;;  %v6944_v20 = vld [vmem:[%s8188_s2 + $0xe] sm:$0x3]  ;;  %v6950_v25 = vld [vmem:[#allocation2 + $0x58] sm:$0xf] }
  0x9a   : > { %v2485_v44 = vrot.slane %v2483_v36, 5  ;;  %v2489_v45 = vshll.u32 %v6897_v23, 16  ;;  %v2493_v46 = vshrl.u32 %v6897_v23, 16  ;;  %v2499_v47 = vshll.u32 %v6902_v26, 16  ;;  %428 = vst.msk [vmem:[#allocation2 + $0xc8] sm:$0x1] %vm372_vm5, %v421_v8  ;;  %6376 = vmatprep.subr.msk.bf16.mxu1 %vm601_vm0, %v6944_v20 }
  0x9b   : > { %6199 = vmatmul.mubr.msk.bf16.vlgmr.msra.gmra.mxu0 %vm552_vm2, %v5643_v37  ;;  %v2463_v51 = vrot.slane %v2462_v10, 4  ;;  %v2473_v52 = vrot.slane %v2472_v39, 4  ;;  %v2504_v53 = vshrl.u32 %v2371_v32, 16  ;;  %v2507_v54 = vshll.u32 %v2371_v32, 16  ;;  %v6426_v39 = vld [vmem:[#allocation2 + $0x48] sm:$0xff]  }
  0x9c   : > { %6265 = vmatpush3.bf16.msra.mxu0 %v3719_v11  ;;  %v2486_v56 = vor.u32 %v2485_v44, %v2482_v40  ;;  %v2491_v57 = vrot.slane %v2489_v45, 5  ;;  %v2495_v58 = vrot.slane %v2493_v46, 4  ;;  %v2501_v59 = vrot.slane %v2499_v47, 5  ;;  %v6427_v47 = vld [vmem:[#allocation2 + $0x54] sm:$0xff]   ;;  %v2380_v55 = vld [vmem:[#allocation2 + $0x60] sm:$0xf] }
  0x9d   : > { %v2468_v0 = vsel %vm6644_vm8, %v2463_v51, %v2467_v29  ;;  %v2478_v2 = vsel %vm6644_vm8, %v2473_v52, %v2477_v35  ;;  %v2506_v3 = vrot.slane %v2504_v53, 4  ;;  %v2509_v5 = vrot.slane %v2507_v54, 5  ;;  %v6977_v8 = vld [vmem:[%s8188_s2 + $0x10] sm:$0x3] }
  0x9e   : > { %v5644_v9 = vcombine.low %v2468_v0, %v2478_v2  ;;  %v2487_v11 = vrot.slane %v2486_v56, 4  ;;  %v2496_v12 = vor.u32 %v2495_v58, %v2491_v57  ;;  %v2513_v13 = vshll.u32 %v6916_v41, 16  ;;  %6377 = vmatprep.subr.msk.bf16.mxu0 %vm601_vm0, %v6977_v8 }
  0x9f   : > { %v2510_v15 = vor.u32 %v2509_v5, %v2506_v3  ;;  %v2517_v16 = vshrl.u32 %v6916_v41, 16  ;;  %v2523_v17 = vshll.u32 %v6921_v49, 16  ;;  %v2528_v18 = vshrl.u32 %v2374_v50, 16  ;;  %v6972_v5 = vld [vmem:[#allocation2 + $0x68] sm:$0x1] }
  0xa0   : > { %6202 = vmatprep.mubr.msk.bf16.mxu0 %vm552_vm2, %v5644_v9  ;;  %6169 = vmatmul.mubr.msk.bf16.gmra.mxu1 %vm552_vm2, %v6424_v43  ;;  %v2492_v21 = vsel %vm6644_vm8, %v2487_v11, %v2491_v57  ;;  %v2497_v48 = vrot.slane %v2496_v12, 4  ;;  %v2515_v63 = vrot.slane %v2513_v13, 5  ;;  %v2531_v24 = vshll.u32 %v2374_v50, 16  ;;  %v6962_v43 = vld [vmem:[#allocation2 + $0x5c] sm:$0x1] }
  0xa1   : > { %6172 = vmatprep.mubr.msk.bf16.mxu1 %vm552_vm2, %v6425_v60  ;;  %v2511_v28 = vrot.slane %v2510_v15, 4  ;;  %v2519_v29 = vrot.slane %v2517_v16, 4  ;;  %v2525_v30 = vrot.slane %v2523_v17, 5  ;;  %v2530_v31 = vrot.slane %v2528_v18, 4  ;;  %v6967_v60 = vld [vmem:[#allocation2 + $0x64] sm:$0xf] }
  0xa2   : > { %v2502_v32 = vsel %vm6644_vm8, %v2497_v48, %v2501_v59  ;;  %v2533_v33 = vrot.slane %v2531_v24, 5  ;;  %v2537_v34 = vshll.u32 %v6931_v7, 16  ;;  %v2541_v35 = vshrl.u32 %v6931_v7, 16  ;;  %v2383_v15 = vld [vmem:[#allocation2 + $0x6c] sm:$0xf] }
  0xa3   : > { %v5645_v36 = vcombine.low %v2492_v21, %v2502_v32  ;;  %v2516_v37 = vsel %vm6644_vm8, %v2511_v28, %v2515_v63  ;;  %v2520_v10 = vor.u32 %v2519_v29, %v2515_v63  ;;  %v2547_v40 = vshll.u32 %v6936_v14, 16  ;;  %v6428_v63 = vld [vmem:[#allocation2 + $0x60] sm:$0xff]   ;;  %v6990_v29 = vld [vmem:[#allocation2 + $0x70] sm:$0xf] }
  0xa4   : > { %v2534_v44 = vor.u32 %v2533_v33, %v2530_v31  ;;  %v2539_v45 = vrot.slane %v2537_v34, 5  ;;  %v2543_v46 = vrot.slane %v2541_v35, 4  ;;  %v2552_v50 = vshrl.u32 %v2377_v19, 16  ;;  %v6429_v34 = vld [vmem:[#allocation2 + $0x6c] sm:$0xff]   ;;  %v6992_v35 = vld [vmem:[#allocation2 + $0x74] sm:$0x1] }
  0xa5   : > { %6203 = vmatmul.mubr.msk.bf16.gmra.mxu0 %vm552_vm2, %v5645_v36  ;;  %v2521_v51 = vrot.slane %v2520_v10, 4  ;;  %v2549_v52 = vrot.slane %v2547_v40, 5  ;;  %v2555_v53 = vshll.u32 %v2377_v19, 16  ;;  %v2561_v54 = vshll.u32 %v6950_v25, 16  ;;  %v2386_v40 = vld [vmem:[#allocation2 + $0x78] sm:$0xf] }
  0xa6   : > { %v2535_v56 = vrot.slane %v2534_v44, 4  ;;  %v2544_v57 = vor.u32 %v2543_v46, %v2539_v45  ;;  %v2554_v58 = vrot.slane %v2552_v50, 4  ;;  %v2565_v59 = vshrl.u32 %v6950_v25, 16 }
  0xa7   : > { %v2526_v62 = vsel %vm6644_vm8, %v2521_v51, %v2525_v30  ;;  %v2557_v0 = vrot.slane %v2555_v53, 5  ;;  %v2563_v2 = vrot.slane %v2561_v54, 5  ;;  %v2571_v3 = vshll.u32 %v6962_v43, 16  ;;  %v7001_v54 = vld [vmem:[#allocation2 + $0x7c] sm:$0xf] }
  0xa8   : > { %v5646_v9 = vcombine.low %v2516_v37, %v2526_v62  ;;  %6173 = vmatmul.mubr.msk.bf16.gmra.mxu1 %vm552_vm2, %v6426_v39  ;;  %v2540_v11 = vsel %vm6644_vm8, %v2535_v56, %v2539_v45  ;;  %v2545_v12 = vrot.slane %v2544_v57, 4  ;;  %v2567_v13 = vrot.slane %v2565_v59, 4  ;;  %v7003_v59 = vld [vmem:[#allocation2 + $0x80] sm:$0x1] }
  0xa9   : > { %6176 = vmatprep.mubr.msk.bf16.mxu1 %vm552_vm2, %v6427_v47  ;;  %v2558_v16 = vor.u32 %v2557_v0, %v2554_v58  ;;  %v2573_v17 = vrot.slane %v2571_v3, 5  ;;  %v2576_v18 = vshrl.u32 %v2380_v55, 16  ;;  %v2579_v19 = vshll.u32 %v2380_v55, 16 }
  0xaa   : > { %6206 = vmatprep.mubr.msk.bf16.mxu0 %vm552_vm2, %v5646_v9  ;;  %v2550_v21 = vsel %vm6644_vm8, %v2545_v12, %v2549_v52  ;;  %v2568_v48 = vor.u32 %v2567_v13, %v2563_v2  ;;  %v2585_v24 = vshll.u32 %v6967_v60, 16  ;;  %v2589_v28 = vshrl.u32 %v6967_v60, 16  ;;  %v2389_v9 = vld [vmem:[#allocation2 + $0x84] sm:$0xf] }
  0xab   : > { %v5647_v30 = vcombine.low %v2540_v11, %v2550_v21  ;;  %v2559_v31 = vrot.slane %v2558_v16, 4  ;;  %v2578_v32 = vrot.slane %v2576_v18, 4  ;;  %v2581_v33 = vrot.slane %v2579_v19, 5  ;;  %v7015_v21 = vld [vmem:[#allocation2 + $0x88] sm:$0xf] }
  0xac   : > { %v2569_v36 = vrot.slane %v2568_v48, 4  ;;  %v2587_v37 = vrot.slane %v2585_v24, 5  ;;  %v2591_v10 = vrot.slane %v2589_v28, 4  ;;  %v2595_v39 = vshll.u32 %v6972_v5, 16  ;;  %v6430_v24 = vld [vmem:[#allocation2 + $0x78] sm:$0xff]  }
  0xad   : > { %6207 = vmatmul.mubr.msk.bf16.gmra.mxu0 %vm552_vm2, %v5647_v30  ;;  %v2564_v44 = vsel %vm6644_vm8, %v2559_v31, %v2563_v2  ;;  %v2582_v45 = vor.u32 %v2581_v33, %v2578_v32  ;;  %v2600_v46 = vshrl.u32 %v2383_v15, 16  ;;  %v2603_v47 = vshll.u32 %v2383_v15, 16  ;;  %v7017_v31 = vld [vmem:[#allocation2 + $0x8c] sm:$0x1] }
  0xae   : > { %v2574_v50 = vsel %vm6644_vm8, %v2569_v36, %v2573_v17  ;;  %v2592_v51 = vor.u32 %v2591_v10, %v2587_v37  ;;  %v2597_v52 = vrot.slane %v2595_v39, 5  ;;  %v2609_v53 = vshll.u32 %v6990_v29, 16 }
  0xaf   : > { %v5648_v55 = vcombine.low %v2564_v44, %v2574_v50  ;;  %v2583_v56 = vrot.slane %v2582_v45, 4  ;;  %v2602_v57 = vrot.slane %v2600_v46, 4  ;;  %v2605_v58 = vrot.slane %v2603_v47, 5  ;;  %v2392_v45 = vld [vmem:[#allocation2 + $0x90] sm:$0xf] }
  0xb0   : > { %6177 = vmatmul.mubr.msk.bf16.gmra.mxu1 %vm552_vm2, %v6428_v63  ;;  %v2593_v62 = vrot.slane %v2592_v51, 4  ;;  %v2611_v0 = vrot.slane %v2609_v53, 5  ;;  %v2613_v2 = vshrl.u32 %v6990_v29, 16  ;;  %v2619_v3 = vshll.u32 %v6992_v35, 16 }
  0xb1   : > { %6210 = vmatprep.mubr.msk.bf16.mxu0 %vm552_vm2, %v5648_v55  ;;  %v2588_v11 = vsel %vm6644_vm8, %v2583_v56, %v2587_v37  ;;  %6180 = vmatprep.mubr.msk.bf16.mxu1 %vm552_vm2, %v6429_v34  ;;  %v2606_v12 = vor.u32 %v2605_v58, %v2602_v57  ;;  %v2624_v13 = vshrl.u32 %v2386_v40, 16  ;;  %v2627_v15 = vshll.u32 %v2386_v40, 16  ;;  %v6431_v37 = vld [vmem:[#allocation2 + $0x84] sm:$0xff]   ;;  %v7026_v57 = vld [vmem:[#allocation2 + $0x94] sm:$0xf] }
  0xb2   : > { %v2598_v16 = vsel %vm6644_vm8, %v2593_v62, %v2597_v52  ;;  %v2615_v17 = vrot.slane %v2613_v2, 4  ;;  %v2621_v18 = vrot.slane %v2619_v3, 5  ;;  %v2633_v19 = vshll.u32 %v7001_v54, 16  ;;  %v7032_v3 = vld [vmem:[#allocation2 + $0x98] sm:$0x1] }
  0xb3   : > { %v5649_v48 = vcombine.low %v2588_v11, %v2598_v16  ;;  %v2607_v63 = vrot.slane %v2606_v12, 4  ;;  %v2626_v28 = vrot.slane %v2624_v13, 4  ;;  %v2629_v30 = vrot.slane %v2627_v15, 5  ;;  %v2395_v15 = vld [vmem:[#allocation2 + $0x9c] sm:$0xf] }
  0xb4   : > { %v2616_v32 = vor.u32 %v2615_v17, %v2611_v0  ;;  %v2635_v33 = vrot.slane %v2633_v19, 5  ;;  %v2637_v34 = vshrl.u32 %v7001_v54, 16  ;;  %v2643_v36 = vshll.u32 %v7003_v59, 16 }
  0xb5   : > { %6211 = vmatmul.mubr.msk.bf16.gmra.mxu0 %vm552_vm2, %v5649_v48  ;;  %v2612_v10 = vsel %vm6644_vm8, %v2607_v63, %v2611_v0  ;;  %v2630_v39 = vor.u32 %v2629_v30, %v2626_v28  ;;  %v2648_v40 = vshrl.u32 %v2389_v9, 16  ;;  %v2651_v44 = vshll.u32 %v2389_v9, 16  ;;  %v7037_v48 = vld [vmem:[#allocation2 + $0xa0] sm:$0xf]  ;;  %v6432_v28 = vld [vmem:[#allocation2 + $0x90] sm:$0xff]  }
  0xb6   : > { %v2617_v46 = vrot.slane %v2616_v32, 4  ;;  %v2639_v47 = vrot.slane %v2637_v34, 4  ;;  %v2645_v50 = vrot.slane %v2643_v36, 5  ;;  %v2657_v51 = vshll.u32 %v7015_v21, 16 }
  0xb7   : > { %v2631_v52 = vrot.slane %v2630_v39, 4  ;;  %v2650_v53 = vrot.slane %v2648_v40, 4  ;;  %v2653_v55 = vrot.slane %v2651_v44, 5  ;;  %v2661_v56 = vshrl.u32 %v7015_v21, 16  ;;  %v7045_v39 = vld [vmem:[#allocation2 + $0xa4] sm:$0x1] }
  0xb8   : > { %v2622_v58 = vsel %vm6644_vm8, %v2617_v46, %v2621_v18  ;;  %6181 = vmatmul.mubr.msk.bf16.gmra.mxu1 %vm552_vm2, %v6430_v24  ;;  %v2640_v62 = vor.u32 %v2639_v47, %v2635_v33  ;;  %v2659_v0 = vrot.slane %v2657_v51, 5  ;;  %v2667_v2 = vshll.u32 %v7017_v31, 16 }
  0xb9   : > { %v5650_v9 = vcombine.low %v2612_v10, %v2622_v58  ;;  %v2636_v11 = vsel %vm6644_vm8, %v2631_v52, %v2635_v33  ;;  %6184 = vmatprep.mubr.msk.bf16.mxu1 %vm552_vm2, %v6431_v37  ;;  %v2654_v12 = vor.u32 %v2653_v55, %v2650_v53  ;;  %v2663_v13 = vrot.slane %v2661_v56, 4  ;;  %v6433_v10 = vld [vmem:[#allocation2 + $0x9c] sm:$0xff]   ;;  %v2398_v55 = vld [vmem:[#allocation2 + $0xa8] sm:$0xf] }
  0xba   : > { %v2641_v16 = vrot.slane %v2640_v62, 4  ;;  %v2669_v17 = vrot.slane %v2667_v2, 5  ;;  %v2672_v18 = vshrl.u32 %v2392_v45, 16  ;;  %v2675_v19 = vshll.u32 %v2392_v45, 16 }
  0xbb   : > { %6214 = vmatprep.mubr.msk.bf16.mxu0 %vm552_vm2, %v5650_v9  ;;  %v2655_v63 = vrot.slane %v2654_v12, 4  ;;  %v2664_v24 = vor.u32 %v2663_v13, %v2659_v0  ;;  %v2681_v30 = vshll.u32 %v7026_v57, 16  ;;  %v2685_v32 = vshrl.u32 %v7026_v57, 16  ;;  %v7055_v12 = vld [vmem:[#allocation2 + $0xac] sm:$0xf] }
  0xbc   : > { %v2646_v33 = vsel %vm6644_vm8, %v2641_v16, %v2645_v50  ;;  %v2674_v34 = vrot.slane %v2672_v18, 4  ;;  %v2677_v36 = vrot.slane %v2675_v19, 5  ;;  %v2691_v37 = vshll.u32 %v7032_v3, 16  ;;  %v2401_v19 = vld [vmem:[#allocation2 + $0xb4] sm:$0xf] }
  0xbd   : > { %v5651_v40 = vcombine.low %v2636_v11, %v2646_v33  ;;  %v2660_v44 = vsel %vm6644_vm8, %v2655_v63, %v2659_v0  ;;  %v2665_v45 = vrot.slane %v2664_v24, 4  ;;  %v2683_v46 = vrot.slane %v2681_v30, 5 }
  0xbe   : > { %v2678_v47 = vor.u32 %v2677_v36, %v2674_v34  ;;  %v2687_v51 = vrot.slane %v2685_v32, 4  ;;  %v2693_v52 = vrot.slane %v2691_v37, 5  ;;  %v2696_v53 = vshrl.u32 %v2395_v15, 16  ;;  %v7065_v37 = vld [vmem:[#allocation2 + $0xb8] sm:$0xf] }
  0xbf   : > { %6215 = vmatmul.mubr.msk.bf16.gmra.mxu0 %vm552_vm2, %v5651_v40  ;;  %v2670_v50 = vsel %vm6644_vm8, %v2665_v45, %v2669_v17  ;;  %v2699_v56 = vshll.u32 %v2395_v15, 16  ;;  %v2705_v58 = vshll.u32 %v7037_v48, 16  ;;  %v2709_v62 = vshrl.u32 %v7037_v48, 16  ;;  %v7059_v15 = vld [vmem:[#allocation2 + $0xb0] sm:$0x1]  ;;  %v6434_v40 = vld [vmem:[#allocation2 + $0xa8] sm:$0xff]  }
  0xc0   : > { %v5652_v2 = vcombine.low %v2660_v44, %v2670_v50  ;;  %6185 = vmatmul.mubr.msk.bf16.gmra.mxu1 %vm552_vm2, %v6432_v28  ;;  %v2679_v0 = vrot.slane %v2678_v47, 4  ;;  %v2688_v9 = vor.u32 %v2687_v51, %v2683_v46  ;;  %v2698_v11 = vrot.slane %v2696_v53, 4  ;;  %v6435_v50 = vld [vmem:[#allocation2 + $0xb4] sm:$0xff]  }
  0xc1   : > { %6188 = vmatprep.mubr.msk.bf16.mxu1 %vm552_vm2, %v6433_v10  ;;  %v2701_v13 = vrot.slane %v2699_v56, 5  ;;  %v2707_v16 = vrot.slane %v2705_v58, 5  ;;  %v2711_v18 = vrot.slane %v2709_v62, 4  ;;  %v2715_v17 = vshll.u32 %v7045_v39, 16  ;;  %v7070_v56 = vld [vmem:[#allocation2 + $0xbc] sm:$0x1] }
  0xc2   : > { %6218 = vmatprep.mubr.msk.bf16.mxu0 %vm552_vm2, %v5652_v2  ;;  %v2684_v63 = vsel %vm6644_vm8, %v2679_v0, %v2683_v46  ;;  %v2689_v24 = vrot.slane %v2688_v9, 4  ;;  %v2720_v28 = vshrl.u32 %v2398_v55, 16  ;;  %v2723_v30 = vshll.u32 %v2398_v55, 16  ;;  %v422_v9 = vld [vmem:[%s6913_s14 + $0xc] sm:$0xf] }
  0xc3   : > { %v2702_v32 = vor.u32 %v2701_v13, %v2698_v11  ;;  %v2712_v33 = vor.u32 %v2711_v18, %v2707_v16  ;;  %v2717_v34 = vrot.slane %v2715_v17, 5  ;;  %v2729_v36 = vshll.u32 %v7055_v12, 16  ;;  %v2404_v17 = vld [vmem:[#allocation2 + $0xc0] sm:$0xf]  ;;  %429 = vst.msk [vmem:[#allocation2 + $0xcc] sm:$0xf] %vm369_vm1, %v422_v9 }
  0xc4   : > { %v2694_v10 = vsel %vm6644_vm8, %v2689_v24, %v2693_v52  ;;  %v2722_v44 = vrot.slane %v2720_v28, 4  ;;  %v2725_v45 = vrot.slane %v2723_v30, 5  ;;  %v2733_v47 = vshrl.u32 %v7055_v12, 16 }
  0xc5   : > { %v5653_v46 = vcombine.low %v2684_v63, %v2694_v10  ;;  %v2703_v51 = vrot.slane %v2702_v32, 4  ;;  %v2713_v53 = vrot.slane %v2712_v33, 4  ;;  %v2731_v55 = vrot.slane %v2729_v36, 5  ;;  %v423_v63 = vld [vmem:[%s6913_s14 + $0x10] sm:$0xf] }
  0xc6   : > { %v2726_v58 = vor.u32 %v2725_v45, %v2722_v44  ;;  %v2735_v62 = vrot.slane %v2733_v47, 4  ;;  %v2739_v2 = vshll.u32 %v7059_v15, 16  ;;  %v2744_v0 = vshrl.u32 %v2401_v19, 16  ;;  %v7083_v33 = vld [vmem:[#allocation2 + $0xc4] sm:$0xf] }
  0xc7   : > { %6219 = vmatmul.mubr.msk.bf16.gmra.mxu0 %vm552_vm2, %v5653_v46  ;;  %v2708_v52 = vsel %vm6644_vm8, %v2703_v51, %v2707_v16  ;;  %v2718_v11 = vsel %vm6644_vm8, %v2713_v53, %v2717_v34  ;;  %v2747_v13 = vshll.u32 %v2401_v19, 16  ;;  %v2753_v18 = vshll.u32 %v7065_v37, 16  ;;  %430 = vst.msk [vmem:[#allocation2 + $0xd0] sm:$0xf] %vm369_vm1, %v423_v63  ;;  %v3085_v47 = vld [vmem:[#allocation2 + $0xc] sm:$0xe] }
  0xc8   : > { %v5654_v24 = vcombine.low %v2708_v52, %v2718_v11  ;;  %6189 = vmatmul.mubr.msk.bf16.gmra.mxu1 %vm552_vm2, %v6434_v40  ;;  %v2727_v28 = vrot.slane %v2726_v58, 4  ;;  %v2736_v30 = vor.u32 %v2735_v62, %v2731_v55  ;;  %v2741_v32 = vrot.slane %v2739_v2, 5  ;;  %v7092_v53 = vld [vmem:[#allocation2 + $0xc8] sm:$0x1]  ;;  %v3086_v63 = vld [vmem:[#allocation2 + $0x18] sm:$0xe] }
  0xc9   : > { %6192 = vmatprep.mubr.msk.bf16.mxu1 %vm552_vm2, %v6435_v50  ;;  %v2746_v16 = vrot.slane %v2744_v0, 4  ;;  %v2749_v19 = vrot.slane %v2747_v13, 5  ;;  %v2755_v34 = vrot.slane %v2753_v18, 5  ;;  %v2757_v36 = vshrl.u32 %v7065_v37, 16  ;;  %v6436_v0 = vld [vmem:[#allocation2 + $0xc0] sm:$0xff]  }
  0xca   : > { %6222 = vmatprep.mubr.msk.bf16.mxu0 %vm552_vm2, %v5654_v24  ;;  %v2732_v10 = vsel %vm6644_vm8, %v2727_v28, %v2731_v55  ;;  %v2737_v40 = vrot.slane %v2736_v30, 4  ;;  %v2763_v44 = vshll.u32 %v7070_v56, 16  ;;  %v2768_v45 = vshrl.u32 %v2404_v17, 16 }
  0xcb   : > { %v2750_v46 = vor.u32 %v2749_v19, %v2746_v16  ;;  %v2759_v51 = vrot.slane %v2757_v36, 4  ;;  %v2771_v50 = vshll.u32 %v2404_v17, 16  ;;  %v2777_v58 = vshll.u32 %v7083_v33, 16 }
  0xcc   : > { %v2742_v62 = vsel %vm6644_vm8, %v2737_v40, %v2741_v32  ;;  %v2765_v2 = vrot.slane %v2763_v44, 5  ;;  %v2770_v9 = vrot.slane %v2768_v45, 4  ;;  %v2781_v55 = vshrl.u32 %v7083_v33, 16 }
  0xcd   : > { %v5655_v52 = vcombine.low %v2732_v10, %v2742_v62  ;;  %v2751_v11 = vrot.slane %v2750_v46, 4  ;;  %v2760_v13 = vor.u32 %v2759_v51, %v2755_v34  ;;  %v2773_v18 = vrot.slane %v2771_v50, 5 }
  0xce   : > { %v2779_v24 = vrot.slane %v2777_v58, 5  ;;  %v2783_v28 = vrot.slane %v2781_v55, 4  ;;  %v2787_v30 = vshll.u32 %v7092_v53, 16  ;;  %v5674_v17 = vrot.slane %v3085_v47, 9 }
  0xcf   : > { %6223 = vmatmul.mubr.msk.bf16.gmra.mxu0 %vm552_vm2, %v5655_v52  ;;  %v2756_v32 = vsel %vm6644_vm8, %v2751_v11, %v2755_v34  ;;  %v2761_v16 = vrot.slane %v2760_v13, 4  ;;  %v2774_v19 = vor.u32 %v2773_v18, %v2770_v9  ;;  %v3151_v36 = vrot.slane %v6856_v22, 5  ;;  %v3088_v52 = vld [vmem:[#allocation2 + $0x30] sm:$0xe]  ;;  %v6437_v11 = vld [vmem:[#allocation2 + $0x18] sm:$0xff]  }
  0xd0   : > { %6193 = vmatmul.mubr.msk.bf16.gmra.mxu1 %vm552_vm2, %v6436_v0  ;;  %v2784_v10 = vor.u32 %v2783_v28, %v2779_v24  ;;  %v2789_v40 = vrot.slane %v2787_v30, 5  ;;  %v3154_v44 = vrot.slane %v6858_v27, 5  ;;  %v5675_v45 = vrot.slane %v3086_v63, 9  ;;  %v3087_v0 = vld [vmem:[#allocation2 + $0x24] sm:$0xe] }
  0xd1   : > { %v2766_v46 = vsel %vm6644_vm8, %v2761_v16, %v2765_v2  ;;  %v2775_v47 = vrot.slane %v2774_v19, 4  ;;  %v3152_v51 = vsel %vm6650_vm9, %v5674_v17, %v3151_v36  ;;  %v3153_v50 = vrot.slane %v3151_v36, 4  ;;  %v3089_v63 = vld [vmem:[#allocation2 + $0x3c] sm:$0xe]  ;;  %v3090_v19 = vld [vmem:[#allocation2 + $0x48] sm:$0xe] }
  0xd2   : > { %v5656_v34 = vcombine.low %v2756_v32, %v2766_v46  ;;  %v2785_v58 = vrot.slane %v2784_v10, 4  ;;  %v3158_v62 = vrot.slane %v6866_v38, 5  ;;  %v3161_v22 = vrot.slane %v6874_v42, 5 }
  0xd3   : > { %v2780_v9 = vsel %vm6644_vm8, %v2775_v47, %v2779_v24  ;;  %v3155_v27 = vsel %vm6650_vm9, %v3153_v50, %v3154_v44  ;;  %v4445_v2 = vsel %vm601_vm0, %v6944_v20, 0  ;;  %v7119_v55 = vsel %vm601_vm0, %v6977_v8, 0 }
  0xd4   : > { %6226 = vmatprep.mubr.msk.bf16.mxu0 %vm552_vm2, %v5656_v34  ;;  %v2790_v38 = vsel %vm6644_vm8, %v2785_v58, %v2789_v40  ;;  %v5691_v42 = vcombine.low %v3152_v51, %v3155_v27  ;;  %v3159_v13 = vsel %vm6650_vm9, %v5675_v45, %v3158_v62  ;;  %v3160_v18 = vrot.slane %v3158_v62, 4  ;;  %v3092_v34 = vld [vmem:[#allocation2 + $0x60] sm:$0xe] }
  0xd5   : > { %v5657_v24 = vcombine.low %v2780_v9, %v2790_v38  ;;  %v5676_v28 = vrot.slane %v3087_v0, 9  ;;  %v3165_v20 = vrot.slane %v6883_v61, 5  ;;  %v3168_v8 = vrot.slane %v6885_v4, 5 }
  0xd6   : > { %6232 = vmatprep.mubr.msk.bf16.mxu1 %vm552_vm2, %v5691_v42  ;;  %v3162_v30 = vsel %vm6650_vm9, %v3160_v18, %v3161_v22  ;;  %v5677_v17 = vrot.slane %v3088_v52, 9  ;;  %v3172_v32 = vrot.slane %v6897_v23, 5  ;;  %v3175_v16 = vrot.slane %v6902_v26, 5  ;;  %v3091_v26 = vld [vmem:[#allocation2 + $0x54] sm:$0xe]  ;;  %v6438_v22 = vld [vmem:[#allocation2 + $0x24] sm:$0xff]  }
  0xd7   : > { %6227 = vmatmul.mubr.msk.bf16.gmra.mxu0 %vm552_vm2, %v5657_v24  ;;  %v5692_v36 = vcombine.low %v3159_v13, %v3162_v30  ;;  %v3166_v10 = vsel %vm6650_vm9, %v5676_v28, %v3165_v20  ;;  %v3167_v61 = vrot.slane %v3165_v20, 4  ;;  %v5678_v40 = vrot.slane %v3089_v63, 9  ;;  %v3093_v52 = vld [vmem:[#allocation2 + $0x6c] sm:$0xe]  ;;  %v7168_v28 = vld [vmem:[%s8189_s3] ss:$0 sm:$0xff] }
  0xd8   : > { %6266 = vmatprep.mubr.msk.bf16.mxu0 %vm552_vm2, %v6437_v11  ;;  %v3173_v4 = vsel %vm6650_vm9, %v5677_v17, %v3172_v32  ;;  %v3174_v44 = vrot.slane %v3172_v32, 4  ;;  %v3179_v45 = vrot.slane %v6916_v41, 5  ;;  %v3182_v23 = vrot.slane %v6921_v49, 5  ;;  %v3094_v20 = vld [vmem:[#allocation2 + $0x78] sm:$0xe] }
  0xd9   : > { %6233 = vmatmul.mubr.msk.bf16.vlgmr.msra.gmra.mxu1 %vm552_vm2, %v5692_v36  ;;  %v3169_v46 = vsel %vm6650_vm9, %v3167_v61, %v3168_v8  ;;  %v5679_v47 = vrot.slane %v3090_v19, 9  ;;  %v3186_v51 = vrot.slane %v6931_v7, 5  ;;  %v3189_v50 = vrot.slane %v6936_v14, 5  ;;  %v6439_v14 = vld [vmem:[#allocation2 + $0x30] sm:$0xff]  }
  0xda   : > { %6299 = vmatpush3.bf16.msra.mxu1 %v4445_v2  ;;  %v5693_v58 = vcombine.low %v3166_v10, %v3169_v46  ;;  %v3176_v62 = vsel %vm6650_vm9, %v3174_v44, %v3175_v16  ;;  %v3180_v41 = vsel %vm6650_vm9, %v5678_v40, %v3179_v45  ;;  %v3181_v49 = vrot.slane %v3179_v45, 4 }
  0xdb   : > { %v5694_v0 = vcombine.low %v3173_v4, %v3176_v62  ;;  %v7152_v9 = vsel %vm6650_vm9, %v5679_v47, %v3186_v51  ;;  %v3188_v27 = vrot.slane %v3186_v51, 4  ;;  %v5680_v7 = vrot.slane %v3091_v26, 9 }
  0xdc   : > { %6236 = vmatprep.mubr.msk.bf16.mxu1 %vm552_vm2, %v5693_v58  ;;  %v3183_v2 = vsel %vm6650_vm9, %v3181_v49, %v3182_v23  ;;  %v3193_v38 = vrot.slane %v6950_v25, 5  ;;  %v3196_v42 = vrot.slane %v6962_v43, 5  ;;  %v5681_v11 = vrot.slane %v3092_v34, 9  ;;  %v3096_v34 = vld [vmem:[#allocation2 + $0x90] sm:$0xe]  ;;  %v6440_v58 = vld [vmem:[#allocation2 + $0x3c] sm:$0xff]  }
  0xdd   : > { %v5695_v13 = vcombine.low %v3180_v41, %v3183_v2  ;;  %v7161_v18 = vsel %vm6650_vm9, %v3188_v27, %v3189_v50  ;;  %v3200_v63 = vrot.slane %v6967_v60, 5  ;;  %v3203_v24 = vrot.slane %v6972_v5, 5 }
  0xde   : > { %v5696_v25 = vcombine.low %v7152_v9, %v7161_v18  ;;  %v7174_v43 = vsel %vm6650_vm9, %v5680_v7, %v3193_v38  ;;  %v3195_v8 = vrot.slane %v3193_v38, 4  ;;  %v5682_v30 = vrot.slane %v3093_v52, 9 }
  0xdf   : > { %6267 = vmatmul.mubr.msk.bf16.vlgmr.msra.gmra.mxu0 %vm552_vm2, %v6438_v22  ;;  %v7179_v60 = vsel %vm6650_vm9, %v5681_v11, %v3200_v63  ;;  %v3202_v5 = vrot.slane %v3200_v63, 4  ;;  %v3207_v32 = vrot.slane %v6990_v29, 5  ;;  %v3210_v16 = vrot.slane %v6992_v35, 5  ;;  %v3095_v29 = vld [vmem:[#allocation2 + $0x84] sm:$0xe] }
  0xe0   : > { %6333 = vmatpush3.bf16.msra.mxu0 %v7119_v55  ;;  %6270 = vmatprep.mubr.msk.bf16.mxu0 %vm552_vm2, %v6439_v14  ;;  %v7187_v36 = vsel %vm6650_vm9, %v3195_v8, %v3196_v42  ;;  %v5683_v40 = vrot.slane %v3094_v20, 9  ;;  %v3214_v46 = vrot.slane %v7001_v54, 5  ;;  %v3217_v47 = vrot.slane %v7003_v59, 5  ;;  %v3097_v63 = vld [vmem:[#allocation2 + $0x9c] sm:$0xe] }
  0xe1   : > { %6237 = vmatmul.mubr.msk.bf16.gmra.mxu1 %vm552_vm2, %v5694_v0  ;;  %v5697_v35 = vcombine.low %v7174_v43, %v7187_v36  ;;  %v7200_v55 = vsel %vm6650_vm9, %v3202_v5, %v3203_v24  ;;  %v7204_v44 = vsel %vm6650_vm9, %v5682_v30, %v3207_v32  ;;  %v3209_v45 = vrot.slane %v3207_v32, 4  ;;  %v6441_v0 = vld [vmem:[#allocation2 + $0x48] sm:$0xff]  }
  0xe2   : > { %6240 = vmatprep.mubr.msk.bf16.mxu1 %vm552_vm2, %v5695_v13  ;;  %v5698_v26 = vcombine.low %v7179_v60, %v7200_v55  ;;  %v5684_v54 = vrot.slane %v3095_v29, 9  ;;  %v7228_v27 = vsel %vm6650_vm9, %v5683_v40, %v3214_v46  ;;  %v3216_v7 = vrot.slane %v3214_v46, 4 }
  0xe3   : > { %v6064_v17 = vpop.f32.mrf.mxu0  ;;  %v7216_v62 = vsel %vm6650_vm9, %v3209_v45, %v3210_v16  ;;  %v3221_v42 = vrot.slane %v7015_v21, 5  ;;  %v3224_v11 = vrot.slane %v7017_v31, 5  ;;  %v5685_v13 = vrot.slane %v3096_v34, 9  ;;  %v3098_v16 = vld [vmem:[#allocation2 + $0xa8] sm:$0xe] }
  0xe4   : > { %v6080_v19 = vpop.f32.mrf.mxu1  ;;  %v7190_v10 = vadd.f32 %v6064_v17, %v7168_v28  ;;  %v5699_v59 = vcombine.low %v7204_v44, %v7216_v62  ;;  %v7240_v24 = vsel %vm6650_vm9, %v3216_v7, %v3217_v47  ;;  %v3228_v8 = vrot.slane %v7026_v57, 5  ;;  %v3099_v47 = vld [vmem:[#allocation2 + $0xb4] sm:$0xe] }
  0xe5   : > { %v7193_v61 = vadd.f32 %v6080_v19, %v7168_v28  ;;  %v639_v4 = vpop.f32.mrf.mxu0  ;;  %v3231_v30 = vrot.slane %v7032_v3, 5  ;;  %v7252_v31 = vsel %vm6650_vm9, %v5684_v54, %v3221_v42  ;;  %v3223_v17 = vrot.slane %v3221_v42, 4 }
  0xe6   : > { %v703_v23 = vpop.f32.mrf.mxu1  ;;  %v7212_v51 = vadd.f32 %v7168_v28, %v639_v4  ;;  %v7263_v3 = vsel %vm6650_vm9, %v5685_v13, %v3228_v8  ;;  %v3230_v19 = vrot.slane %v3228_v8, 4  ;;  %v5686_v40 = vrot.slane %v3097_v63, 9  ;;  %v3100_v13 = vld [vmem:[#allocation2 + $0xc0] sm:$0xe] }
  0xe7   : > { %v6065_v50 = vpop.f32.mrf.mxu0  ;;  %v7219_v41 = vadd.f32 %v7168_v28, %v703_v23  ;;  %6271 = vmatmul.mubr.msk.bf16.gmra.mxu0 %vm552_vm2, %v6440_v58  ;;  %v7271_v4 = vsel %vm6650_vm9, %v3223_v17, %v3224_v11  ;;  %v3235_v23 = vrot.slane %v7037_v48, 5  ;;  %v3238_v46 = vrot.slane %v7045_v39, 5  ;;  %v6442_v58 = vld [vmem:[#allocation2 + $0x54] sm:$0xff]  }
  0xe8   : > { %v7222_v49 = vadd.f32 %v6065_v50, %v7168_v28  ;;  %v6081_v22 = vpop.f32.mrf.mxu1  ;;  %6274 = vmatprep.mubr.msk.bf16.mxu0 %vm552_vm2, %v6441_v0  ;;  %v7283_v18 = vsel %vm6650_vm9, %v3230_v19, %v3231_v30  ;;  %v5687_v34 = vrot.slane %v3098_v16, 9  ;;  %v6443_v0 = vld [vmem:[#allocation2 + $0x60] sm:$0xff]   ;;  %v3245_v42 = vrot.slane %v7059_v15, 5 }
  0xe9   : > { %v7231_v52 = vadd.f32 %v6081_v22, %v7168_v28  ;;  %v642_v14 = vpop.f32.mrf.mxu0  ;;  %6241 = vmatmul.mubr.msk.bf16.gmra.mxu1 %vm552_vm2, %v5696_v25  ;;  %v7295_v22 = vsel %vm6650_vm9, %v5686_v40, %v3235_v23  ;;  %v3237_v54 = vrot.slane %v3235_v23, 4  ;;  %v5688_v11 = vrot.slane %v3099_v47, 9  ;;  %v424_v40 = vld [vmem:[%s6913_s14 + $0x14] sm:$0x1] }
  0xea   : > { %v7234_v2 = vadd.f32 %v7168_v28, %v642_v14  ;;  %v706_v38 = vpop.f32.mrf.mxu1  ;;  %6244 = vmatprep.mubr.msk.bf16.mxu1 %vm552_vm2, %v5697_v35  ;;  %v3249_v30 = vrot.slane %v7065_v37, 5  ;;  %v3252_v17 = vrot.slane %v7070_v56, 5  ;;  %431 = vst.msk [vmem:[#allocation2 + $0xd4] sm:$0x1] %vm372_vm5, %v424_v40 }
  0xeb   : > { %v7243_v20 = vadd.f32 %v7168_v28, %v706_v38  ;;  %v6068_v43 = vpop.f32.mrf.mxu0  ;;  %v3242_v38 = vrot.slane %v7055_v12, 5  ;;  %v7307_v8 = vsel %vm6650_vm9, %v3237_v54, %v3238_v46  ;;  %v5689_v46 = vrot.slane %v3100_v13, 9  ;;  %v3915_v54 = vld [vmem:[#allocation2 + $0x1c] sm:$0xf] }
  0xec   : > { %v7255_v5 = vadd.f32 %v6068_v43, %v7168_v28  ;;  %v6084_v32 = vpop.f32.mrf.mxu1  ;;  %v3251_v23 = vrot.slane %v3249_v30, 4  ;;  %v4706_v21 = vrot.slane %v3915_v54, 5 }
  0xed   : > { %v7259_v57 = vadd.f32 %v6084_v32, %v7168_v28  ;;  %v655_v36 = vpop.f32.mrf.mxu0  ;;  %v7318_v16 = vsel %vm6650_vm9, %v5687_v34, %v3242_v38  ;;  %v3244_v19 = vrot.slane %v3242_v38, 4 }
  0xee   : > { %v7274_v29 = vadd.f32 %v7168_v28, %v655_v36  ;;  %v719_v45 = vpop.f32.mrf.mxu1  ;;  %v3914_v36 = vld [vmem:[#allocation2 + $0x18] sm:$0xf] }
  0xef   : > { %v7286_v25 = vadd.f32 %v7168_v28, %v719_v45  ;;  %v6069_v50 = vpop.f32.mrf.mxu0  ;;  %6275 = vmatmul.mubr.msk.bf16.gmra.mxu0 %vm552_vm2, %v6442_v58  ;;  %v7327_v45 = vsel %vm6650_vm9, %v5688_v11, %v3249_v30  ;;  %v3256_v58 = vrot.slane %v7083_v33, 5  ;;  %v7353_v33 = vld [vmem:[#allocation2 + $0x20] sm:$0x1]  ;;  %v3966_v62 = vshll.u32 %v3914_v36, 16 }
  0xf0   : > { %v7291_v39 = vadd.f32 %v6069_v50, %v7168_v28  ;;  %v6085_v35 = vpop.f32.mrf.mxu1  ;;  %6278 = vmatprep.mubr.msk.bf16.mxu0 %vm552_vm2, %v6443_v0  ;;  %v7336_v50 = vsel %vm6650_vm9, %v3244_v19, %v3245_v42  ;;  %v7351_v42 = vsel %vm6650_vm9, %v3251_v23, %v3252_v17  ;;  %v6445_v19 = vld [vmem:[#allocation2 + $0x78] sm:$0xff]  }
  0xf1   : > { %v7298_v7 = vadd.f32 %v6085_v35, %v7168_v28  ;;  %v658_v14 = vpop.f32.mrf.mxu0  ;;  %v3259_v35 = vrot.slane %v7092_v53, 5  ;;  %6245 = vmatmul.mubr.msk.bf16.gmra.mxu1 %vm552_vm2, %v5698_v26  ;;  %v3963_v53 = vshrl.u32 %v3914_v36, 16  ;;  %v7366_v11 = vsel %vm6650_vm9, %v5689_v46, %v3256_v58  ;;  %v3917_v26 = vld [vmem:[#allocation2 + $0x24] sm:$0xf] }
  0xf2   : > { %v7303_v63 = vadd.f32 %v7168_v28, %v658_v14  ;;  %v722_v43 = vpop.f32.mrf.mxu1  ;;  %6248 = vmatprep.mubr.msk.bf16.mxu1 %vm552_vm2, %v5699_v59  ;;  %v3258_v13 = vrot.slane %v3256_v58, 4  ;;  %v3972_v59 = vshll.u32 %v3915_v54, 16  ;;  %v3976_v46 = vshrl.u32 %v3915_v54, 16 }
  0xf3   : > { %v7312_v32 = vadd.f32 %v7168_v28, %v722_v43  ;;  %v6072_v15 = vpop.f32.mrf.mxu0  ;;  %v6444_v43 = vld [vmem:[#allocation2 + $0x6c] sm:$0xff]   ;;  %v3965_v44 = vrot.slane %v3963_v53, 4  ;;  %v3968_v53 = vrot.slane %v3966_v62, 5  ;;  %v4709_v36 = vrot.slane %v7353_v33, 5 }
  0xf4   : > { %v7323_v37 = vadd.f32 %v6072_v15, %v7168_v28  ;;  %v6088_v56 = vpop.f32.mrf.mxu1  ;;  %v4640_v15 = vld [vmem:[#allocation2 + $0x18] sm:$0xe]  ;;  %v7376_v23 = vsel %vm6650_vm9, %v3258_v13, %v3259_v35  ;;  %v3978_v12 = vrot.slane %v3976_v46, 4  ;;  %v3918_v46 = vld [vmem:[#allocation2 + $0x28] sm:$0xf] }
  0xf5   : > { %8195 = vst [vmem:[#allocation3_spill] sm:$0xff] %v7312_v32  ;;  %v7332_v47 = vadd.f32 %v6088_v56, %v7168_v28  ;;  %v671_v34 = vpop.f32.mrf.mxu0  ;;  %v5789_v13 = vrot.slane %v4640_v15, 9  ;;  %v3969_v9 = vor.u32 %v3968_v53, %v3965_v44  ;;  %v3990_v15 = vshll.u32 %v3917_v26, 16 }
  0xf6   : > { %v7347_v14 = vadd.f32 %v7168_v28, %v671_v34  ;;  %v735_v38 = vpop.f32.mrf.mxu1  ;;  %v3982_v34 = vshll.u32 %v7353_v33, 16 }
  0xf7   : > { %8196 = vst [vmem:[#allocation4_spill] sm:$0xff] %v7332_v47  ;;  %v7360_v60 = vadd.f32 %v7168_v28, %v735_v38  ;;  %v6073_v55 = vpop.f32.mrf.mxu0  ;;  %6279 = vmatmul.mubr.msk.bf16.gmra.mxu0 %vm552_vm2, %v6444_v43  ;;  %v8201_v43 = vcombine.low %v7228_v27, %v7240_v24  ;;  %v3970_v33 = vrot.slane %v3969_v9, 4  ;;  %v7405_v44 = vsel %vm6650_vm9, %v5789_v13, %v4706_v21 }
  0xf8   : > { %v7369_v30 = vadd.f32 %v6073_v55, %v7168_v28  ;;  %v6089_v17 = vpop.f32.mrf.mxu1  ;;  %v3974_v55 = vrot.slane %v3972_v59, 5  ;;  %v3984_v35 = vrot.slane %v3982_v34, 5  ;;  %6282 = vmatprep.mubr.msk.bf16.mxu0 %vm552_vm2, %v6445_v19  ;;  %v3987_v34 = vshrl.u32 %v3917_v26, 16 }
  0xf9   : > { %8197 = vst [vmem:[#allocation5_spill] sm:$0xff] %v7360_v60  ;;  %v7372_v40 = vadd.f32 %v6089_v17, %v7168_v28  ;;  %v674_v56 = vpop.f32.mrf.mxu0  ;;  %6249 = vmatmul.mubr.msk.bf16.gmra.mxu1 %vm552_vm2, %v8201_v43  ;;  %v4708_v19 = vrot.slane %v4706_v21, 4  ;;  %v3996_v13 = vshll.u32 %v3918_v46, 16 }
  0xfa   : > { %v7380_v58 = vadd.f32 %v7168_v28, %v674_v56  ;;  %v738_v38 = vpop.f32.mrf.mxu1  ;;  %v3989_v53 = vrot.slane %v3987_v34, 4  ;;  %v3975_v21 = vsel %vm6644_vm8, %v3970_v33, %v3974_v55 }
  0xfb   : > { %8198 = vst [vmem:[#allocation6_spill] sm:$0xff] %v7372_v40  ;;  %v7385_v17 = vadd.f32 %v7168_v28, %v738_v38  ;;  %v6076_v0 = vpop.f32.mrf.mxu0  ;;  %v3979_v38 = vor.u32 %v3978_v12, %v3974_v55  ;;  %v8202_v12 = vcombine.low %v7252_v31, %v7271_v4  ;;  %v7421_v31 = vsel %vm6650_vm9, %v4708_v19, %v4709_v36  ;;  %v3919_v4 = vld [vmem:[#allocation2 + $0x2c] sm:$0x1]  ;;  %v3920_v55 = vld [vmem:[#allocation2 + $0x30] sm:$0xf] }
  0xfc   : > { %v7389_v48 = vadd.f32 %v6076_v0, %v7168_v28  ;;  %v6092_v56 = vpop.f32.mrf.mxu1  ;;  %v4006_v60 = vshll.u32 %v3919_v4, 16  ;;  %v4011_v47 = vshrl.u32 %v3920_v55, 16 }
  0xfd   : > { %8199 = vst [vmem:[#allocation7_spill] sm:$0xff] %v7385_v17  ;;  %v7394_v62 = vadd.f32 %v6092_v56, %v7168_v28  ;;  %v687_v59 = vpop.f32.mrf.mxu0  ;;  %6252 = vmatprep.mubr.msk.bf16.mxu1 %vm552_vm2, %v8202_v12  ;;  %v3980_v24 = vrot.slane %v3979_v38, 4  ;;  %v3992_v56 = vrot.slane %v3990_v15, 5  ;;  %v6447_v12 = vld [vmem:[#allocation2 + $0x90] sm:$0xff]   ;;  %v4000_v17 = vshrl.u32 %v3918_v46, 16 }
  0xfe   : > { %v7401_v0 = vadd.f32 %v7168_v28, %v687_v59  ;;  %v751_v54 = vpop.f32.mrf.mxu1  ;;  %v6446_v59 = vld [vmem:[#allocation2 + $0x84] sm:$0xff]  }
  0xff   : > { %8200 = vst [vmem:[#allocation8_spill] sm:$0xff] %v7394_v62  ;;  %v7412_v26 = vadd.f32 %v7168_v28, %v751_v54  ;;  %v6077_v27 = vpop.f32.mrf.mxu0  ;;  %v4641_v54 = vld [vmem:[#allocation2 + $0x24] sm:$0xe]  ;;  %v3985_v15 = vsel %vm6644_vm8, %v3980_v24, %v3984_v35  ;;  %v3998_v62 = vrot.slane %v3996_v13, 5  ;;  %6283 = vmatmul.mubr.msk.bf16.gmra.mxu0 %vm552_vm2, %v6446_v59  ;;  %v4008_v13 = vrot.slane %v4006_v60, 5 }
 0x100   : > { %v7415_v9 = vadd.f32 %v6077_v27, %v7168_v28  ;;  %v6093_v43 = vpop.f32.mrf.mxu1  ;;  %v7433_v19 = vcombine.low %v3975_v21, %v3985_v15  ;;  %v5790_v35 = vrot.slane %v4641_v54, 9  ;;  %v4716_v27 = vrot.slane %v3919_v4, 5  ;;  %6286 = vmatprep.mubr.msk.bf16.mxu0 %vm552_vm2, %v6447_v12 }
 0x101   : > { %8203 = vst [vmem:[#allocation9_spill] sm:$0xff] %v7412_v26  ;;  %v7424_v38 = vadd.f32 %v6093_v43, %v7168_v28  ;;  %v690_v34 = vpop.f32.mrf.mxu0  ;;  %v3993_v26 = vor.u32 %v3992_v56, %v3989_v53  ;;  %v4002_v53 = vrot.slane %v4000_v17, 4  ;;  %v4713_v56 = vrot.slane %v3918_v46, 5 }
 0x102   : > { %v7431_v33 = vadd.f32 %v7168_v28, %v690_v34  ;;  %v754_v36 = vpop.f32.mrf.mxu1  ;;  %v3921_v34 = vld [vmem:[#allocation2 + $0x34] sm:$0xf]  ;;  %v4014_v54 = vshll.u32 %v3920_v55, 16  ;;  %v8206_v59 = vcombine.low %v7263_v3, %v7283_v18  ;;  %v4013_v12 = vrot.slane %v4011_v47, 4 }
 0x103   : > { %8204 = vst [vmem:[#allocation10_spill] sm:$0xff] %v7424_v38  ;;  %v7436_v43 = vadd.f32 %v7168_v28, %v754_v36  ;;  %v6132_v38 = vpop.f32.mrf.mxu0  ;;  %v3994_v40 = vrot.slane %v3993_v26, 4  ;;  %v7443_v26 = vld [vmem:[#allocation2 + $0x38] sm:$0x1]  ;;  %v4003_v17 = vor.u32 %v4002_v53, %v3998_v62  ;;  %v7451_v46 = vsel %vm6650_vm9, %v5790_v35, %v4713_v56 }
 0x104   : > { %v6098_v24 = vpop.f32.mrf.mxu1  ;;  %6253 = vmatmul.mubr.msk.bf16.gmra.mxu1 %vm552_vm2, %v8206_v59  ;;  %v4715_v4 = vrot.slane %v4713_v56, 4  ;;  %v8207_v60 = vcombine.low %v7295_v22, %v7307_v8  ;;  %v4016_v18 = vrot.slane %v4014_v54, 5  ;;  %v4020_v36 = vshll.u32 %v3921_v34, 16  ;;  %v6449_v22 = vld [vmem:[#allocation2 + $0xa8] sm:$0xff]   ;;  %v4642_v59 = vld [vmem:[#allocation2 + $0x30] sm:$0xe] }
 0x105   : > { %8205 = vst [vmem:[#allocation11_spill] sm:$0xff] %v7436_v43  ;;  %v1497_v21 = vadd.f32 %v6098_v24, %v7190_v10  ;;  %v3999_v28 = vsel %vm6644_vm8, %v3994_v40, %v3998_v62  ;;  %v1841_v15 = vpop.f32.mrf.mxu0  ;;  %v6448_v62 = vld [vmem:[#allocation2 + $0x9c] sm:$0xff]   ;;  %v4004_v24 = vrot.slane %v4003_v17, 4  ;;  %v4024_v47 = vshrl.u32 %v3921_v34, 16 }
 0x106   : > { %v1368_v10 = vpop.f32.mrf.mxu1  ;;  %6256 = vmatprep.mubr.msk.bf16.mxu1 %vm552_vm2, %v8207_v60  ;;  %v7462_v35 = vsel %vm6650_vm9, %v4715_v4, %v4716_v27  ;;  %v4030_v56 = vshll.u32 %v7443_v26, 16  ;;  %v4017_v54 = vor.u32 %v4016_v18, %v4013_v12  ;;  %v4022_v4 = vrot.slane %v4020_v36, 5  ;;  %v3924_v8 = vld [vmem:[#allocation2 + $0x40] sm:$0xf] }
 0x107   : > { %v7457_v40 = vadd.f32 %v6132_v38, %v1497_v21  ;;  %v1495_v55 = vadd.f32 %v1368_v10, %v7212_v51  ;;  %v6133_v3 = vpop.f32.mrf.mxu0  ;;  %v4009_v17 = vsel %vm6644_vm8, %v4004_v24, %v4008_v13  ;;  %v4026_v10 = vrot.slane %v4024_v47, 4  ;;  %6287 = vmatmul.mubr.msk.bf16.gmra.mxu0 %vm552_vm2, %v6448_v62  ;;  %v3925_v24 = vld [vmem:[#allocation2 + $0x44] sm:$0x1] }
 0x108   : > { %v6099_v53 = vpop.f32.mrf.mxu1  ;;  %v4032_v60 = vrot.slane %v4030_v56, 5  ;;  %v7472_v43 = vcombine.low %v3999_v28, %v4009_v17  ;;  %v5791_v12 = vrot.slane %v4642_v59, 9  ;;  %v4720_v18 = vrot.slane %v3921_v34, 5  ;;  %6290 = vmatprep.mubr.msk.bf16.mxu0 %vm552_vm2, %v6449_v22  ;;  %v6450_v17 = vld [vmem:[#allocation2 + $0xb4] sm:$0xff]  }
 0x109   : > { %8208 = vst [vmem:[#allocation12_spill] sm:$0xff] %v7457_v40  ;;  %v7467_v38 = vadd.f32 %v1841_v15, %v1495_v55  ;;  %v1498_v51 = vadd.f32 %v6099_v53, %v7222_v49  ;;  %v1844_v21 = vpop.f32.mrf.mxu0  ;;  %v3923_v40 = vld [vmem:[#allocation2 + $0x3c] sm:$0xf]  ;;  %v4018_v55 = vrot.slane %v4017_v54, 4  ;;  %v4027_v49 = vor.u32 %v4026_v10, %v4022_v4 }
 0x10a   : > { %v1371_v27 = vpop.f32.mrf.mxu1  ;;  %v4723_v13 = vrot.slane %v7443_v26, 5  ;;  %v4035_v53 = vshrl.u32 %v3923_v40, 16  ;;  %v8209_v47 = vcombine.low %v7318_v16, %v7336_v50  ;;  %v7490_v34 = vsel %vm6650_vm9, %v5791_v12, %v4720_v18  ;;  %v4643_v50 = vld [vmem:[#allocation2 + $0x3c] sm:$0xe] }
 0x10b   : > { %v7474_v32 = vadd.f32 %v6133_v3, %v1498_v51  ;;  %v1496_v15 = vadd.f32 %v1371_v27, %v7234_v2  ;;  %v4023_v28 = vsel %vm6644_vm8, %v4018_v55, %v4022_v4  ;;  %v6136_v3 = vpop.f32.mrf.mxu0  ;;  %v4038_v2 = vshll.u32 %v3923_v40, 16 }
 0x10c   : > { %6257 = vmatmul.mubr.msk.bf16.gmra.mxu1 %vm552_vm2, %v8209_v47  ;;  %v4028_v62 = vrot.slane %v4027_v49, 4  ;;  %v4722_v26 = vrot.slane %v4720_v18, 4  ;;  %v6102_v56 = vpop.f32.mrf.mxu1  ;;  %v4044_v22 = vshll.u32 %v3924_v8, 16  ;;  %v8210_v51 = vcombine.low %v7327_v45, %v7351_v42  ;;  %v6451_v42 = vld [vmem:[#allocation2 + $0xc0] sm:$0xff]   ;;  %v3926_v18 = vld [vmem:[#allocation2 + $0x48] sm:$0xf] }
 0x10d   : > { %v7480_v36 = vadd.f32 %v1844_v21, %v1496_v15  ;;  %v1501_v40 = vadd.f32 %v6102_v56, %v7255_v5  ;;  %v4037_v21 = vrot.slane %v4035_v53, 4  ;;  %v4040_v54 = vrot.slane %v4038_v2, 5  ;;  %v1857_v59 = vpop.f32.mrf.mxu0 }
 0x10e   : > { %6260 = vmatprep.mubr.msk.bf16.mxu1 %vm552_vm2, %v8210_v51  ;;  %v4048_v16 = vshrl.u32 %v3924_v8, 16  ;;  %v4033_v27 = vsel %vm6644_vm8, %v4028_v62, %v4032_v60  ;;  %v7501_v4 = vsel %vm6650_vm9, %v4722_v26, %v4723_v13  ;;  %v4046_v10 = vrot.slane %v4044_v22, 5  ;;  %v1384_v45 = vpop.f32.mrf.mxu1 }
 0x10f   : > { %v4054_v15 = vshll.u32 %v3925_v24, 16  ;;  %v7503_v55 = vcombine.low %v4023_v28, %v4033_v27  ;;  %v5808_v5 = vcombine.low %v7490_v34, %v7501_v4  ;;  %v7507_v49 = vadd.f32 %v6136_v3, %v1501_v40  ;;  %v6137_v13 = vpop.f32.mrf.mxu0  ;;  %6291 = vmatmul.mubr.msk.bf16.gmra.mxu0 %vm552_vm2, %v6450_v17  ;;  %v4644_v17 = vld [vmem:[#allocation2 + $0x48] sm:$0xe] }
 0x110   : > { %v4041_v12 = vor.u32 %v4040_v54, %v4037_v21  ;;  %v4050_v53 = vrot.slane %v4048_v16, 4  ;;  %v5792_v60 = vrot.slane %v4643_v50, 9  ;;  %v4727_v47 = vrot.slane %v3924_v8, 5  ;;  %v6103_v62 = vpop.f32.mrf.mxu1  ;;  %v3927_v54 = vld [vmem:[#allocation2 + $0x4c] sm:$0xf]  ;;  %6294 = vmatprep.mubr.msk.bf16.mxu0 %vm552_vm2, %v6451_v42 }
 0x111   : > { %v4056_v2 = vrot.slane %v4054_v15, 5  ;;  %v4730_v56 = vrot.slane %v3925_v24, 5  ;;  %v1499_v22 = vadd.f32 %v1384_v45, %v7274_v29  ;;  %v1502_v28 = vadd.f32 %v6103_v62, %v7291_v39  ;;  %v3928_v50 = vld [vmem:[#allocation2 + $0x50] sm:$0x1]  ;;  %v1860_v42 = vpop.f32.mrf.mxu0 }
 0x112   : > { %v4042_v26 = vrot.slane %v4041_v12, 4  ;;  %v4051_v51 = vor.u32 %v4050_v53, %v4046_v10  ;;  %v7514_v3 = vsel %vm6650_vm9, %v5792_v60, %v4727_v47  ;;  %v4729_v40 = vrot.slane %v4727_v47, 4  ;;  %v1387_v21 = vpop.f32.mrf.mxu1 }
 0x113   : > { %v4059_v16 = vshrl.u32 %v3926_v18, 16  ;;  %v7519_v24 = vadd.f32 %v1857_v59, %v1499_v22  ;;  %v7521_v29 = vadd.f32 %v6137_v13, %v1502_v28  ;;  %v1500_v39 = vadd.f32 %v1387_v21, %v7303_v63 }
 0x114   : > { %v4047_v8 = vsel %vm6644_vm8, %v4042_v26, %v4046_v10  ;;  %v8211_v27 = vcombine.low %v7366_v11, %v7376_v23  ;;  %v4052_v15 = vrot.slane %v4051_v51, 4  ;;  %v7530_v45 = vsel %vm6650_vm9, %v4729_v40, %v4730_v56  ;;  %v6452_v23 = vld [vmem:[#allocation2 + $0xcc] sm:$0xff]   ;;  %v3929_v26 = vld [vmem:[#allocation2 + $0x54] sm:$0xf]  ;;  %v6106_v28 = vpop.f32.mrf.mxu1  ;;  %v3930_v51 = vld [vmem:[#allocation2 + $0x58] sm:$0xf] }
 0x115   : > { %v4061_v10 = vrot.slane %v4059_v16, 4  ;;  %v4062_v59 = vshll.u32 %v3926_v18, 16  ;;  %v7536_v12 = vadd.f32 %v1860_v42, %v1500_v39  ;;  %v4068_v53 = vshll.u32 %v3927_v54, 16 }
 0x116   : > { %6261 = vmatmul.mubr.msk.bf16.gmra.mxu1 %vm552_vm2, %v8211_v27  ;;  %v4072_v11 = vshrl.u32 %v3927_v54, 16  ;;  %v4057_v60 = vsel %vm6644_vm8, %v4052_v15, %v4056_v2  ;;  %v4078_v62 = vshll.u32 %v3928_v50, 16  ;;  %v5793_v13 = vrot.slane %v4644_v17, 9  ;;  %v6140_v27 = vpop.f32.mrf.mxu0  ;;  %v3931_v15 = vld [vmem:[#allocation2 + $0x5c] sm:$0x1] }
 0x117   : > { %6300 = vmatprep.mubr.msk.bf16.mxu1 %vm552_vm2, %v7433_v19  ;;  %v4064_v47 = vrot.slane %v4062_v59, 5  ;;  %v7540_v56 = vcombine.low %v4047_v8, %v4057_v60  ;;  %v4070_v18 = vrot.slane %v4068_v53, 5  ;;  %v4734_v19 = vrot.slane %v3927_v54, 5  ;;  %v1400_v59 = vpop.f32.mrf.mxu1  ;;  %6295 = vmatmul.mubr.msk.bf16.gmra.mxu0 %vm552_vm2, %v6452_v23 }
 0x118   : > { %v4074_v22 = vrot.slane %v4072_v11, 4  ;;  %v4080_v21 = vrot.slane %v4078_v62, 5  ;;  %v4737_v16 = vrot.slane %v3928_v50, 5  ;;  %v1505_v39 = vadd.f32 %v6106_v28, %v7323_v37  ;;  %v4645_v50 = vld [vmem:[#allocation2 + $0x54] sm:$0xe]  ;;  %v1873_v60 = vpop.f32.mrf.mxu0 }
 0x119   : > { %v4065_v40 = vor.u32 %v4064_v47, %v4061_v10  ;;  %v7545_v2 = vsel %vm6650_vm9, %v5793_v13, %v4734_v19  ;;  %v4736_v17 = vrot.slane %v4734_v19, 4  ;;  %v4083_v8 = vshrl.u32 %v3929_v26, 16  ;;  %v6107_v23 = vpop.f32.mrf.mxu1 }
 0x11a   : > { %v4075_v42 = vor.u32 %v4074_v22, %v4070_v18  ;;  %v7548_v53 = vadd.f32 %v6140_v27, %v1505_v39  ;;  %v4086_v10 = vshll.u32 %v3929_v26, 16  ;;  %v4092_v11 = vshll.u32 %v3930_v51, 16  ;;  %v6141_v28 = vpop.f32.mrf.mxu0 }
 0x11b   : > { %v4066_v54 = vrot.slane %v4065_v40, 4  ;;  %v8212_v37 = vcombine.low %v7405_v44, %v7421_v31  ;;  %v7556_v62 = vsel %vm6650_vm9, %v4736_v17, %v4737_v16  ;;  %v4085_v13 = vrot.slane %v4083_v8, 4 }
 0x11c   : > { %v4076_v47 = vrot.slane %v4075_v42, 4  ;;  %v4096_v22 = vshrl.u32 %v3930_v51, 16  ;;  %v4088_v44 = vrot.slane %v4086_v10, 5  ;;  %v4094_v31 = vrot.slane %v4092_v11, 5  ;;  %v1403_v42 = vpop.f32.mrf.mxu1 }
 0x11d   : > { %6334 = vmatprep.mubr.msk.bf16.mxu0 %vm552_vm2, %v8212_v37  ;;  %v4071_v26 = vsel %vm6644_vm8, %v4066_v54, %v4070_v18  ;;  %v4102_v39 = vshll.u32 %v3931_v15, 16  ;;  %v5794_v27 = vrot.slane %v4645_v50, 9  ;;  %v4741_v8 = vrot.slane %v3930_v51, 5  ;;  %v3932_v54 = vld [vmem:[#allocation2 + $0x60] sm:$0xf] }
 0x11e   : > { %6301 = vmatmul.mubr.msk.bf16.vlgmr.msra.gmra.mxu1 %vm552_vm2, %v7472_v43  ;;  %v4081_v40 = vsel %vm6644_vm8, %v4076_v47, %v4080_v21  ;;  %v4098_v16 = vrot.slane %v4096_v22, 4  ;;  %v4089_v17 = vor.u32 %v4088_v44, %v4085_v13  ;;  %v4744_v18 = vrot.slane %v3931_v15, 5  ;;  %v1876_v47 = vpop.f32.mrf.mxu0  ;;  %v3933_v22 = vld [vmem:[#allocation2 + $0x64] sm:$0xf] }
 0x11f   : > { %6304 = vmatprep.mubr.msk.bf16.mxu1 %vm552_vm2, %v7503_v55  ;;  %v5761_v43 = vcombine.low %v4071_v26, %v4081_v40  ;;  %v4104_v19 = vrot.slane %v4102_v39, 5  ;;  %v1503_v10 = vadd.f32 %v1400_v59, %v7347_v14  ;;  %v1506_v11 = vadd.f32 %v6107_v23, %v7369_v30  ;;  %v3934_v26 = vld [vmem:[#allocation2 + $0x68] sm:$0x1]  ;;  %v4646_v23 = vld [vmem:[#allocation2 + $0x60] sm:$0xe] }
 0x120   : > { %v4099_v37 = vor.u32 %v4098_v16, %v4094_v31  ;;  %v4090_v63 = vrot.slane %v4089_v17, 4  ;;  %v7572_v55 = vsel %vm6650_vm9, %v5794_v27, %v4741_v8  ;;  %v4743_v21 = vrot.slane %v4741_v8, 4  ;;  %v3936_v8 = vld [vmem:[#allocation2 + $0x70] sm:$0xf] }
 0x121   : > { %v1504_v50 = vadd.f32 %v1403_v42, %v7380_v58  ;;  %v7575_v51 = vadd.f32 %v1873_v60, %v1503_v10  ;;  %v7577_v15 = vadd.f32 %v6141_v28, %v1506_v11  ;;  %v4107_v44 = vshrl.u32 %v3932_v54, 16  ;;  %v6144_v27 = vpop.f32.mrf.mxu0  ;;  %v3935_v42 = vld [vmem:[#allocation2 + $0x6c] sm:$0xf] }
 0x122   : > { %v4100_v13 = vrot.slane %v4099_v37, 4  ;;  %v8213_v14 = vcombine.low %v7451_v46, %v7462_v35  ;;  %v4095_v30 = vsel %vm6644_vm8, %v4090_v63, %v4094_v31  ;;  %v7587_v58 = vsel %vm6650_vm9, %v4743_v21, %v4744_v18  ;;  %v6110_v17 = vpop.f32.mrf.mxu1 }
 0x123   : > { %v7589_v59 = vadd.f32 %v1876_v47, %v1504_v50  ;;  %v4110_v60 = vshll.u32 %v3932_v54, 16  ;;  %v5811_v35 = vcombine.low %v7572_v55, %v7587_v58  ;;  %v4109_v63 = vrot.slane %v4107_v44, 4  ;;  %v3942_v58 = vld [vmem:[#allocation2 + $0x88] sm:$0xf] }
 0x124   : > { %6335 = vmatmul.mubr.msk.bf16.vlgmr.msra.gmra.mxu0 %vm552_vm2, %v8213_v14  ;;  %v4105_v46 = vsel %vm6644_vm8, %v4100_v13, %v4104_v19  ;;  %v4116_v31 = vshll.u32 %v3933_v22, 16  ;;  %v4120_v16 = vshrl.u32 %v3933_v22, 16  ;;  %v4126_v39 = vshll.u32 %v3934_v26, 16 }
 0x125   : > { %6338 = vmatprep.mubr.msk.bf16.mxu0 %vm552_vm2, %v5808_v5  ;;  %v5762_v28 = vcombine.low %v4095_v30, %v4105_v46  ;;  %v4112_v40 = vrot.slane %v4110_v60, 5  ;;  %v5795_v4 = vrot.slane %v4646_v23, 9  ;;  %v4748_v5 = vrot.slane %v3933_v22, 5  ;;  %v4647_v30 = vld [vmem:[#allocation2 + $0x6c] sm:$0xe] }
 0x126   : > { %6305 = vmatmul.mubr.msk.bf16.gmra.mxu1 %vm552_vm2, %v7540_v56  ;;  %v4118_v34 = vrot.slane %v4116_v31, 5  ;;  %v4751_v19 = vrot.slane %v3934_v26, 5  ;;  %v4122_v54 = vrot.slane %v4120_v16, 4  ;;  %v4128_v37 = vrot.slane %v4126_v39, 5  ;;  %v1889_v56 = vpop.f32.mrf.mxu0  ;;  %v3937_v26 = vld [vmem:[#allocation2 + $0x74] sm:$0x1] }
 0x127   : > { %6308 = vmatprep.mubr.msk.bf16.mxu1 %vm552_vm2, %v5761_v43  ;;  %v4113_v18 = vor.u32 %v4112_v40, %v4109_v63  ;;  %v1509_v10 = vadd.f32 %v6110_v17, %v7389_v48  ;;  %v7605_v11 = vsel %vm6650_vm9, %v5795_v4, %v4748_v5  ;;  %v4750_v21 = vrot.slane %v4748_v5, 4  ;;  %v1416_v43 = vpop.f32.mrf.mxu1 }
 0x128   : > { %v4131_v50 = vshrl.u32 %v3935_v42, 16  ;;  %v4134_v47 = vshll.u32 %v3935_v42, 16  ;;  %v4123_v44 = vor.u32 %v4122_v54, %v4118_v34  ;;  %v4140_v14 = vshll.u32 %v3936_v8, 16  ;;  %v6145_v60 = vpop.f32.mrf.mxu0 }
 0x129   : > { %v4114_v13 = vrot.slane %v4113_v18, 4  ;;  %v7607_v22 = vadd.f32 %v6144_v27, %v1509_v10  ;;  %v4752_v48 = vsel %vm6650_vm9, %v4750_v21, %v4751_v19  ;;  %v4144_v63 = vshrl.u32 %v3936_v8, 16  ;;  %v6111_v31 = vpop.f32.mrf.mxu1  ;;  %v3938_v21 = vld [vmem:[#allocation2 + $0x78] sm:$0xf] }
 0x12a   : > { %v4133_v23 = vrot.slane %v4131_v50, 4  ;;  %v4136_v46 = vrot.slane %v4134_v47, 5  ;;  %v8214_v40 = vcombine.low %v7514_v3, %v7530_v45  ;;  %v4124_v39 = vrot.slane %v4123_v44, 4 }
 0x12b   : > { %v4119_v16 = vsel %vm6644_vm8, %v4114_v13, %v4118_v34  ;;  %v5812_v27 = vcombine.low %v7605_v11, %v4752_v48  ;;  %v4142_v42 = vrot.slane %v4140_v14, 5  ;;  %v8215_v4 = vcombine.low %v7545_v2, %v7556_v62  ;;  %v1419_v10 = vpop.f32.mrf.mxu1  ;;  %v1892_v11 = vpop.f32.mrf.mxu0  ;;  %v3939_v13 = vld [vmem:[#allocation2 + $0x7c] sm:$0xf] }
 0x12c   : > { %6339 = vmatmul.mubr.msk.bf16.gmra.mxu0 %vm552_vm2, %v8214_v40  ;;  %v4137_v5 = vor.u32 %v4136_v46, %v4133_v23  ;;  %v4146_v19 = vrot.slane %v4144_v63, 4  ;;  %v4150_v17 = vshll.u32 %v3937_v26, 16  ;;  %v5796_v18 = vrot.slane %v4647_v30, 9  ;;  %v3940_v23 = vld [vmem:[#allocation2 + $0x80] sm:$0x1] }
 0x12d   : > { %6342 = vmatprep.mubr.msk.bf16.mxu0 %vm552_vm2, %v8215_v4  ;;  %v4129_v3 = vsel %vm6644_vm8, %v4124_v39, %v4128_v37  ;;  %v4755_v45 = vrot.slane %v3936_v8, 5  ;;  %v4758_v34 = vrot.slane %v3937_v26, 5  ;;  %v1507_v54 = vadd.f32 %v1416_v43, %v7401_v0  ;;  %v4648_v63 = vld [vmem:[#allocation2 + $0x78] sm:$0xe]  ;;  %v6148_v40 = vpop.f32.mrf.mxu0 }
 0x12e   : > { %6309 = vmatmul.mubr.msk.bf16.gmra.mxu1 %vm552_vm2, %v5762_v28  ;;  %v5763_v50 = vcombine.low %v4119_v16, %v4129_v3  ;;  %v4138_v2 = vrot.slane %v4137_v5, 4  ;;  %v4147_v62 = vor.u32 %v4146_v19, %v4142_v42  ;;  %v4152_v47 = vrot.slane %v4150_v17, 5 }
 0x12f   : > { %v7628_v44 = vsel %vm6650_vm9, %v5796_v18, %v4755_v45  ;;  %v4757_v28 = vrot.slane %v4755_v45, 4  ;;  %v7630_v14 = vadd.f32 %v1889_v56, %v1507_v54  ;;  %v1510_v8 = vadd.f32 %v6111_v31, %v7415_v9  ;;  %v1905_v17 = vpop.f32.mrf.mxu0 }
 0x130   : > { %6312 = vmatprep.mubr.msk.bf16.mxu1 %vm552_vm2, %v5763_v50  ;;  %v4143_v0 = vsel %vm6644_vm8, %v4138_v2, %v4142_v42  ;;  %v4148_v37 = vrot.slane %v4147_v62, 4  ;;  %v1508_v43 = vadd.f32 %v1419_v10, %v7431_v33  ;;  %v4155_v26 = vshrl.u32 %v3938_v21, 16  ;;  %v6114_v33 = vpop.f32.mrf.mxu1  ;;  %v3941_v42 = vld [vmem:[#allocation2 + $0x84] sm:$0xf] }
 0x131   : > { %v4759_v30 = vsel %vm6650_vm9, %v4757_v28, %v4758_v34  ;;  %v7639_v48 = vadd.f32 %v6145_v60, %v1510_v8  ;;  %v4158_v46 = vshll.u32 %v3938_v21, 16  ;;  %v4164_v56 = vshll.u32 %v3939_v13, 16  ;;  %v6149_v21 = vpop.f32.mrf.mxu0 }
 0x132   : > { %v4153_v9 = vsel %vm6644_vm8, %v4148_v37, %v4152_v47  ;;  %v5813_v31 = vcombine.low %v7628_v44, %v4759_v30  ;;  %v7644_v16 = vadd.f32 %v1892_v11, %v1508_v43  ;;  %v4157_v39 = vrot.slane %v4155_v26, 4  ;;  %v1432_v54 = vpop.f32.mrf.mxu1  ;;  %v4649_v37 = vld [vmem:[#allocation2 + $0x84] sm:$0xe] }
 0x133   : > { %v5764_v60 = vcombine.low %v4143_v0, %v4153_v9  ;;  %v4160_v4 = vrot.slane %v4158_v46, 5  ;;  %v4166_v5 = vrot.slane %v4164_v56, 5  ;;  %v4168_v19 = vshrl.u32 %v3939_v13, 16 }
 0x134   : > { %6343 = vmatmul.mubr.msk.bf16.gmra.mxu0 %vm552_vm2, %v5811_v35  ;;  %v4174_v18 = vshll.u32 %v3940_v23, 16  ;;  %v5797_v3 = vrot.slane %v4648_v63, 9  ;;  %v4762_v45 = vrot.slane %v3939_v13, 5  ;;  %v4765_v34 = vrot.slane %v3940_v23, 5  ;;  %v6115_v44 = vpop.f32.mrf.mxu1 }
 0x135   : > { %6346 = vmatprep.mubr.msk.bf16.mxu0 %vm552_vm2, %v5812_v27  ;;  %v4161_v10 = vor.u32 %v4160_v4, %v4157_v39  ;;  %v4170_v11 = vrot.slane %v4168_v19, 4  ;;  %v1513_v55 = vadd.f32 %v6114_v33, %v7193_v61  ;;  %v4179_v35 = vshrl.u32 %v3941_v42, 16  ;;  %v3943_v27 = vld [vmem:[#allocation2 + $0x8c] sm:$0x1]  ;;  %v1908_v39 = vpop.f32.mrf.mxu0 }
 0x136   : > { %6313 = vmatmul.mubr.msk.bf16.gmra.mxu1 %vm552_vm2, %v5764_v60  ;;  %v4176_v50 = vrot.slane %v4174_v18, 5  ;;  %v4763_v2 = vsel %vm6650_vm9, %v5797_v3, %v4762_v45  ;;  %v4764_v62 = vrot.slane %v4762_v45, 4  ;;  %v4182_v47 = vshll.u32 %v3941_v42, 16  ;;  %v1435_v9 = vpop.f32.mrf.mxu1  ;;  %v3944_v45 = vld [vmem:[#allocation2 + $0x90] sm:$0xf] }
 0x137   : > { %v4162_v13 = vrot.slane %v4161_v10, 4  ;;  %v4171_v28 = vor.u32 %v4170_v11, %v4166_v5  ;;  %v7655_v8 = vadd.f32 %v6148_v40, %v1513_v55  ;;  %v4181_v0 = vrot.slane %v4179_v35, 4 }
 0x138   : > { %v4766_v61 = vsel %vm6650_vm9, %v4764_v62, %v4765_v34  ;;  %v4184_v43 = vrot.slane %v4182_v47, 5  ;;  %v4188_v26 = vshll.u32 %v3942_v58, 16  ;;  %v4192_v30 = vshrl.u32 %v3942_v58, 16 }
 0x139   : > { %v4167_v23 = vsel %vm6644_vm8, %v4162_v13, %v4166_v5  ;;  %v4172_v46 = vrot.slane %v4171_v28, 4  ;;  %v5814_v56 = vcombine.low %v4763_v2, %v4766_v61  ;;  %v4198_v63 = vshll.u32 %v3943_v27, 16  ;;  %v6118_v62 = vpop.f32.mrf.mxu1 }
 0x13a   : > { %v4185_v33 = vor.u32 %v4184_v43, %v4181_v0  ;;  %v4190_v42 = vrot.slane %v4188_v26, 5  ;;  %v4194_v40 = vrot.slane %v4192_v30, 4  ;;  %v5798_v60 = vrot.slane %v4649_v37, 9 }
 0x13b   : > { %v4177_v4 = vsel %vm6644_vm8, %v4172_v46, %v4176_v50  ;;  %v4200_v19 = vrot.slane %v4198_v63, 5  ;;  %v4769_v18 = vrot.slane %v3942_v58, 5  ;;  %v4772_v3 = vrot.slane %v3943_v27, 5  ;;  %v3945_v50 = vld [vmem:[#allocation2 + $0x94] sm:$0xf]  ;;  %v6152_v58 = vpop.f32.mrf.mxu0  ;;  %v1448_v37 = vpop.f32.mrf.mxu1 }
 0x13c   : > { %6347 = vmatmul.mubr.msk.bf16.gmra.mxu0 %vm552_vm2, %v5813_v31  ;;  %v5765_v34 = vcombine.low %v4167_v23, %v4177_v4  ;;  %v4186_v5 = vrot.slane %v4185_v33, 4  ;;  %v4195_v10 = vor.u32 %v4194_v40, %v4190_v42  ;;  %v1511_v11 = vadd.f32 %v1432_v54, %v7219_v41  ;;  %v3946_v41 = vld [vmem:[#allocation2 + $0x98] sm:$0x1]  ;;  %v3948_v4 = vld [vmem:[#allocation2 + $0xa0] sm:$0xf] }
 0x13d   : > { %6350 = vmatprep.mubr.msk.bf16.mxu0 %vm552_vm2, %v5814_v56  ;;  %v4770_v55 = vsel %vm6650_vm9, %v5798_v60, %v4769_v18  ;;  %v4771_v35 = vrot.slane %v4769_v18, 4  ;;  %v1514_v31 = vadd.f32 %v6115_v44, %v7231_v52  ;;  %v1512_v2 = vadd.f32 %v1435_v9, %v7243_v20  ;;  %v4650_v44 = vld [vmem:[#allocation2 + $0x90] sm:$0xe]  ;;  %v7681_v61 = vpop.f32.mrf.mxu0  ;;  %v3947_v9 = vld [vmem:[#allocation2 + $0x9c] sm:$0xf] }
 0x13e   : > { %6316 = vmatprep.mubr.msk.bf16.mxu1 %vm552_vm2, %v5765_v34  ;;  %v4191_v27 = vsel %vm6644_vm8, %v4186_v5, %v4190_v42  ;;  %v4196_v47 = vrot.slane %v4195_v10, 4  ;;  %v7673_v13 = vadd.f32 %v1905_v17, %v1511_v11  ;;  %v4203_v54 = vshrl.u32 %v3944_v45, 16 }
 0x13f   : > { %v4773_v28 = vsel %vm6650_vm9, %v4771_v35, %v4772_v3  ;;  %v7677_v0 = vadd.f32 %v6149_v21, %v1514_v31  ;;  %v7679_v52 = vadd.f32 %v1908_v39, %v1512_v2  ;;  %v4206_v20 = vshll.u32 %v3944_v45, 16  ;;  %v6119_v21 = vpop.f32.mrf.mxu1  ;;  %v6153_v33 = vpop.f32.mrf.mxu0 }
 0x140   : > { %v4201_v43 = vsel %vm6644_vm8, %v4196_v47, %v4200_v19  ;;  %v5815_v26 = vcombine.low %v4770_v55, %v4773_v28  ;;  %v4205_v17 = vrot.slane %v4203_v54, 4  ;;  %v4212_v30 = vshll.u32 %v3945_v50, 16  ;;  %v4651_v47 = vld [vmem:[#allocation2 + $0x9c] sm:$0xe] }
 0x141   : > { %v5766_v23 = vcombine.low %v4191_v27, %v4201_v43  ;;  %v4208_v46 = vrot.slane %v4206_v20, 5  ;;  %v4216_v56 = vshrl.u32 %v3945_v50, 16  ;;  %v4222_v63 = vshll.u32 %v3946_v41, 16  ;;  %v1924_v55 = vpop.f32.mrf.mxu0 }
 0x142   : > { %v4214_v39 = vrot.slane %v4212_v30, 5  ;;  %v5799_v42 = vrot.slane %v4650_v44, 9  ;;  %v4776_v40 = vrot.slane %v3945_v50, 5  ;;  %v4779_v60 = vrot.slane %v3946_v41, 5  ;;  %v3949_v50 = vld [vmem:[#allocation2 + $0xa4] sm:$0x1]  ;;  %v1451_v41 = vpop.f32.mrf.mxu1 }
 0x143   : > { %6317 = vmatmul.mubr.msk.bf16.gmra.mxu1 %vm552_vm2, %v5766_v23  ;;  %v4209_v19 = vor.u32 %v4208_v46, %v4205_v17  ;;  %v4218_v18 = vrot.slane %v4216_v56, 4  ;;  %v4224_v3 = vrot.slane %v4222_v63, 5  ;;  %v1517_v45 = vadd.f32 %v6118_v62, %v7259_v57 }
 0x144   : > { %6351 = vmatmul.mubr.msk.bf16.gmra.mxu0 %vm552_vm2, %v5815_v26  ;;  %v4777_v34 = vsel %vm6650_vm9, %v5799_v42, %v4776_v40  ;;  %v4778_v5 = vrot.slane %v4776_v40, 4  ;;  %v4227_v10 = vshrl.u32 %v3947_v9, 16  ;;  %v4230_v11 = vshll.u32 %v3947_v9, 16  ;;  %v6156_v46 = vpop.f32.mrf.mxu0  ;;  %v3950_v40 = vld [vmem:[#allocation2 + $0xa8] sm:$0xf] }
 0x145   : > { %v4210_v35 = vrot.slane %v4209_v19, 4  ;;  %v4219_v31 = vor.u32 %v4218_v18, %v4214_v39  ;;  %v7690_v2 = vadd.f32 %v6152_v58, %v1517_v45  ;;  %v4236_v27 = vshll.u32 %v3948_v4, 16 }
 0x146   : > { %v4780_v54 = vsel %vm6650_vm9, %v4778_v5, %v4779_v60  ;;  %v4229_v28 = vrot.slane %v4227_v10, 4  ;;  %v4232_v57 = vrot.slane %v4230_v11, 5  ;;  %v4240_v62 = vshrl.u32 %v3948_v4, 16  ;;  %v6122_v60 = vpop.f32.mrf.mxu1  ;;  %v7700_v5 = vpop.f32.mrf.mxu0 }
 0x147   : > { %v4215_v20 = vsel %vm6644_vm8, %v4210_v35, %v4214_v39  ;;  %v4220_v44 = vrot.slane %v4219_v31, 4  ;;  %v5816_v43 = vcombine.low %v4777_v34, %v4780_v54  ;;  %v4238_v26 = vrot.slane %v4236_v27, 5  ;;  %v3951_v34 = vld [vmem:[#allocation2 + $0xac] sm:$0xf]  ;;  %v8216_v31 = vld [vmem:[#allocation3_spill] sm:$0xff] }
 0x148   : > { %v4233_v17 = vor.u32 %v4232_v57, %v4229_v28  ;;  %v4242_v30 = vrot.slane %v4240_v62, 4  ;;  %v4246_v58 = vshll.u32 %v3949_v50, 16  ;;  %v5800_v23 = vrot.slane %v4651_v47, 9  ;;  %v7708_v35 = vpop.f32.mrf.mxu1  ;;  %v7720_v62 = vpop.f32.mrf.mxu0 }
 0x149   : > { %v4225_v56 = vsel %vm6644_vm8, %v4220_v44, %v4224_v3  ;;  %6354 = vmatprep.mubr.msk.bf16.mxu0 %vm552_vm2, %v5816_v43  ;;  %v4783_v63 = vrot.slane %v3948_v4, 5  ;;  %v4786_v9 = vrot.slane %v3949_v50, 5  ;;  %v1515_v42 = vadd.f32 %v1448_v37, %v7286_v25 }
 0x14a   : > { %v5767_v39 = vcombine.low %v4215_v20, %v4225_v56  ;;  %v4234_v19 = vrot.slane %v4233_v17, 4  ;;  %v4243_v18 = vor.u32 %v4242_v30, %v4238_v26  ;;  %v4248_v45 = vrot.slane %v4246_v58, 5 }
 0x14b   : > { %v4784_v10 = vsel %vm6650_vm9, %v5800_v23, %v4783_v63  ;;  %v4785_v11 = vrot.slane %v4783_v63, 4  ;;  %v7705_v3 = vadd.f32 %v7681_v61, %v1515_v42  ;;  %v1518_v4 = vadd.f32 %v6119_v21, %v7298_v7  ;;  %v3952_v61 = vld [vmem:[#allocation2 + $0xb0] sm:$0x1]  ;;  %v4652_v7 = vld [vmem:[#allocation2 + $0xa8] sm:$0xe]  ;;  %v7718_v21 = vpop.f32.mrf.mxu1 }
 0x14c   : > { %6320 = vmatprep.mubr.msk.bf16.mxu1 %vm552_vm2, %v5767_v39  ;;  %v4239_v25 = vsel %vm6644_vm8, %v4234_v19, %v4238_v26  ;;  %v4244_v37 = vrot.slane %v4243_v18, 4  ;;  %v1516_v50 = vadd.f32 %v1451_v41, %v8216_v31  ;;  %v4251_v27 = vshrl.u32 %v3950_v40, 16  ;;  %v3953_v26 = vld [vmem:[#allocation2 + $0xb4] sm:$0xf]  ;;  %v8218_v19 = vld [vmem:[#allocation4_spill] sm:$0xff] }
 0x14d   : > { %v4787_v47 = vsel %vm6650_vm9, %v4785_v11, %v4786_v9  ;;  %v7716_v54 = vadd.f32 %v6153_v33, %v1518_v4  ;;  %v4254_v28 = vshll.u32 %v3950_v40, 16  ;;  %v4260_v57 = vshll.u32 %v3951_v34, 16  ;;  %v1467_v42 = vpop.f32.mrf.mxu1  ;;  %v3954_v18 = vld [vmem:[#allocation2 + $0xb8] sm:$0xf] }
 0x14e   : > { %v4249_v20 = vsel %vm6644_vm8, %v4244_v37, %v4248_v45  ;;  %v5817_v44 = vcombine.low %v4784_v10, %v4787_v47  ;;  %v7724_v43 = vadd.f32 %v1924_v55, %v1516_v50  ;;  %v4253_v41 = vrot.slane %v4251_v27, 4  ;;  %v1940_v10 = vpop.f32.mrf.mxu0  ;;  %v3955_v37 = vld [vmem:[#allocation2 + $0xbc] sm:$0x1] }
 0x14f   : > { %v5768_v17 = vcombine.low %v4239_v25, %v4249_v20  ;;  %v4256_v30 = vrot.slane %v4254_v28, 5  ;;  %v4262_v33 = vrot.slane %v4260_v57, 5  ;;  %v4264_v58 = vshrl.u32 %v3951_v34, 16 }
 0x150   : > { %8217 = vst [vmem:[#allocation3_spill] sm:$0xff] %v7724_v43  ;;  %6355 = vmatmul.mubr.msk.bf16.gmra.mxu0 %vm552_vm2, %v5817_v44  ;;  %v4270_v23 = vshll.u32 %v3952_v61, 16  ;;  %v5801_v56 = vrot.slane %v4652_v7, 9  ;;  %v4790_v63 = vrot.slane %v3951_v34, 5  ;;  %v4793_v9 = vrot.slane %v3952_v61, 5  ;;  %v7735_v20 = vpop.f32.mrf.mxu1 }
 0x151   : > { %6321 = vmatmul.mubr.msk.bf16.gmra.mxu1 %vm552_vm2, %v5768_v17  ;;  %v4257_v40 = vor.u32 %v4256_v30, %v4253_v41  ;;  %v4266_v39 = vrot.slane %v4264_v58, 4  ;;  %v1521_v55 = vadd.f32 %v6122_v60, %v8218_v19  ;;  %v4275_v45 = vshrl.u32 %v3953_v26, 16  ;;  %v4653_v61 = vld [vmem:[#allocation2 + $0xb4] sm:$0xe]  ;;  %v7739_v30 = vpop.f32.mrf.mxu0 }
 0x152   : > { %v4272_v11 = vrot.slane %v4270_v23, 5  ;;  %v4791_v4 = vsel %vm6650_vm9, %v5801_v56, %v4790_v63  ;;  %v4792_v25 = vrot.slane %v4790_v63, 4  ;;  %v4278_v31 = vshll.u32 %v3953_v26, 16  ;;  %v7741_v63 = vpop.f32.mrf.mxu1 }
 0x153   : > { %v4258_v50 = vrot.slane %v4257_v40, 4  ;;  %v4267_v34 = vor.u32 %v4266_v39, %v4262_v33  ;;  %v7731_v27 = vadd.f32 %v6156_v46, %v1521_v55  ;;  %v4277_v47 = vrot.slane %v4275_v45, 4  ;;  %v7746_v55 = vpop.f32.mrf.mxu0 }
 0x154   : > { %v4794_v28 = vsel %vm6650_vm9, %v4792_v25, %v4793_v9  ;;  %v4280_v60 = vrot.slane %v4278_v31, 5  ;;  %v4284_v57 = vshll.u32 %v3954_v18, 16  ;;  %v4288_v7 = vshrl.u32 %v3954_v18, 16  ;;  %v8220_v31 = vld [vmem:[#allocation5_spill] sm:$0xff] }
 0x155   : > { %8219 = vst [vmem:[#allocation4_spill] sm:$0xff] %v7731_v27  ;;  %v4263_v44 = vsel %vm6644_vm8, %v4258_v50, %v4262_v33  ;;  %v4268_v41 = vrot.slane %v4267_v34, 4  ;;  %v5818_v17 = vcombine.low %v4791_v4, %v4794_v28  ;;  %v4294_v26 = vshll.u32 %v3955_v37, 16  ;;  %v3956_v33 = vld [vmem:[#allocation2 + $0xc0] sm:$0xf]  ;;  %v7750_v34 = vpop.f32.mrf.mxu1 }
 0x156   : > { %v4281_v46 = vor.u32 %v4280_v60, %v4277_v47  ;;  %v4286_v58 = vrot.slane %v4284_v57, 5  ;;  %v4290_v23 = vrot.slane %v4288_v7, 4  ;;  %v5802_v56 = vrot.slane %v4653_v61, 9  ;;  %v8221_v61 = vld [vmem:[#allocation6_spill] sm:$0xff]  ;;  %v3957_v60 = vld [vmem:[#allocation2 + $0xc4] sm:$0xf]  ;;  %v7757_v57 = vpop.f32.mrf.mxu0 }
 0x157   : > { %v4273_v9 = vsel %vm6644_vm8, %v4268_v41, %v4272_v11  ;;  %6358 = vmatprep.mubr.msk.bf16.mxu0 %vm552_vm2, %v5818_v17  ;;  %v4296_v40 = vrot.slane %v4294_v26, 5  ;;  %v4797_v39 = vrot.slane %v3954_v18, 5  ;;  %v4800_v19 = vrot.slane %v3955_v37, 5  ;;  %v8222_v18 = vld [vmem:[#allocation7_spill] sm:$0xff]  ;;  %v3958_v41 = vld [vmem:[#allocation2 + $0xc8] sm:$0x1]  ;;  %v7765_v26 = vpop.f32.mrf.mxu1 }
 0x158   : > { %v5769_v45 = vcombine.low %v4263_v44, %v4273_v9  ;;  %v4282_v4 = vrot.slane %v4281_v46, 4  ;;  %v4291_v25 = vor.u32 %v4290_v23, %v4286_v58  ;;  %v1519_v50 = vadd.f32 %v7708_v35, %v8220_v31  ;;  %v7774_v9 = vpop.f32.mrf.mxu0 }
 0x159   : > { %v4798_v47 = vsel %vm6650_vm9, %v5802_v56, %v4797_v39  ;;  %v4799_v11 = vrot.slane %v4797_v39, 4  ;;  %v1522_v28 = vadd.f32 %v7718_v21, %v8221_v61  ;;  %v1520_v37 = vadd.f32 %v1467_v42, %v8222_v18  ;;  %v4654_v56 = vld [vmem:[#allocation2 + $0xc0] sm:$0xe] }
 0x15a   : > { %6324 = vmatprep.mubr.msk.bf16.mxu1 %vm552_vm2, %v5769_v45  ;;  %v4287_v7 = vsel %vm6644_vm8, %v4282_v4, %v4286_v58  ;;  %v4292_v35 = vrot.slane %v4291_v25, 4  ;;  %v7763_v44 = vadd.f32 %v7700_v5, %v1519_v50  ;;  %v4299_v17 = vshrl.u32 %v3956_v33, 16  ;;  %v7778_v4 = vpop.f32.mrf.mxu1 }
 0x15b   : > { %v4801_v21 = vsel %vm6650_vm9, %v4799_v11, %v4800_v19  ;;  %v7770_v42 = vadd.f32 %v7720_v62, %v1522_v28  ;;  %v7772_v46 = vadd.f32 %v1940_v10, %v1520_v37  ;;  %v4302_v23 = vshll.u32 %v3956_v33, 16  ;;  %v3959_v62 = vld [vmem:[#allocation2 + $0xcc] sm:$0xf]  ;;  %v3960_v28 = vld [vmem:[#allocation2 + $0xd0] sm:$0xf] }
 0x15c   : > { %8223 = vst [vmem:[#allocation5_spill] sm:$0xff] %v7763_v44  ;;  %v4297_v5 = vsel %vm6644_vm8, %v4292_v35, %v4296_v40  ;;  %v5819_v58 = vcombine.low %v4798_v47, %v4801_v21  ;;  %v4301_v39 = vrot.slane %v4299_v17, 4  ;;  %v4308_v45 = vshll.u32 %v3957_v60, 16  ;;  %v2200_v18 = vpop.f32.mrf.mxu1  ;;  %v8226_v35 = vld [vmem:[#allocation8_spill] sm:$0xff]  ;;  %v6200_v17 = vpop.f32.mrf.mxu0 }
 0x15d   : > { %8224 = vst [vmem:[#allocation6_spill] sm:$0xff] %v7770_v42  ;;  %8225 = vst [vmem:[#allocation7_spill] sm:$0xff] %v7772_v46  ;;  %v5770_v25 = vcombine.low %v4287_v7, %v4297_v5  ;;  %v4304_v31 = vrot.slane %v4302_v23, 5  ;;  %v4312_v19 = vshrl.u32 %v3957_v60, 16  ;;  %v4318_v50 = vshll.u32 %v3958_v41, 16 }
 0x15e   : > { %6359 = vmatmul.mubr.msk.bf16.gmra.mxu0 %vm552_vm2, %v5819_v58  ;;  %v4310_v10 = vrot.slane %v4308_v45, 5  ;;  %v5803_v33 = vrot.slane %v4654_v56, 9  ;;  %v4804_v11 = vrot.slane %v3957_v60, 5  ;;  %v4807_v61 = vrot.slane %v3958_v41, 5  ;;  %v6167_v56 = vpop.f32.mrf.mxu1 }
 0x15f   : > { %6325 = vmatmul.mubr.msk.bf16.gmra.mxu1 %vm552_vm2, %v5770_v25  ;;  %v4305_v40 = vor.u32 %v4304_v31, %v4301_v39  ;;  %v4314_v47 = vrot.slane %v4312_v19, 4  ;;  %v4320_v37 = vrot.slane %v4318_v50, 5  ;;  %v1525_v7 = vadd.f32 %v7735_v20, %v8226_v35  ;;  %v3961_v25 = vld [vmem:[#allocation2 + $0xd4] sm:$0x1]  ;;  %v4655_v31 = vld [vmem:[#allocation2 + $0xcc] sm:$0xe]  ;;  %v2926_v19 = vpop.f32.mrf.mxu0 }
 0x160   : > { %v4805_v21 = vsel %vm6650_vm9, %v5803_v33, %v4804_v11  ;;  %v4806_v23 = vrot.slane %v4804_v11, 4  ;;  %v4323_v5 = vshrl.u32 %v3959_v62, 16  ;;  %v4326_v58 = vshll.u32 %v3959_v62, 16  ;;  %v2203_v33 = vpop.f32.mrf.mxu1 }
 0x161   : > { %v4306_v60 = vrot.slane %v4305_v40, 4  ;;  %v4315_v41 = vor.u32 %v4314_v47, %v4310_v10  ;;  %v7787_v45 = vadd.f32 %v7739_v30, %v1525_v7  ;;  %v4332_v39 = vshll.u32 %v3960_v28, 16  ;;  %v6201_v42 = vpop.f32.mrf.mxu0 }
 0x162   : > { %v4808_v20 = vsel %vm6650_vm9, %v4806_v23, %v4807_v61  ;;  %v4325_v50 = vrot.slane %v4323_v5, 4  ;;  %v4328_v35 = vrot.slane %v4326_v58, 5  ;;  %v4336_v46 = vshrl.u32 %v3960_v28, 16  ;;  %v6170_v27 = vpop.f32.mrf.mxu1  ;;  %v8228_v5 = vld [vmem:[#allocation9_spill] sm:$0xff] }
 0x163   : > { %8227 = vst [vmem:[#allocation8_spill] sm:$0xff] %v7787_v45  ;;  %v4311_v62 = vsel %vm6644_vm8, %v4306_v60, %v4310_v10  ;;  %v4316_v11 = vrot.slane %v4315_v41, 4  ;;  %v5820_v40 = vcombine.low %v4805_v21, %v4808_v20  ;;  %v4334_v47 = vrot.slane %v4332_v39, 5  ;;  %v2929_v10 = vpop.f32.mrf.mxu0 }
 0x164   : > { %v4329_v30 = vor.u32 %v4328_v35, %v4325_v50  ;;  %v4338_v7 = vrot.slane %v4336_v46, 4  ;;  %v4342_v45 = vshll.u32 %v3961_v25, 16  ;;  %v5804_v44 = vrot.slane %v4655_v31, 9  ;;  %v2216_v20 = vpop.f32.mrf.mxu1  ;;  %v8231_v35 = vld [vmem:[#allocation12_spill] sm:$0xff] }
 0x165   : > { %v4321_v43 = vsel %vm6644_vm8, %v4316_v11, %v4320_v37  ;;  %6362 = vmatprep.mubr.msk.bf16.mxu0 %vm552_vm2, %v5820_v40  ;;  %v4811_v61 = vrot.slane %v3960_v28, 5  ;;  %v4814_v23 = vrot.slane %v3961_v25, 5  ;;  %v1523_v58 = vadd.f32 %v7741_v63, %v8228_v5  ;;  %v8229_v37 = vld [vmem:[#allocation10_spill] sm:$0xff]  ;;  %v8230_v25 = vld [vmem:[#allocation11_spill] sm:$0xff] }
 0x166   : > { %v5771_v60 = vcombine.low %v4311_v62, %v4321_v43  ;;  %v4330_v21 = vrot.slane %v4329_v30, 4  ;;  %v4339_v41 = vor.u32 %v4338_v7, %v4334_v47  ;;  %v4344_v39 = vrot.slane %v4342_v45, 5  ;;  %v6204_v30 = vpop.f32.mrf.mxu0 }
 0x167   : > { %v4812_v46 = vsel %vm6650_vm9, %v5804_v44, %v4811_v61  ;;  %v4813_v31 = vrot.slane %v4811_v61, 4  ;;  %v7801_v50 = vadd.f32 %v7746_v55, %v1523_v58  ;;  %v1526_v28 = vadd.f32 %v7750_v34, %v8229_v37  ;;  %v6171_v44 = vpop.f32.mrf.mxu1 }
 0x168   : > { %6328 = vmatprep.mubr.msk.bf16.mxu1 %vm552_vm2, %v5771_v60  ;;  %v4335_v63 = vsel %vm6644_vm8, %v4330_v21, %v4334_v47  ;;  %v4340_v43 = vrot.slane %v4339_v41, 4  ;;  %v1524_v45 = vadd.f32 %v7765_v26, %v8230_v25  ;;  %v2329_v62 = vadd.f32 %v7778_v4, %v8231_v35 }
 0x169   : > { %v4815_v55 = vsel %vm6650_vm9, %v4813_v31, %v4814_v23  ;;  %v7815_v11 = vadd.f32 %v7757_v57, %v1526_v28  ;;  %v2327_v34 = vadd.f32 %v2200_v18, %v7467_v38  ;;  %v2330_v40 = vadd.f32 %v6167_v56, %v7474_v32  ;;  %v2219_v61 = vpop.f32.mrf.mxu1  ;;  %v2942_v18 = vpop.f32.mrf.mxu0 }
 0x16a   : > { %v4345_v47 = vsel %vm6644_vm8, %v4340_v43, %v4344_v39  ;;  %v5821_v7 = vcombine.low %v4812_v46, %v4815_v55  ;;  %v7822_v26 = vadd.f32 %v7774_v9, %v1524_v45  ;;  %v7824_v4 = vadd.f32 %v6200_v17, %v2329_v62 }
 0x16b   : > { %v5772_v6 = vcombine.low %v4335_v63, %v4345_v47  ;;  %v7826_v23 = vadd.f32 %v2926_v19, %v2327_v34  ;;  %v7828_v57 = vadd.f32 %v6201_v42, %v2330_v40  ;;  %v2328_v38 = vadd.f32 %v2203_v33, %v7480_v36  ;;  %v6174_v56 = vpop.f32.mrf.mxu1  ;;  %v6205_v42 = vpop.f32.mrf.mxu0 }
 0x16c   : > { %6363 = vmatmul.mubr.msk.bf16.gmra.mxu0 %vm552_vm2, %v5821_v7  ;;  %v2333_v1 = vadd.f32 %v6170_v27, %v7507_v49  ;;  %v2331_v32 = vadd.f32 %v2216_v20, %v7519_v24  ;;  %v2334_v9 = vadd.f32 %v6171_v44, %v7521_v29  ;;  %v2332_v17 = vadd.f32 %v2219_v61, %v7536_v12 }
 0x16d   : > { %6329 = vmatmul.mubr.msk.bf16.gmra.mxu1 %vm552_vm2, %v5772_v6  ;;  %v7837_v19 = vadd.f32 %v2929_v10, %v2328_v38  ;;  %v2337_v5 = vadd.f32 %v6174_v56, %v7548_v53  ;;  %v2232_v49 = vpop.f32.mrf.mxu1  ;;  %v2945_v24 = vpop.f32.mrf.mxu0 }
 0x16e   : > { %v7840_v36 = vadd.f32 %v6204_v30, %v2333_v1  ;;  %v7842_v33 = vadd.f32 %v2942_v18, %v2331_v32  ;;  %v7844_v58 = vadd.f32 %v6205_v42, %v2334_v9  ;;  %v2335_v29 = vadd.f32 %v2232_v49, %v7575_v51 }
 0x16f   : > { %v7847_v27 = vadd.f32 %v2945_v24, %v2332_v17  ;;  %v6175_v12 = vpop.f32.mrf.mxu1  ;;  %v6208_v60 = vpop.f32.mrf.mxu0 }
 0x170   : > { %v2338_v10 = vadd.f32 %v6175_v12, %v7577_v15  ;;  %v7850_v21 = vadd.f32 %v6208_v60, %v2337_v5 }
 0x171   : > { %v2235_v41 = vpop.f32.mrf.mxu1  ;;  %v2958_v53 = vpop.f32.mrf.mxu0 }
 0x172   : > { %v2336_v39 = vadd.f32 %v2235_v41, %v7589_v59  ;;  %v7853_v20 = vadd.f32 %v2958_v53, %v2335_v29 }
 0x173   : > { %v6178_v46 = vpop.f32.mrf.mxu1  ;;  %v6209_v31 = vpop.f32.mrf.mxu0 }
 0x174   : > { %v2341_v37 = vadd.f32 %v6178_v46, %v7607_v22  ;;  %v7856_v28 = vadd.f32 %v6209_v31, %v2338_v10  ;;  %v8239_v10 = vld [vmem:[#allocation3_spill] sm:$0xff]  ;;  %v8240_v46 = vld [vmem:[#allocation4_spill] sm:$0xff] }
 0x175   : > { %v2248_v51 = vpop.f32.mrf.mxu1  ;;  %v2961_v63 = vpop.f32.mrf.mxu0 }
 0x176   : > { %v2339_v43 = vadd.f32 %v2248_v51, %v7630_v14  ;;  %v7859_v25 = vadd.f32 %v2961_v63, %v2336_v39  ;;  %v8241_v63 = vld [vmem:[#allocation5_spill] sm:$0xff] }
 0x177   : > { %v6179_v15 = vpop.f32.mrf.mxu1  ;;  %v6212_v45 = vpop.f32.mrf.mxu0 }
 0x178   : > { %v2342_v35 = vadd.f32 %v6179_v15, %v7639_v48  ;;  %v7862_v62 = vadd.f32 %v6212_v45, %v2341_v37 }
 0x179   : > { %v2251_v59 = vpop.f32.mrf.mxu1  ;;  %v2974_v44 = vpop.f32.mrf.mxu0 }
 0x17a   : > { %v2340_v55 = vadd.f32 %v2251_v59, %v7644_v16  ;;  %v7865_v34 = vadd.f32 %v2974_v44, %v2339_v43 }
 0x17b   : > { %v6182_v22 = vpop.f32.mrf.mxu1  ;;  %v6213_v40 = vpop.f32.mrf.mxu0 }
 0x17c   : > { %8232 = vst [vmem:[#allocation9_spill] sm:$0xff] %v7865_v34  ;;  %v2345_v30 = vadd.f32 %v6182_v22, %v7655_v8  ;;  %v7868_v47 = vadd.f32 %v6213_v40, %v2342_v35  ;;  %v8242_v35 = vld [vmem:[#allocation6_spill] sm:$0xff]  ;;  %v8243_v40 = vld [vmem:[#allocation7_spill] sm:$0xff] }
 0x17d   : > { %v2264_v14 = vpop.f32.mrf.mxu1  ;;  %v2977_v7 = vpop.f32.mrf.mxu0 }
 0x17e   : > { %8233 = vst [vmem:[#allocation10_spill] sm:$0xff] %v7868_v47  ;;  %v2343_v61 = vadd.f32 %v2264_v14, %v7673_v13  ;;  %v7871_v6 = vadd.f32 %v2977_v7, %v2340_v55 }
 0x17f   : > { %v6183_v48 = vpop.f32.mrf.mxu1  ;;  %v6216_v1 = vpop.f32.mrf.mxu0 }
 0x180   : > { %8234 = vst [vmem:[#allocation11_spill] sm:$0xff] %v7871_v6  ;;  %v2346_v38 = vadd.f32 %v6183_v48, %v7677_v0  ;;  %v7875_v32 = vadd.f32 %v6216_v1, %v2345_v30  ;;  %v8244_v48 = vld [vmem:[#allocation8_spill] sm:$0xff] }
 0x181   : > { %v2267_v18 = vpop.f32.mrf.mxu1  ;;  %v2990_v17 = vpop.f32.mrf.mxu0 }
 0x182   : > { %v2344_v16 = vadd.f32 %v2267_v18, %v7679_v52  ;;  %8235 = vst [vmem:[#allocation12_spill] sm:$0xff] %v7875_v32  ;;  %v7878_v56 = vadd.f32 %v2990_v17, %v2343_v61 }
 0x183   : > { %v6186_v9 = vpop.f32.mrf.mxu1  ;;  %v6217_v5 = vpop.f32.mrf.mxu0 }
 0x184   : > { %v2349_v8 = vadd.f32 %v6186_v9, %v7690_v2  ;;  %8236 = vst [vmem:[#allocation13_spill] sm:$0xff] %v7878_v56  ;;  %v7881_v49 = vadd.f32 %v6217_v5, %v2346_v38 }
 0x185   : > { %v2280_v42 = vpop.f32.mrf.mxu1  ;;  %v2993_v0 = vpop.f32.mrf.mxu0 }
 0x186   : > { %v2347_v13 = vadd.f32 %v2280_v42, %v7705_v3  ;;  %8237 = vst [vmem:[#allocation14_spill] sm:$0xff] %v7881_v49  ;;  %v7884_v12 = vadd.f32 %v2993_v0, %v2344_v16 }
 0x187   : > { %v6187_v24 = vpop.f32.mrf.mxu1  ;;  %v6220_v60 = vpop.f32.mrf.mxu0 }
 0x188   : > { %v2350_v29 = vadd.f32 %v6187_v24, %v7716_v54  ;;  %8238 = vst [vmem:[#allocation15_spill] sm:$0xff] %v7884_v12  ;;  %v7887_v53 = vadd.f32 %v6220_v60, %v2349_v8 }
 0x189   : > { %v2283_v52 = vpop.f32.mrf.mxu1  ;;  %v3006_v39 = vpop.f32.mrf.mxu0 }
 0x18a   : > { %v2348_v41 = vadd.f32 %v2283_v52, %v8239_v10  ;;  %v7890_v37 = vadd.f32 %v3006_v39, %v2347_v13 }
 0x18b   : > { %v6190_v2 = vpop.f32.mrf.mxu1  ;;  %v6221_v51 = vpop.f32.mrf.mxu0 }
 0x18c   : > { %v2353_v31 = vadd.f32 %v6190_v2, %v8240_v46  ;;  %v7893_v15 = vadd.f32 %v6221_v51, %v2350_v29 }
 0x18d   : > { %v2296_v3 = vpop.f32.mrf.mxu1  ;;  %v3009_v45 = vpop.f32.mrf.mxu0 }
 0x18e   : > { %v2351_v43 = vadd.f32 %v2296_v3, %v8241_v63  ;;  %v7896_v44 = vadd.f32 %v3009_v45, %v2348_v41 }
 0x18f   : > { %v6191_v54 = vpop.f32.mrf.mxu1  ;;  %v6224_v22 = vpop.f32.mrf.mxu0 }
 0x190   : > { %v2354_v59 = vadd.f32 %v6191_v54, %v8242_v35  ;;  %v7899_v14 = vadd.f32 %v6224_v22, %v2353_v31 }
 0x191   : > { %v2299_v55 = vpop.f32.mrf.mxu1  ;;  %v3022_v61 = vpop.f32.mrf.mxu0 }
 0x192   : > { %v2352_v30 = vadd.f32 %v2299_v55, %v8243_v40  ;;  %v7902_v18 = vadd.f32 %v3022_v61, %v2351_v43 }
 0x193   : > { %v6194_v7 = vpop.f32.mrf.mxu1  ;;  %v6225_v16 = vpop.f32.mrf.mxu0 }
 0x194   : > { %v2357_v38 = vadd.f32 %v6194_v7, %v8244_v48  ;;  %v7905_v17 = vadd.f32 %v6225_v16, %v2354_v59 }
 0x195   : > { %v2312_v1 = vpop.f32.mrf.mxu1  ;;  %v3025_v42 = vpop.f32.mrf.mxu0 }
 0x196   : > { %v2355_v9 = vadd.f32 %v2312_v1, %v7801_v50  ;;  %v7908_v13 = vadd.f32 %v3025_v42, %v2352_v30 }
 0x197   : > { %v6195_v8 = vpop.f32.mrf.mxu1  ;;  %v6228_v0 = vpop.f32.mrf.mxu0 }
 0x198   : > { %v2358_v5 = vadd.f32 %v6195_v8, %v7815_v11  ;;  %v7911_v52 = vadd.f32 %v6228_v0, %v2357_v38 }
 0x199   : > { %v2315_v24 = vpop.f32.mrf.mxu1  ;;  %v3038_v60 = vpop.f32.mrf.mxu0 }
 0x19a   : > { %v2356_v29 = vadd.f32 %v2315_v24, %v7822_v26  ;;  %v7915_v41 = vadd.f32 %v3038_v60, %v2355_v9 }
 0x19b   : > { %v7913_v10 = vpop.f32.mrf.mxu1  ;;  %v6229_v50 = vpop.f32.mrf.mxu0 }
 0x19c   : > { %v7919_v39 = vadd.f32 %v6229_v50, %v2358_v5 }
 0x19d   : > { %v7917_v2 = vpop.f32.mrf.mxu1  ;;  %v3041_v46 = vpop.f32.mrf.mxu0 }
 0x19e   : > { %v7923_v31 = vadd.f32 %v3041_v46, %v2356_v29 }
 0x19f   : > { %v7921_v11 = vpop.f32.mrf.mxu1  ;;  %v7925_v3 = vpop.f32.mrf.mxu0 }
 0x1a1   : > { %v7927_v26 = vpop.f32.mrf.mxu1  ;;  %v7929_v51 = vpop.f32.mrf.mxu0 }
 0x1a3   : > { %v7931_v63 = vpop.f32.mrf.mxu1  ;;  %v7933_v43 = vpop.f32.mrf.mxu0 }
 0x1a5   : > { %v7935_v54 = vpop.f32.mrf.mxu1  ;;  %v7937_v45 = vpop.f32.mrf.mxu0 }
 0x1a7   : > { %v7939_v35 = vpop.f32.mrf.mxu1  ;;  %v7941_v59 = vpop.f32.mrf.mxu0 }
 0x1a9   : > { %v7943_v55 = vpop.f32.mrf.mxu1  ;;  %v7945_v22 = vpop.f32.mrf.mxu0 }
 0x1ab   : > { %v7947_v40 = vpop.f32.mrf.mxu1  ;;  %v7949_v30 = vpop.f32.mrf.mxu0 }
 0x1ad   : > { %v7951_v7 = vpop.f32.mrf.mxu1  ;;  %v7953_v61 = vpop.f32.mrf.mxu0 }
 0x1af   : > { %v7955_v48 = vpop.f32.mrf.mxu1  ;;  %v7957_v38 = vpop.f32.mrf.mxu0 }
 0x1b1   : > { %v7959_v1 = vpop.f32.mrf.mxu1  ;;  %v7961_v16 = vpop.f32.mrf.mxu0 }
 0x1b3   : > { %v7963_v9 = vpop.f32.mrf.mxu1  ;;  %v7965_v8 = vpop.f32.mrf.mxu0 }
 0x1b5   : > { %v7967_v42 = vpop.f32.mrf.mxu1  ;;  %v7969_v5 = vpop.f32.mrf.mxu0 }
 0x1b6   : > { %8245 = vst [vmem:[#allocation3_spill] sm:$0xff] %v7967_v42  ;;  %8246 = vst [vmem:[#allocation4_spill] sm:$0xff] %v7969_v5 }
 0x1b7   : > { %v7971_v24 = vpop.f32.mrf.mxu1  ;;  %v7973_v0 = vpop.f32.mrf.mxu0 }
 0x1b8   : > { %8247 = vst [vmem:[#allocation5_spill] sm:$0xff] %v7971_v24  ;;  %8248 = vst [vmem:[#allocation6_spill] sm:$0xff] %v7973_v0 }
 0x1b9   : > { %v7975_v29 = vpop.f32.mrf.mxu1  ;;  %v7977_v60 = vpop.f32.mrf.mxu0 }
 0x1ba   : > { %8249 = vst [vmem:[#allocation7_spill] sm:$0xff] %v7975_v29  ;;  %8250 = vst [vmem:[#allocation8_spill] sm:$0xff] %v7977_v60 }
 0x1bb   : > { %v7979_v50 = vpop.f32.mrf.mxu1  ;;  %v7981_v46 = vpop.f32.mrf.mxu0 }
 0x1bc   : > { %8251 = vst [vmem:[#allocation16_spill] sm:$0xff] %v7979_v50  ;;  %8252 = vst [vmem:[#allocation17_spill] sm:$0xff] %v7981_v46 }
 0x1bd   : > { %v7983_v12 = vpop.f32.mrf.mxu1  ;;  %v7985_v49 = vpop.f32.mrf.mxu0 }
 0x1be   : > { %8253 = vst [vmem:[#allocation18_spill] sm:$0xff] %v7983_v12  ;;  %8254 = vst [vmem:[#allocation19_spill] sm:$0xff] %v7985_v49 }
 0x1bf   : > { %v7987_v56 = vpop.f32.mrf.mxu1  ;;  %v7989_v32 = vpop.f32.mrf.mxu0 }
 0x1c0   : > { %8255 = vst [vmem:[#allocation20_spill] sm:$0xff] %v7987_v56  ;;  %8256 = vst [vmem:[#allocation21_spill] sm:$0xff] %v7989_v32 }
 0x1c1   : > { %v7991_v6 = vpop.f32.mrf.mxu1  ;;  %v7993_v24 = vpop.f32.mrf.mxu0 }
 0x1c2   : > { %8257 = vst [vmem:[#allocation22_spill] sm:$0xff] %v7991_v6  ;;  %8258 = vst [vmem:[#allocation23_spill] sm:$0xff] %v7993_v24 }
 0x1c3   : > { %v7996_v60 = vpop.f32.mrf.mxu0 }
 0x1c4   : > { %v6254_v47 = vpop.f32.mrf.mxu1  ;;  %8259 = vst [vmem:[#allocation24_spill] sm:$0xff] %v7996_v60 }
 0x1c5   : > { %v3545_v29 = vadd.f32 %v6254_v47, %v7887_v53  ;;  %v7999_v0 = vpop.f32.mrf.mxu0 }
 0x1c6   : > { %v3476_v50 = vpop.f32.mrf.mxu1  ;;  %8260 = vst [vmem:[#allocation25_spill] sm:$0xff] %v7999_v0 }
 0x1c7   : > { %v3543_v46 = vadd.f32 %v3476_v50, %v7890_v37  ;;  %v6288_v56 = vpop.f32.mrf.mxu0 }
 0x1c8   : > { %v6255_v12 = vpop.f32.mrf.mxu1  ;;  %v8002_v32 = vadd.f32 %v6288_v56, %v3545_v29 }
 0x1c9   : > { %v3546_v49 = vadd.f32 %v6255_v12, %v7893_v15  ;;  %v3835_v24 = vpop.f32.mrf.mxu0 }
 0x1ca   : > { %v3479_v42 = vpop.f32.mrf.mxu1  ;;  %v8005_v5 = vadd.f32 %v3835_v24, %v3543_v46 }
 0x1cb   : > { %v3544_v6 = vadd.f32 %v3479_v42, %v7896_v44  ;;  %v6289_v53 = vpop.f32.mrf.mxu0 }
 0x1cc   : > { %v6258_v34 = vpop.f32.mrf.mxu1  ;;  %v8008_v37 = vadd.f32 %v6289_v53, %v3546_v49 }
 0x1cd   : > { %v3549_v47 = vadd.f32 %v6258_v34, %v7899_v14  ;;  %v3838_v0 = vpop.f32.mrf.mxu0 }
 0x1ce   : > { %v3492_v60 = vpop.f32.mrf.mxu1  ;;  %v8011_v15 = vadd.f32 %v3838_v0, %v3544_v6 }
 0x1cf   : > { %v3547_v50 = vadd.f32 %v3492_v60, %v7902_v18  ;;  %v6292_v29 = vpop.f32.mrf.mxu0 }
 0x1d0   : > { %v6259_v12 = vpop.f32.mrf.mxu1  ;;  %v8014_v42 = vadd.f32 %v6292_v29, %v3549_v47  ;;  %v3525_v47 = vadd.f32 %v7913_v10, %v7824_v4  ;;  %v3526_v4 = vadd.f32 %v7921_v11, %v7828_v57 }
 0x1d1   : > { %v3550_v56 = vadd.f32 %v6259_v12, %v7905_v17  ;;  %v3851_v46 = vpop.f32.mrf.mxu0 }
 0x1d2   : > { %v3495_v44 = vpop.f32.mrf.mxu1  ;;  %v8017_v14 = vadd.f32 %v3851_v46, %v3547_v50  ;;  %v3885_v57 = vadd.f32 %v7933_v43, %v3526_v4 }
 0x1d3   : > { %v3548_v24 = vadd.f32 %v3495_v44, %v7908_v13  ;;  %v6293_v53 = vpop.f32.mrf.mxu0 }
 0x1d4   : > { %v8020_v60 = vadd.f32 %v6293_v53, %v3550_v56 }
 0x1d5   : > { %v3854_v0 = vpop.f32.mrf.mxu0 }
 0x1d6   : > { %v6262_v34 = vpop.f32.mrf.mxu1  ;;  %v8025_v12 = vadd.f32 %v3854_v0, %v3548_v24 }
 0x1d7   : > { %v3553_v49 = vadd.f32 %v6262_v34, %v7911_v52  ;;  %v6296_v29 = vpop.f32.mrf.mxu0  ;;  %v3523_v52 = vadd.f32 %v7917_v2, %v7826_v23  ;;  %v3884_v34 = vadd.f32 %v7925_v3, %v3525_v47  ;;  %v3524_v23 = vadd.f32 %v7927_v26, %v7837_v19 }
 0x1d8   : > { %v3508_v18 = vpop.f32.mrf.mxu1 }
 0x1d9   : > { %v3551_v6 = vadd.f32 %v3508_v18, %v7915_v41  ;;  %v8030_v44 = vadd.f32 %v6296_v29, %v3553_v49  ;;  %v3867_v46 = vpop.f32.mrf.mxu0  ;;  %v3882_v53 = vadd.f32 %v7929_v51, %v3523_v52  ;;  %v3529_v49 = vadd.f32 %v7931_v63, %v7840_v36 }
 0x1da   : > { %v6263_v17 = vpop.f32.mrf.mxu1  ;;  %v3527_v51 = vadd.f32 %v7935_v54, %v7842_v33  ;;  %v3883_v19 = vadd.f32 %v7937_v45, %v3524_v23  ;;  %v3530_v36 = vadd.f32 %v7939_v35, %v7844_v58  ;;  %v3528_v54 = vadd.f32 %v7943_v55, %v7847_v27 }
 0x1db   : > { %v3554_v13 = vadd.f32 %v6263_v17, %v7919_v39  ;;  %v8036_v10 = vadd.f32 %v3867_v46, %v3551_v6  ;;  %v6297_v24 = vpop.f32.mrf.mxu0 }
 0x1dc   : > { %v3511_v50 = vpop.f32.mrf.mxu1  ;;  %v3886_v33 = vadd.f32 %v7945_v22, %v3527_v51  ;;  %v3533_v22 = vadd.f32 %v7947_v40, %v7850_v21  ;;  %v3887_v23 = vadd.f32 %v7953_v61, %v3528_v54  ;;  %v3534_v51 = vadd.f32 %v7955_v48, %v7856_v28 }
 0x1dd   : > { %v3552_v56 = vadd.f32 %v3511_v50, %v7923_v31  ;;  %v8041_v2 = vadd.f32 %v6297_v24, %v3554_v13  ;;  %v3870_v3 = vpop.f32.mrf.mxu0  ;;  %v3888_v13 = vadd.f32 %v7941_v59, %v3529_v49 }
 0x1de   : > { %v6302_v41 = vpop.f32.mrf.mxu1 }
 0x1df   : > { %v4610_v31 = vadd.f32 %v6302_v41, %v3884_v34  ;;  %v8046_v11 = vadd.f32 %v3870_v3, %v3552_v56  ;;  %v3889_v41 = vadd.f32 %v7949_v30, %v3530_v36 }
 0x1e0   : > { %v4481_v39 = vpop.f32.mrf.mxu1 }
 0x1e1   : > { %v4608_v6 = vadd.f32 %v4481_v39, %v3882_v53 }
 0x1e2   : > { %v6303_v18 = vpop.f32.mrf.mxu1 }
 0x1e3   : > { %v4611_v47 = vadd.f32 %v6303_v18, %v3885_v57 }
 0x1e4   : > { %v6336_v0 = vpop.f32.mrf.mxu0  ;;  %v4484_v17 = vpop.f32.mrf.mxu1 }
 0x1e5   : > { %v5080_v26 = vadd.f32 %v6336_v0, %v4610_v31  ;;  %v4609_v52 = vadd.f32 %v4484_v17, %v3883_v19  ;;  %v3531_v31 = vadd.f32 %v7951_v7, %v7853_v20 }
 0x1e6   : > { %v4951_v63 = vpop.f32.mrf.mxu0  ;;  %v6306_v43 = vpop.f32.mrf.mxu1 }
 0x1e7   : > { %vm5112_vm10 = vcmp.ge.f32.partialorder %v5080_v26, 0.0  ;;  %v5144_v29 = vmul.f32 0.01, %v5080_v26  ;;  %v5078_v50 = vadd.f32 %v4951_v63, %v4608_v6  ;;  %v4614_v56 = vadd.f32 %v6306_v43, %v3888_v13 }
 0x1e8   : > { %v6337_v45 = vpop.f32.mrf.mxu0  ;;  %v4497_v46 = vpop.f32.mrf.mxu1  ;;  %v3892_v6 = vadd.f32 %v7957_v38, %v3533_v22  ;;  %v3532_v13 = vadd.f32 %v7959_v1, %v7859_v25 }
 0x1e9   : > { %v5176_v58 = vsel %vm5112_vm10, %v5080_v26, %v5144_v29  ;;  %vm5110_vm12 = vcmp.ge.f32.partialorder %v5078_v50, 0.0  ;;  %v5142_v35 = vmul.f32 0.01, %v5078_v50  ;;  %v5081_v59 = vadd.f32 %v6337_v45, %v4611_v47 }
 0x1ea   : > { %v5877_v27 = vpack.c.bf16 %v5176_v58, %v5176_v58  ;;  %v4954_v55 = vpop.f32.mrf.mxu0  ;;  %v4612_v34 = vadd.f32 %v4497_v46, %v3886_v33  ;;  %v6307_v4 = vpop.f32.mrf.mxu1  ;;  %v3890_v47 = vadd.f32 %v7961_v16, %v3531_v31  ;;  %v8261_v46 = vld [vmem:[#allocation4_spill] sm:$0xff] }
 0x1eb   : > { %v5174_v24 = vsel %vm5110_vm12, %v5078_v50, %v5142_v35  ;;  %vm5113_vm13 = vcmp.ge.f32.partialorder %v5081_v59, 0.0  ;;  %v5145_v39 = vmul.f32 0.01, %v5081_v59  ;;  %v5079_v53 = vadd.f32 %v4954_v55, %v4609_v52  ;;  %v8262_v35 = vld [vmem:[#allocation9_spill] sm:$0xff] }
 0x1ec   : > { %5337 = vst.msk [vmem:[%s8061_s28 + $0x8] sm:$0xf] %vm5334_vm11, %v5877_v27  ;;  %v5875_v30 = vpack.c.bf16 %v5174_v24, %v5174_v24  ;;  %v6340_v49 = vpop.f32.mrf.mxu0  ;;  %v4615_v3 = vadd.f32 %v6307_v4, %v3889_v41  ;;  %v4500_v21 = vpop.f32.mrf.mxu1  ;;  %v3893_v50 = vadd.f32 %v7965_v8, %v3534_v51  ;;  %v3537_v52 = vadd.f32 %v7963_v9, %v7862_v62  ;;  %v8264_v4 = vld [vmem:[#allocation6_spill] sm:$0xff]  ;;  %v8268_v51 = vld [vmem:[#allocation11_spill] sm:$0xff] }
 0x1ed   : > { %v5177_v40 = vsel %vm5113_vm13, %v5081_v59, %v5145_v39  ;;  %vm5111_vm14 = vcmp.ge.f32.partialorder %v5079_v53, 0.0  ;;  %v5143_v18 = vmul.f32 0.01, %v5079_v53  ;;  %v5084_v57 = vadd.f32 %v6340_v49, %v4614_v56  ;;  %v8263_v59 = vld [vmem:[#allocation3_spill] sm:$0xff]  ;;  %v8265_v39 = vld [vmem:[#allocation10_spill] sm:$0xff] }
 0x1ee   : > { %5335 = vst.msk [vmem:[%s8061_s28] sm:$0xf] %vm5334_vm11, %v5875_v30  ;;  %v5878_v61 = vpack.c.bf16 %v5177_v40, %v5177_v40  ;;  %v4967_v20 = vpop.f32.mrf.mxu0  ;;  %v4613_v7 = vadd.f32 %v4500_v21, %v3887_v23  ;;  %v6310_v0 = vpop.f32.mrf.mxu1  ;;  %v3891_v58 = vadd.f32 %v8261_v46, %v3532_v13  ;;  %v3535_v41 = vadd.f32 %v8263_v59, %v8262_v35  ;;  %v8272_v35 = vld [vmem:[#allocation12_spill] sm:$0xff] }
 0x1ef   : > { %v5175_v17 = vsel %vm5111_vm14, %v5079_v53, %v5143_v18  ;;  %vm5116_vm15 = vcmp.ge.f32.partialorder %v5084_v57, 0.0  ;;  %v5148_v19 = vmul.f32 0.01, %v5084_v57  ;;  %v5082_v26 = vadd.f32 %v4967_v20, %v4612_v34  ;;  %v8266_v53 = vld [vmem:[#allocation5_spill] sm:$0xff]  ;;  %v8273_v59 = vld [vmem:[#allocation16_spill] sm:$0xff] }
 0x1f0   : > { %5338 = vst.msk [vmem:[%s8061_s28 + $0xc] sm:$0xf] %vm5334_vm11, %v5878_v61  ;;  %v5876_v38 = vpack.c.bf16 %v5175_v17, %v5175_v17  ;;  %v6341_v28 = vpop.f32.mrf.mxu0  ;;  %v4618_v48 = vadd.f32 %v6310_v0, %v3892_v6  ;;  %v4513_v36 = vpop.f32.mrf.mxu1  ;;  %v3896_v24 = vadd.f32 %v8264_v4, %v3537_v52  ;;  %v3538_v23 = vadd.f32 %v8266_v53, %v8265_v39  ;;  %v8269_v61 = vld [vmem:[#allocation7_spill] sm:$0xff]  ;;  %v8275_v4 = vld [vmem:[#allocation18_spill] sm:$0xff] }
 0x1f1   : > { %v5180_v63 = vsel %vm5116_vm15, %v5084_v57, %v5148_v19  ;;  %vm5114_vm0 = vcmp.ge.f32.partialorder %v5082_v26, 0.0  ;;  %v5146_v43 = vmul.f32 0.01, %v5082_v26  ;;  %v5085_v29 = vadd.f32 %v6341_v28, %v4615_v3  ;;  %v8267_v57 = vld [vmem:[#allocation8_spill] sm:$0xff] }
 0x1f2   : > { %5336 = vst.msk [vmem:[%s8061_s28 + $0x4] sm:$0xf] %vm5334_vm11, %v5876_v38  ;;  %v5881_v16 = vpack.c.bf16 %v5180_v63, %v5180_v63  ;;  %v4970_v25 = vpop.f32.mrf.mxu0  ;;  %v4616_v1 = vadd.f32 %v4513_v36, %v3890_v47  ;;  %v6311_v33 = vpop.f32.mrf.mxu1  ;;  %v3894_v6 = vadd.f32 %v8267_v57, %v3535_v41  ;;  %v3536_v20 = vadd.f32 %v8269_v61, %v8268_v51  ;;  %v8270_v38 = vld [vmem:[#allocation17_spill] sm:$0xff] }
 0x1f3   : > { %v5178_v54 = vsel %vm5114_vm0, %v5082_v26, %v5146_v43  ;;  %vm5117_vm1 = vcmp.ge.f32.partialorder %v5085_v29, 0.0  ;;  %v5149_v45 = vmul.f32 0.01, %v5085_v29  ;;  %v5083_v56 = vadd.f32 %v4970_v25, %v4613_v7 }
 0x1f4   : > { %5341 = vst.msk [vmem:[%s8061_s28 + $0x18] sm:$0xf] %vm5334_vm11, %v5881_v16  ;;  %v5879_v8 = vpack.c.bf16 %v5178_v54, %v5178_v54  ;;  %v6344_v62 = vpop.f32.mrf.mxu0  ;;  %v4619_v9 = vadd.f32 %v6311_v33, %v3893_v50  ;;  %v4516_v22 = vpop.f32.mrf.mxu1  ;;  %v3897_v28 = vadd.f32 %v8270_v38, %v3538_v23  ;;  %v8271_v16 = vld [vmem:[#allocation19_spill] sm:$0xff]  ;;  %v3541_v41 = vadd.f32 %v8273_v59, %v8272_v35  ;;  %v8283_v35 = vld [vmem:[#allocation25_spill] sm:$0xff] }
 0x1f5   : > { %v5181_v27 = vsel %vm5117_vm1, %v5085_v29, %v5149_v45  ;;  %vm5115_vm2 = vcmp.ge.f32.partialorder %v5083_v56, 0.0  ;;  %v5147_v55 = vmul.f32 0.01, %v5083_v56  ;;  %v5088_v34 = vadd.f32 %v6344_v62, %v4618_v48 }
 0x1f6   : > { %5339 = vst.msk [vmem:[%s8061_s28 + $0x10] sm:$0xf] %vm5334_vm11, %v5879_v8  ;;  %v5882_v31 = vpack.c.bf16 %v5181_v27, %v5181_v27  ;;  %v4983_v30 = vpop.f32.mrf.mxu0  ;;  %v4617_v49 = vadd.f32 %v4516_v22, %v3891_v58  ;;  %v6314_v3 = vpop.f32.mrf.mxu1  ;;  %v3895_v25 = vadd.f32 %v8271_v16, %v3536_v20 }
 0x1f7   : > { %v5179_v21 = vsel %vm5115_vm2, %v5083_v56, %v5147_v55  ;;  %vm5120_vm3 = vcmp.ge.f32.partialorder %v5088_v34, 0.0  ;;  %v5152_v40 = vmul.f32 0.01, %v5088_v34  ;;  %v5086_v18 = vadd.f32 %v4983_v30, %v4616_v1 }
 0x1f8   : > { %5342 = vst.msk [vmem:[%s8061_s28 + $0x1c] sm:$0xf] %vm5334_vm11, %v5882_v31  ;;  %v5880_v7 = vpack.c.bf16 %v5179_v21, %v5179_v21  ;;  %v6345_v0 = vpop.f32.mrf.mxu0  ;;  %v4622_v17 = vadd.f32 %v6314_v3, %v3896_v24  ;;  %v4529_v19 = vpop.f32.mrf.mxu1  ;;  %v8277_v21 = vld [vmem:[#allocation14_spill] sm:$0xff] }
 0x1f9   : > { %v5184_v26 = vsel %vm5120_vm3, %v5088_v34, %v5152_v40  ;;  %vm5118_vm4 = vcmp.ge.f32.partialorder %v5086_v18, 0.0  ;;  %v5150_v47 = vmul.f32 0.01, %v5086_v18  ;;  %v5089_v13 = vadd.f32 %v6345_v0, %v4619_v9  ;;  %v8274_v34 = vld [vmem:[#allocation13_spill] sm:$0xff]  ;;  %v8278_v40 = vld [vmem:[#allocation20_spill] sm:$0xff] }
 0x1fa   : > { %5340 = vst.msk [vmem:[%s8061_s28 + $0x14] sm:$0xf] %vm5334_vm11, %v5880_v7  ;;  %v5885_v48 = vpack.c.bf16 %v5184_v26, %v5184_v26  ;;  %v4986_v36 = vpop.f32.mrf.mxu0  ;;  %v4620_v63 = vadd.f32 %v4529_v19, %v3894_v6  ;;  %v6315_v43 = vpop.f32.mrf.mxu1  ;;  %v3539_v24 = vadd.f32 %v8275_v4, %v8274_v34  ;;  %v8279_v7 = vld [vmem:[#allocation23_spill] sm:$0xff] }
 0x1fb   : > { %v5182_v29 = vsel %vm5118_vm4, %v5086_v18, %v5150_v47  ;;  %vm5121_vm5 = vcmp.ge.f32.partialorder %v5089_v13, 0.0  ;;  %v5153_v50 = vmul.f32 0.01, %v5089_v13  ;;  %v5087_v52 = vadd.f32 %v4986_v36, %v4617_v49  ;;  %v8276_v49 = vld [vmem:[#allocation21_spill] sm:$0xff] }
 0x1fc   : > { %5345 = vst.msk [vmem:[%s8061_s28 + $0x28] sm:$0xf] %vm5334_vm11, %v5885_v48  ;;  %v5883_v1 = vpack.c.bf16 %v5182_v29, %v5182_v29  ;;  %v6348_v33 = vpop.f32.mrf.mxu0  ;;  %v4623_v54 = vadd.f32 %v6315_v43, %v3897_v28  ;;  %v4532_v45 = vpop.f32.mrf.mxu1  ;;  %v3900_v3 = vadd.f32 %v8276_v49, %v3541_v41  ;;  %v3542_v18 = vadd.f32 %v8278_v40, %v8277_v21  ;;  %v8280_v28 = vld [vmem:[#allocation15_spill] sm:$0xff]  ;;  %v8281_v48 = vld [vmem:[#allocation22_spill] sm:$0xff] }
 0x1fd   : > { %v5185_v56 = vsel %vm5121_vm5, %v5089_v13, %v5153_v50  ;;  %vm5119_vm6 = vcmp.ge.f32.partialorder %v5087_v52, 0.0  ;;  %v5151_v46 = vmul.f32 0.01, %v5087_v52  ;;  %v5092_v58 = vadd.f32 %v6348_v33, %v4622_v17  ;;  %v8282_v50 = vld [vmem:[#allocation24_spill] sm:$0xff] }
 0x1fe   : > { %5343 = vst.msk [vmem:[%s8061_s28 + $0x20] sm:$0xf] %vm5334_vm11, %v5883_v1  ;;  %v5886_v8 = vpack.c.bf16 %v5185_v56, %v5185_v56  ;;  %v4999_v62 = vpop.f32.mrf.mxu0  ;;  %v4621_v9 = vadd.f32 %v4532_v45, %v3895_v25  ;;  %v3898_v0 = vadd.f32 %v8279_v7, %v3539_v24  ;;  %v3540_v36 = vadd.f32 %v8281_v48, %v8280_v28 }
 0x1ff   : > { %v5183_v22 = vsel %vm5119_vm6, %v5087_v52, %v5151_v46  ;;  %vm5124_vm7 = vcmp.ge.f32.partialorder %v5092_v58, 0.0  ;;  %v5156_v27 = vmul.f32 0.01, %v5092_v58  ;;  %v5090_v55 = vadd.f32 %v4999_v62, %v4620_v63 }
 0x200   : > { %5346 = vst.msk [vmem:[%s8061_s28 + $0x2c] sm:$0xf] %vm5334_vm11, %v5886_v8  ;;  %v5884_v39 = vpack.c.bf16 %v5183_v22, %v5183_v22  ;;  %v6349_v53 = vpop.f32.mrf.mxu0  ;;  %v3901_v52 = vadd.f32 %v8282_v50, %v3542_v18  ;;  %v3899_v59 = vadd.f32 %v8283_v35, %v3540_v36 }
 0x201   : > { %v5188_v23 = vsel %vm5124_vm7, %v5092_v58, %v5156_v27  ;;  %vm5122_vm8 = vcmp.ge.f32.partialorder %v5090_v55, 0.0  ;;  %v5154_v31 = vmul.f32 0.01, %v5090_v55  ;;  %v5093_v30 = vadd.f32 %v6349_v53, %v4623_v54 }
 0x202   : > { %5344 = vst.msk [vmem:[%s8061_s28 + $0x24] sm:$0xf] %vm5334_vm11, %v5884_v39  ;;  %v5889_v57 = vpack.c.bf16 %v5188_v23, %v5188_v23  ;;  %v5002_v6 = vpop.f32.mrf.mxu0 }
 0x203   : > { %v5186_v51 = vsel %vm5122_vm8, %v5090_v55, %v5154_v31  ;;  %vm5125_vm9 = vcmp.ge.f32.partialorder %v5093_v30, 0.0  ;;  %v5157_v61 = vmul.f32 0.01, %v5093_v30  ;;  %v5091_v20 = vadd.f32 %v5002_v6, %v4621_v9  ;;  %v6318_v19 = vpop.f32.mrf.mxu1 }
 0x204   : > { %5349 = vst.msk [vmem:[%s8061_s28 + $0x38] sm:$0xf] %vm5334_vm11, %v5889_v57  ;;  %v5887_v17 = vpack.c.bf16 %v5186_v51, %v5186_v51  ;;  %v6352_v26 = vpop.f32.mrf.mxu0  ;;  %v4626_v38 = vadd.f32 %v6318_v19, %v3900_v3 }
 0x205   : > { %v5189_v47 = vsel %vm5125_vm9, %v5093_v30, %v5157_v61  ;;  %vm5123_vm10 = vcmp.ge.f32.partialorder %v5091_v20, 0.0  ;;  %v5155_v13 = vmul.f32 0.01, %v5091_v20  ;;  %v4545_v43 = vpop.f32.mrf.mxu1 }
 0x206   : > { %5347 = vst.msk [vmem:[%s8061_s28 + $0x30] sm:$0xf] %vm5334_vm11, %v5887_v17  ;;  %v5890_v63 = vpack.c.bf16 %v5189_v47, %v5189_v47  ;;  %v5015_v29 = vpop.f32.mrf.mxu0  ;;  %v5096_v25 = vadd.f32 %v6352_v26, %v4626_v38  ;;  %v4624_v1 = vadd.f32 %v4545_v43, %v3898_v0 }
 0x207   : > { %v5187_v16 = vsel %vm5123_vm10, %v5091_v20, %v5155_v13  ;;  %v6319_v54 = vpop.f32.mrf.mxu1 }
 0x208   : > { %5350 = vst.msk [vmem:[%s8061_s28 + $0x3c] sm:$0xf] %vm5334_vm11, %v5890_v63  ;;  %v5888_v33 = vpack.c.bf16 %v5187_v16, %v5187_v16  ;;  %vm5128_vm12 = vcmp.ge.f32.partialorder %v5096_v25, 0.0  ;;  %v5160_v45 = vmul.f32 0.01, %v5096_v25  ;;  %v5094_v56 = vadd.f32 %v5015_v29, %v4624_v1  ;;  %v6353_v58 = vpop.f32.mrf.mxu0 }
 0x209   : > { %v4627_v46 = vadd.f32 %v6319_v54, %v3901_v52  ;;  %v4548_v41 = vpop.f32.mrf.mxu1 }
 0x20a   : > { %5348 = vst.msk [vmem:[%s8061_s28 + $0x34] sm:$0xf] %vm5334_vm11, %v5888_v33  ;;  %v5192_v8 = vsel %vm5128_vm12, %v5096_v25, %v5160_v45  ;;  %vm5126_vm13 = vcmp.ge.f32.partialorder %v5094_v56, 0.0  ;;  %v5158_v62 = vmul.f32 0.01, %v5094_v56  ;;  %v4625_v27 = vadd.f32 %v4548_v41, %v3899_v59  ;;  %v5018_v4 = vpop.f32.mrf.mxu0 }
 0x20b   : > { %v5097_v9 = vadd.f32 %v6353_v58, %v4627_v46  ;;  %v5893_v22 = vpack.c.bf16 %v5192_v8, %v5192_v8 }
 0x20c   : > { %v5190_v55 = vsel %vm5126_vm13, %v5094_v56, %v5158_v62  ;;  %v5095_v39 = vadd.f32 %v5018_v4, %v4625_v27 }
 0x20d   : > { %vm5129_vm14 = vcmp.ge.f32.partialorder %v5097_v9, 0.0  ;;  %v5161_v34 = vmul.f32 0.01, %v5097_v9  ;;  %5353 = vst.msk [vmem:[%s8061_s28 + $0x48] sm:$0xf] %vm5334_vm11, %v5893_v22  ;;  %v5891_v24 = vpack.c.bf16 %v5190_v55, %v5190_v55 }
 0x20e   : > { %vm5127_vm15 = vcmp.ge.f32.partialorder %v5095_v39, 0.0  ;;  %v5159_v31 = vmul.f32 0.01, %v5095_v39 }
 0x20f   : > { %v5193_v53 = vsel %vm5129_vm14, %v5097_v9, %v5161_v34  ;;  %5351 = vst.msk [vmem:[%s8061_s28 + $0x40] sm:$0xf] %vm5334_vm11, %v5891_v24 }
 0x210   : > { %v5894_v23 = vpack.c.bf16 %v5193_v53, %v5193_v53  ;;  %v6356_v30 = vpop.f32.mrf.mxu0  ;;  %v5191_v49 = vsel %vm5127_vm15, %v5095_v39, %v5159_v31 }
 0x211   : > { %v6322_v3 = vpop.f32.mrf.mxu1  ;;  %v5892_v21 = vpack.c.bf16 %v5191_v49, %v5191_v49 }
 0x212   : > { %5354 = vst.msk [vmem:[%s8061_s28 + $0x4c] sm:$0xf] %vm5334_vm11, %v5894_v23  ;;  %v4630_v40 = vadd.f32 %v6322_v3, %v8002_v32  ;;  %v5031_v18 = vpop.f32.mrf.mxu0 }
 0x213   : > { %v4561_v57 = vpop.f32.mrf.mxu1  ;;  %5352 = vst.msk [vmem:[%s8061_s28 + $0x44] sm:$0xf] %vm5334_vm11, %v5892_v21 }
 0x214   : > { %v5100_v6 = vadd.f32 %v6356_v30, %v4630_v40  ;;  %v4628_v51 = vadd.f32 %v4561_v57, %v8005_v5  ;;  %v6357_v17 = vpop.f32.mrf.mxu0 }
 0x215   : > { %v6323_v61 = vpop.f32.mrf.mxu1 }
 0x216   : > { %vm5132_vm0 = vcmp.ge.f32.partialorder %v5100_v6, 0.0  ;;  %v5164_v20 = vmul.f32 0.01, %v5100_v6  ;;  %v5098_v7 = vadd.f32 %v5031_v18, %v4628_v51  ;;  %v4631_v0 = vadd.f32 %v6323_v61, %v8008_v37  ;;  %v5034_v48 = vpop.f32.mrf.mxu0 }
 0x217   : > { %v4564_v19 = vpop.f32.mrf.mxu1 }
 0x218   : > { %v5196_v26 = vsel %vm5132_vm0, %v5100_v6, %v5164_v20  ;;  %vm5130_vm1 = vcmp.ge.f32.partialorder %v5098_v7, 0.0  ;;  %v5162_v32 = vmul.f32 0.01, %v5098_v7  ;;  %v5101_v47 = vadd.f32 %v6357_v17, %v4631_v0 }
 0x219   : > { %v5897_v13 = vpack.c.bf16 %v5196_v26, %v5196_v26  ;;  %v4629_v38 = vadd.f32 %v4564_v19, %v8011_v15 }
 0x21a   : > { %v5194_v28 = vsel %vm5130_vm1, %v5098_v7, %v5162_v32  ;;  %vm5133_vm2 = vcmp.ge.f32.partialorder %v5101_v47, 0.0  ;;  %v5165_v5 = vmul.f32 0.01, %v5101_v47 }
 0x21b   : > { %5357 = vst.msk [vmem:[%s8061_s28 + $0x58] sm:$0xf] %vm5334_vm11, %v5897_v13  ;;  %v5895_v36 = vpack.c.bf16 %v5194_v28, %v5194_v28  ;;  %v5099_v37 = vadd.f32 %v5034_v48, %v4629_v38 }
 0x21c   : > { %v5197_v63 = vsel %vm5133_vm2, %v5101_v47, %v5165_v5 }
 0x21d   : > { %5355 = vst.msk [vmem:[%s8061_s28 + $0x50] sm:$0xf] %vm5334_vm11, %v5895_v36  ;;  %v5898_v43 = vpack.c.bf16 %v5197_v63, %v5197_v63  ;;  %vm5131_vm3 = vcmp.ge.f32.partialorder %v5099_v37, 0.0  ;;  %v5163_v29 = vmul.f32 0.01, %v5099_v37 }
 0x21e   : > { %v6360_v50 = vpop.f32.mrf.mxu0 }
 0x21f   : > { %5358 = vst.msk [vmem:[%s8061_s28 + $0x5c] sm:$0xf] %vm5334_vm11, %v5898_v43  ;;  %v5195_v52 = vsel %vm5131_vm3, %v5099_v37, %v5163_v29  ;;  %v6326_v15 = vpop.f32.mrf.mxu1 }
 0x220   : > { %v5896_v16 = vpack.c.bf16 %v5195_v52, %v5195_v52  ;;  %v4634_v25 = vadd.f32 %v6326_v15, %v8014_v42  ;;  %v5047_v1 = vpop.f32.mrf.mxu0 }
 0x221   : > { %v4577_v33 = vpop.f32.mrf.mxu1 }
 0x222   : > { %5356 = vst.msk [vmem:[%s8061_s28 + $0x54] sm:$0xf] %vm5334_vm11, %v5896_v16  ;;  %v5104_v54 = vadd.f32 %v6360_v50, %v4634_v25  ;;  %v4632_v45 = vadd.f32 %v4577_v33, %v8017_v14  ;;  %v6361_v59 = vpop.f32.mrf.mxu0 }
 0x223   : > { %v6327_v56 = vpop.f32.mrf.mxu1 }
 0x224   : > { %vm5136_vm4 = vcmp.ge.f32.partialorder %v5104_v54, 0.0  ;;  %v5168_v46 = vmul.f32 0.01, %v5104_v54  ;;  %v5102_v58 = vadd.f32 %v5047_v1, %v4632_v45  ;;  %v4635_v35 = vadd.f32 %v6327_v56, %v8020_v60  ;;  %v5050_v55 = vpop.f32.mrf.mxu0 }
 0x225   : > { %v4580_v41 = vpop.f32.mrf.mxu1 }
 0x226   : > { %v5200_v8 = vsel %vm5136_vm4, %v5104_v54, %v5168_v46  ;;  %vm5134_vm5 = vcmp.ge.f32.partialorder %v5102_v58, 0.0  ;;  %v5166_v42 = vmul.f32 0.01, %v5102_v58  ;;  %v5105_v62 = vadd.f32 %v6361_v59, %v4635_v35 }
 0x227   : > { %v5901_v9 = vpack.c.bf16 %v5200_v8, %v5200_v8  ;;  %v4633_v22 = vadd.f32 %v4580_v41, %v8025_v12 }
 0x228   : > { %v5198_v27 = vsel %vm5134_vm5, %v5102_v58, %v5166_v42  ;;  %vm5137_vm6 = vcmp.ge.f32.partialorder %v5105_v62, 0.0  ;;  %v5169_v14 = vmul.f32 0.01, %v5105_v62 }
 0x229   : > { %5361 = vst.msk [vmem:[%s8061_s28 + $0x68] sm:$0xf] %vm5334_vm11, %v5901_v9  ;;  %v5899_v34 = vpack.c.bf16 %v5198_v27, %v5198_v27  ;;  %v5103_v60 = vadd.f32 %v5050_v55, %v4633_v22 }
 0x22a   : > { %v5201_v4 = vsel %vm5137_vm6, %v5105_v62, %v5169_v14 }
 0x22b   : > { %5359 = vst.msk [vmem:[%s8061_s28 + $0x60] sm:$0xf] %vm5334_vm11, %v5899_v34  ;;  %v5902_v24 = vpack.c.bf16 %v5201_v4, %v5201_v4  ;;  %vm5135_vm7 = vcmp.ge.f32.partialorder %v5103_v60, 0.0  ;;  %v5167_v39 = vmul.f32 0.01, %v5103_v60 }
 0x22c   : > { %v6364_v53 = vpop.f32.mrf.mxu0 }
 0x22d   : > { %5362 = vst.msk [vmem:[%s8061_s28 + $0x6c] sm:$0xf] %vm5334_vm11, %v5902_v24  ;;  %v5199_v23 = vsel %vm5135_vm7, %v5103_v60, %v5167_v39  ;;  %v6330_v12 = vpop.f32.mrf.mxu1 }
 0x22e   : > { %v5900_v31 = vpack.c.bf16 %v5199_v23, %v5199_v23  ;;  %v4638_v30 = vadd.f32 %v6330_v12, %v8030_v44  ;;  %v5063_v49 = vpop.f32.mrf.mxu0 }
 0x22f   : > { %v4593_v3 = vpop.f32.mrf.mxu1 }
 0x230   : > { %5360 = vst.msk [vmem:[%s8061_s28 + $0x64] sm:$0xf] %vm5334_vm11, %v5900_v31  ;;  %v5108_v21 = vadd.f32 %v6364_v53, %v4638_v30  ;;  %v4636_v40 = vadd.f32 %v4593_v3, %v8036_v10  ;;  %v6365_v61 = vpop.f32.mrf.mxu0 }
 0x231   : > { %v6331_v18 = vpop.f32.mrf.mxu1 }
 0x232   : > { %vm5140_vm8 = vcmp.ge.f32.partialorder %v5108_v21, 0.0  ;;  %v5172_v57 = vmul.f32 0.01, %v5108_v21  ;;  %v5106_v6 = vadd.f32 %v5063_v49, %v4636_v40  ;;  %v4639_v51 = vadd.f32 %v6331_v18, %v8041_v2  ;;  %v5066_v32 = vpop.f32.mrf.mxu0 }
 0x233   : > { %v4596_v20 = vpop.f32.mrf.mxu1 }
 0x234   : > { %v5204_v7 = vsel %vm5140_vm8, %v5108_v21, %v5172_v57  ;;  %vm5138_vm9 = vcmp.ge.f32.partialorder %v5106_v6, 0.0  ;;  %v5170_v44 = vmul.f32 0.01, %v5106_v6  ;;  %v5109_v0 = vadd.f32 %v6365_v61, %v4639_v51 }
 0x235   : > { %v5905_v17 = vpack.c.bf16 %v5204_v7, %v5204_v7  ;;  %v4637_v19 = vadd.f32 %v4596_v20, %v8046_v11 }
 0x236   : > { %v5202_v10 = vsel %vm5138_vm9, %v5106_v6, %v5170_v44  ;;  %vm5141_vm10 = vcmp.ge.f32.partialorder %v5109_v0, 0.0  ;;  %v5173_v26 = vmul.f32 0.01, %v5109_v0 }
 0x237   : > { %5365 = vst.msk [vmem:[%s8061_s28 + $0x78] sm:$0xf] %vm5334_vm11, %v5905_v17  ;;  %v5903_v47 = vpack.c.bf16 %v5202_v10, %v5202_v10  ;;  %v5107_v2 = vadd.f32 %v5066_v32, %v4637_v19 }
 0x238   : > { %v5205_v13 = vsel %vm5141_vm10, %v5109_v0, %v5173_v26 }
 0x239   : > { %5363 = vst.msk [vmem:[%s8061_s28 + $0x70] sm:$0xf] %vm5334_vm11, %v5903_v47  ;;  %v5906_v38 = vpack.c.bf16 %v5205_v13, %v5205_v13  ;;  %vm5139_vm12 = vcmp.ge.f32.partialorder %v5107_v2, 0.0  ;;  %v5171_v28 = vmul.f32 0.01, %v5107_v2 }
 0x23b   : > { %5366 = vst.msk [vmem:[%s8061_s28 + $0x7c] sm:$0xf] %vm5334_vm11, %v5906_v38  ;;  %v5203_v5 = vsel %vm5139_vm12, %v5107_v2, %v5171_v28 }
 0x23c   : > { %v5904_v48 = vpack.c.bf16 %v5203_v5, %v5203_v5 }
 0x23e   : > { %5364 = vst.msk [vmem:[%s8061_s28 + $0x74] sm:$0xf] %vm5334_vm11, %v5904_v48 }
 0x23f PF: > { %s14_s17 = sadd.s32 1, %s6475_s17   ;;  %s8284_s15 = smov %s6471_s16 }
 0x240   : > { %p11_p5 = scmp.ge.s32.totalorder %s14_s17, 4   ;;  %s8285_s16 = smov %s8287_s18 }
 0x242   :  { %13 = sbr.rel (!%p11_p5) target bundleno = 2 (0x2), region = 80 }

</bundles_post_ra>
